<compile_context>
chip_gen: v5e
topology: v5e:2x2
jax: 0.10.0
libtpu: 0.0.40
codegen_flags: <defaults>
</compile_context>

<pallas_src>
import functools

import jax
import jax.numpy as jnp
from jax.experimental import pallas as pl
from jax.experimental.pallas import tpu as pltpu

EPS = 1e-5
VMEM = pltpu.MemorySpace.VMEM


def _pad_left(K):
    # PyTorch "same" conv1d: odd K -> symmetric pad; even K -> ConstantPad1d((K//2-1, K//2)).
    return K // 2 if K % 2 == 1 else K // 2 - 1


# ------------------------------ Fused kernel -------------------------------- #

def _resnet_kernel(x_ref, p_ref, out_ref, im_ref, *,
                   units, sc3_bn_row, fc, pad_off, im_w):
    fc_w_off, fc_in, n_classes, fc_b_row = fc

    x0 = x_ref[...]                              # (N, L, Cin), channels on lanes
    N, L, _ = x0.shape
    NL = N * L
    inv_nl = 1.0 / NL

    def bn(y, bn_row, cout):
        # Training-mode BatchNorm1d over the N*L rows (biased variance), with ONE
        # fused cross-sublane reduction of [y, y*y] instead of two serial passes.
        s = jnp.sum(jnp.concatenate([y, y * y], axis=-1), axis=0, keepdims=True)
        mean = s[:, :cout] * inv_nl
        var = jnp.maximum(s[:, cout:] * inv_nl - mean * mean, 0.0)
        gamma = p_ref[bn_row:bn_row + 1, :cout]
        beta = p_ref[bn_row + 1:bn_row + 2, :cout]
        return (y - mean) * jax.lax.rsqrt(var + EPS) * gamma + beta

    def conv_bn(x3, name):
        # x3: (N, L, Cin) -> BN(same_conv1d(x3)) as (N*L, Cout), pre-activation.
        w_off, K, Cin, Cout, bn_row = units[name]
        if K == 1:
            xcol = x3.reshape(NL, Cin)
        else:
            pad_l = _pad_left(K)
            # Correctness invariant: only the interior rows [pad_off, pad_off+L)
            # of im_ref are ever read.  They are zeroed here, then partially
            # overwritten by the K shifted scatter-stores; the interior rows a
            # tap does NOT cover are exactly the "same"-padding zeros.  Halo rows
            # outside the interior may hold stale data from earlier convs --
            # they are never read.
            im_ref[:, pad_off:pad_off + L, :] = jnp.zeros((N, L, im_w), jnp.float32)
            for k in range(K):
                r0 = pad_off + pad_l - k
                im_ref[:, r0:r0 + L, k * Cin:(k + 1) * Cin] = x3
            xcol = im_ref[:, pad_off:pad_off + L, :K * Cin].reshape(NL, K * Cin)
        w = p_ref[w_off:w_off + K * Cin, :Cout]
        acc = jnp.dot(xcol, w, preferred_element_type=jnp.float32)
        # Conv bias omitted: exactly cancelled by the BN mean subtraction.
        return bn(acc, bn_row, Cout)

    w1 = units["c12"][3]          # nfm
    w2 = units["c22"][3]          # 2*nfm

    # ---- residual block 1 (first conv fused with the 1x1-conv+BN shortcut) ----
    y = conv_bn(x0, "f1")                                   # (NL, 2*w1): [main | shortcut]
    h = jnp.maximum(y[:, :w1], 0.0)
    sc = y[:, w1:2 * w1]
    h = jnp.maximum(conv_bn(h.reshape(N, L, w1), "c12"), 0.0)
    x1 = jnp.maximum(conv_bn(h.reshape(N, L, w1), "c13") + sc, 0.0)

    # ---- residual block 2 ----
    y = conv_bn(x1.reshape(N, L, w1), "f2")                 # (NL, 2*w2)
    h = jnp.maximum(y[:, :w2], 0.0)
    sc = y[:, w2:2 * w2]
    h = jnp.maximum(conv_bn(h.reshape(N, L, w2), "c22"), 0.0)
    x2 = jnp.maximum(conv_bn(h.reshape(N, L, w2), "c23") + sc, 0.0)

    # ---- residual block 3 (shortcut is BatchNorm only) ----
    h = jnp.maximum(conv_bn(x2.reshape(N, L, w2), "c31"), 0.0)
    sc = bn(x2, sc3_bn_row, w2)
    h = jnp.maximum(conv_bn(h.reshape(N, L, w2), "c32"), 0.0)
    x3 = jnp.maximum(conv_bn(h.reshape(N, L, w2), "c33") + sc, 0.0)

    # ---- AdaptiveAvgPool1d(1) -> Linear -> log_softmax ----
    gap = jnp.mean(x3.reshape(N, L, w2), axis=1)            # (N, 2*nfm)
    fw = p_ref[fc_w_off:fc_w_off + fc_in, :n_classes]
    fb = p_ref[fc_b_row:fc_b_row + 1, :n_classes]
    logits = jnp.dot(gap, fw, preferred_element_type=jnp.float32) + fb
    shifted = logits - jnp.max(logits, axis=-1, keepdims=True)
    out_ref[...] = shifted - jnp.log(jnp.sum(jnp.exp(shifted), axis=-1, keepdims=True))


# --------------------------- Parameter packing ------------------------------- #

def pack_params(params, *, in_ch, nfm, n_classes, ks):
    """Pack every weight / gamma / beta / bias into ONE (R, c_slab) f32 slab.

    Layout:  [matmul weights at 8-aligned row offsets | fc weight |
              gamma/beta row pairs per BN unit | sc3 gamma/beta | fc bias]
    Returns (slab, layout) where layout holds only static Python ints.
    """
    k1, k2, k3 = (int(k) for k in ks)
    f32 = jnp.float32
    p = params

    def fused_first(main, sc, K, Cin):
        # Embed the 1x1-conv shortcut weights at the centre-tap rows of a
        # widened first-conv im2col weight; concat gamma/beta accordingly.
        wm, ws = main["w2"], sc["w2"]
        Cm, Cs = wm.shape[1], ws.shape[1]
        pl_ = _pad_left(K)
        wf = jnp.zeros((K * Cin, Cm + Cs), f32)
        wf = wf.at[:, :Cm].set(wm)
        wf = wf.at[pl_ * Cin:(pl_ + 1) * Cin, Cm:].set(ws)
        g = jnp.concatenate([main["g"], sc["g"]], axis=1)
        b = jnp.concatenate([main["be"], sc["be"]], axis=1)
        return wf, g, b

    wdefs = []                                   # (name, W, K, Cin, Cout, gamma, beta)
    wf, g, b = fused_first(p["c11"], p["sc1"], k1, in_ch)
    wdefs.append(("f1", wf, k1, in_ch, 2 * nfm, g, b))
    wdefs.append(("c12", p["c12"]["w2"], k2, nfm, nfm, p["c12"]["g"], p["c12"]["be"]))
    wdefs.append(("c13", p["c13"]["w2"], k3, nfm, nfm, p["c13"]["g"], p["c13"]["be"]))
    wf, g, b = fused_first(p["c21"], p["sc2"], k1, nfm)
    wdefs.append(("f2", wf, k1, nfm, 4 * nfm, g, b))
    wdefs.append(("c22", p["c22"]["w2"], k2, 2 * nfm, 2 * nfm, p["c22"]["g"], p["c22"]["be"]))
    wdefs.append(("c23", p["c23"]["w2"], k3, 2 * nfm, 2 * nfm, p["c23"]["g"], p["c23"]["be"]))
    wdefs.append(("c31", p["c31"]["w2"], k1, 2 * nfm, 2 * nfm, p["c31"]["g"], p["c31"]["be"]))
    wdefs.append(("c32", p["c32"]["w2"], k2, 2 * nfm, 2 * nfm, p["c32"]["g"], p["c32"]["be"]))
    wdefs.append(("c33", p["c33"]["w2"], k3, 2 * nfm, 2 * nfm, p["c33"]["g"], p["c33"]["be"]))

    c_slab = max(max(d[4] for d in wdefs), n_classes)

    def padc(a):
        a = a.astype(f32)
        return jnp.pad(a, ((0, 0), (0, c_slab - a.shape[1])))

    rows, units, off = [], {}, 0
    # --- matmul weights (keep every block's starting row 8-aligned) ---
    for name, W, K, Cin, Cout, _, _ in wdefs:
        assert off % 8 == 0
        r = W.shape[0]
        rows.append(padc(W))
        r_pad = (-r) % 8
        if r_pad:
            rows.append(jnp.zeros((r_pad, c_slab), f32))
        units[name] = [off, K, Cin, Cout, -1]
        off += r + r_pad
    fc_w = p["fc_w"]
    fc_in = fc_w.shape[0]
    fc_w_off = off
    rows.append(padc(fc_w))
    r_pad = (-fc_in) % 8
    if r_pad:
        rows.append(jnp.zeros((r_pad, c_slab), f32))
    off += fc_in + r_pad
    # --- BN gamma/beta row pairs (single-row broadcast reads; no alignment need) ---
    for name, _, _, _, _, g, b in wdefs:
        units[name][4] = off
        rows.append(padc(g))
        rows.append(padc(b))
        off += 2
    sc3_bn_row = off
    rows.append(padc(p["sc3"]["g"]))
    rows.append(padc(p["sc3"]["be"]))
    off += 2
    fc_b_row = off
    rows.append(padc(p["fc_b"]))
    off += 1
    tail = (-off) % 8
    if tail:
        rows.append(jnp.zeros((tail, c_slab), f32))
        off += tail

    slab = jnp.concatenate(rows, axis=0)
    layout = dict(
        units={k: tuple(v) for k, v in units.items()},
        sc3_bn_row=int(sc3_bn_row),
        fc=(int(fc_w_off), int(fc_in), int(n_classes), int(fc_b_row)),
    )
    return slab, layout


# ------------------------------ JAX wrapper --------------------------------- #

def resnet_forward(x_ncl, slab, *, layout, ks):
    ks = tuple(int(k) for k in ks)
    N, c_in, L = x_ncl.shape
    # PyTorch (N, C, L) -> channels-last (N, L, C) so channels sit on vector lanes.
    x = jnp.transpose(x_ncl, (0, 2, 1)).astype(jnp.float32)

    units = layout["units"]
    fc_w_off, fc_in, n_classes, fc_b_row = layout["fc"]

    # im2col scratch geometry: interior starts at an 8-aligned sublane offset,
    # with room above/below for the shifted per-tap stores.
    max_pl = max(_pad_left(k) for k in ks)
    max_pr = max(k - 1 - _pad_left(k) for k in ks)
    pad_off = max(8, ((max_pr + 7) // 8) * 8)
    l_buf = ((pad_off + L + max_pl + 7) // 8) * 8
    im_w = max(K * Cin for (_, K, Cin, _, _) in units.values())

    # Advisory cost estimate so XLA schedules sensibly around the custom call.
    mm_flops = sum(2 * N * L * (K * Cin) * Cout
                   for (_, K, Cin, Cout, _) in units.values())
    mm_flops += 2 * N * fc_in * n_classes
    bytes_accessed = (int(x.size) + int(slab.size) + N * n_classes) * 4
    cost = pl.CostEstimate(flops=int(mm_flops),
                           transcendentals=int(N * n_classes + 32 * (len(units) + 1)),
                           bytes_accessed=int(bytes_accessed))

    kern = functools.partial(
        _resnet_kernel,
        units=units,
        sc3_bn_row=layout["sc3_bn_row"],
        fc=layout["fc"],
        pad_off=pad_off,
        im_w=im_w,
    )
    return pl.pallas_call(
        kern,
        out_shape=jax.ShapeDtypeStruct((N, n_classes), jnp.float32),
        in_specs=[pl.BlockSpec(memory_space=VMEM)] * 2,       # x + packed param slab
        out_specs=pl.BlockSpec(memory_space=VMEM),
        scratch_shapes=[pltpu.VMEM((N, l_buf, im_w), jnp.float32)],   # im2col scratch
        # Total VMEM use here is <1 MiB; keep the limit explicit so the
        # all-resident design is re-budgeted against v7x's 64 MiB when scaling.
        compiler_params=pltpu.CompilerParams(vmem_limit_bytes=32 * 1024 * 1024),
        cost_estimate=cost,
    )(x, slab)


# ------------------------------ Parameters ---------------------------------- #

def _conv_bn_params(key, K, Cin, Cout):
    scale = 1.0 / jnp.sqrt(jnp.float32(Cin * K))
    w = jax.random.normal(key, (K, Cin, Cout), jnp.float32) * scale
    return {
        # Conv weight pre-reshaped to the im2col layout (K*Cin, Cout).
        # Conv bias intentionally omitted (cancelled by batch-stat BatchNorm).
        "w2": w.reshape(K * Cin, Cout),
        "g": jnp.ones((1, Cout), jnp.float32),    # BatchNorm gamma
        "be": jnp.zeros((1, Cout), jnp.float32),  # BatchNorm beta
    }


def init_resnet_params(key, in_ch, nfm, n_classes, ks):
    keys = jax.random.split(key, 13)
    p = {}
    # block 1
    p["c11"] = _conv_bn_params(keys[0], ks[0], in_ch, nfm)
    p["c12"] = _conv_bn_params(keys[1], ks[1], nfm, nfm)
    p["c13"] = _conv_bn_params(keys[2], ks[2], nfm, nfm)
    p["sc1"] = _conv_bn_params(keys[3], 1, in_ch, nfm)
    # block 2
    p["c21"] = _conv_bn_params(keys[4], ks[0], nfm, 2 * nfm)
    p["c22"] = _conv_bn_params(keys[5], ks[1], 2 * nfm, 2 * nfm)
    p["c23"] = _conv_bn_params(keys[6], ks[2], 2 * nfm, 2 * nfm)
    p["sc2"] = _conv_bn_params(keys[7], 1, nfm, 2 * nfm)
    # block 3
    p["c31"] = _conv_bn_params(keys[8], ks[0], 2 * nfm, 2 * nfm)
    p["c32"] = _conv_bn_params(keys[9], ks[1], 2 * nfm, 2 * nfm)
    p["c33"] = _conv_bn_params(keys[10], ks[2], 2 * nfm, 2 * nfm)
    p["sc3"] = {"g": jnp.ones((1, 2 * nfm), jnp.float32),
                "be": jnp.zeros((1, 2 * nfm), jnp.float32)}
    # fully-connected head
    fan_in = 2 * nfm
    p["fc_w"] = jax.random.normal(keys[11], (fan_in, n_classes), jnp.float32) / jnp.sqrt(jnp.float32(fan_in))
    p["fc_b"] = jax.random.normal(keys[12], (1, n_classes), jnp.float32) / jnp.sqrt(jnp.float32(fan_in))
    return p


if __name__ == "__main__":
    key = jax.random.PRNGKey(0)
    kx, kp = jax.random.split(key)

    N, Cin, L = 2, 4, 16
    nfm, n_classes = 8, 5
    kernel_size = (8, 5, 3)

    x = jax.random.normal(kx, (N, Cin, L), jnp.float32)      # PyTorch NCL layout
    params = init_resnet_params(kp, Cin, nfm, n_classes, kernel_size)

    # Pack all parameters once (host side) into a single lane-dense slab.
    slab, layout = pack_params(params, in_ch=Cin, nfm=nfm,
                               n_classes=n_classes, ks=kernel_size)

    fwd = jax.jit(functools.partial(resnet_forward, layout=layout, ks=kernel_size))
    out = jax.block_until_ready(fwd(x, slab))

    assert out.shape == (N, n_classes)
    assert bool(jnp.all(jnp.isfinite(out)))
    # log_softmax rows should sum to ~1 in probability space
    assert bool(jnp.allclose(jnp.sum(jnp.exp(out), axis=-1), 1.0, atol=1e-4))
    print("KERNEL_OK")
</pallas_src>

<mosaic_0001>
module attributes {stable_mosaic.version = 11 : i64} {
  func.func @_resnet_kernel(%arg0: memref<2x16x4xf32, #tpu.memory_space<vmem>>, %arg1: memref<584x32xf32, #tpu.memory_space<vmem>>, %arg2: memref<2x5xf32, #tpu.memory_space<vmem>>, %arg3: memref<2x32x128xf32, #tpu.memory_space<vmem>>) attributes {dimension_semantics = [], scalar_prefetch = 0 : i64, scratch_operands = 1 : i64, tpu.core_type = #tpu.core_type<tc>} {
    %c0 = arith.constant 0 : index
    %c0_0 = arith.constant 0 : index
    %c0_1 = arith.constant 0 : index
    %0 = vector.load %arg0[%c0, %c0_0, %c0_1] : memref<2x16x4xf32, #tpu.memory_space<vmem>>, vector<2x16x4xf32>
    %cst = arith.constant 0.000000e+00 : f32
    %1 = vector.broadcast %cst : f32 to vector<2x16x128xf32>
    %c0_2 = arith.constant 0 : index
    %c8 = arith.constant 8 : index
    %c0_3 = arith.constant 0 : index
    %2 = vector.load %arg3[%c0_2, %c8, %c0_3] : memref<2x32x128xf32, #tpu.memory_space<vmem>>, vector<2x16x128xf32>
    tpu.vector_store %arg3[%c0_2, %c8, %c0_3], %1 {strides = array<i32>} : memref<2x32x128xf32, #tpu.memory_space<vmem>>, vector<2x16x128xf32>,
    %c0_4 = arith.constant 0 : index
    %c11 = arith.constant 11 : index
    %c0_5 = arith.constant 0 : index
    %3 = vector.load %arg3[%c0_4, %c11, %c0_5] : memref<2x32x128xf32, #tpu.memory_space<vmem>>, vector<2x16x4xf32>
    tpu.vector_store %arg3[%c0_4, %c11, %c0_5], %0 {strides = array<i32>} : memref<2x32x128xf32, #tpu.memory_space<vmem>>, vector<2x16x4xf32>,
    %c0_6 = arith.constant 0 : index
    %c10 = arith.constant 10 : index
    %c4 = arith.constant 4 : index
    %4 = vector.load %arg3[%c0_6, %c10, %c4] : memref<2x32x128xf32, #tpu.memory_space<vmem>>, vector<2x16x4xf32>
    tpu.vector_store %arg3[%c0_6, %c10, %c4], %0 {strides = array<i32>} : memref<2x32x128xf32, #tpu.memory_space<vmem>>, vector<2x16x4xf32>,
    %c0_7 = arith.constant 0 : index
    %c9 = arith.constant 9 : index
    %c8_8 = arith.constant 8 : index
    %5 = vector.load %arg3[%c0_7, %c9, %c8_8] : memref<2x32x128xf32, #tpu.memory_space<vmem>>, vector<2x16x4xf32>
    tpu.vector_store %arg3[%c0_7, %c9, %c8_8], %0 {strides = array<i32>} : memref<2x32x128xf32, #tpu.memory_space<vmem>>, vector<2x16x4xf32>,
    %c0_9 = arith.constant 0 : index
    %c8_10 = arith.constant 8 : index
    %c12 = arith.constant 12 : index
    %6 = vector.load %arg3[%c0_9, %c8_10, %c12] : memref<2x32x128xf32, #tpu.memory_space<vmem>>, vector<2x16x4xf32>
    tpu.vector_store %arg3[%c0_9, %c8_10, %c12], %0 {strides = array<i32>} : memref<2x32x128xf32, #tpu.memory_space<vmem>>, vector<2x16x4xf32>,
    %c0_11 = arith.constant 0 : index
    %c7 = arith.constant 7 : index
    %c16 = arith.constant 16 : index
    %7 = vector.load %arg3[%c0_11, %c7, %c16] : memref<2x32x128xf32, #tpu.memory_space<vmem>>, vector<2x16x4xf32>
    tpu.vector_store %arg3[%c0_11, %c7, %c16], %0 {strides = array<i32>} : memref<2x32x128xf32, #tpu.memory_space<vmem>>, vector<2x16x4xf32>,
    %c0_12 = arith.constant 0 : index
    %c6 = arith.constant 6 : index
    %c20 = arith.constant 20 : index
    %8 = vector.load %arg3[%c0_12, %c6, %c20] : memref<2x32x128xf32, #tpu.memory_space<vmem>>, vector<2x16x4xf32>
    tpu.vector_store %arg3[%c0_12, %c6, %c20], %0 {strides = array<i32>} : memref<2x32x128xf32, #tpu.memory_space<vmem>>, vector<2x16x4xf32>,
    %c0_13 = arith.constant 0 : index
    %c5 = arith.constant 5 : index
    %c24 = arith.constant 24 : index
    %9 = vector.load %arg3[%c0_13, %c5, %c24] : memref<2x32x128xf32, #tpu.memory_space<vmem>>, vector<2x16x4xf32>
    tpu.vector_store %arg3[%c0_13, %c5, %c24], %0 {strides = array<i32>} : memref<2x32x128xf32, #tpu.memory_space<vmem>>, vector<2x16x4xf32>,
    %c0_14 = arith.constant 0 : index
    %c4_15 = arith.constant 4 : index
    %c28 = arith.constant 28 : index
    %10 = vector.load %arg3[%c0_14, %c4_15, %c28] : memref<2x32x128xf32, #tpu.memory_space<vmem>>, vector<2x16x4xf32>
    tpu.vector_store %arg3[%c0_14, %c4_15, %c28], %0 {strides = array<i32>} : memref<2x32x128xf32, #tpu.memory_space<vmem>>, vector<2x16x4xf32>,
    %c0_16 = arith.constant 0 : index
    %c8_17 = arith.constant 8 : index
    %c0_18 = arith.constant 0 : index
    %11 = vector.load %arg3[%c0_16, %c8_17, %c0_18] : memref<2x32x128xf32, #tpu.memory_space<vmem>>, vector<2x16x32xf32>
    %12 = vector.shape_cast %11 : vector<2x16x32xf32> to vector<32x32xf32>
    %c0_19 = arith.constant 0 : index
    %c0_20 = arith.constant 0 : index
    %13 = vector.load %arg1[%c0_19, %c0_20] : memref<584x32xf32, #tpu.memory_space<vmem>>, vector<32x16xf32>
    %cst_21 = arith.constant dense<0.000000e+00> : vector<32x16xf32>
    %14 = tpu.matmul %12, %13, %cst_21 {dimension_numbers = #tpu.dot_dimension_numbers<[1], [0], [0], [1], [0, 0, 1, 1], [], []>} : vector<32x32xf32>, vector<32x16xf32>, vector<32x16xf32> -> vector<32x16xf32>
    %15 = arith.mulf %14, %14 : vector<32x16xf32>
    %16 = tpu.concatenate %14, %15 in 1 : vector<32x16xf32>, vector<32x16xf32> -> vector<32x32xf32>
    %cst_22 = arith.constant dense<0.000000e+00> : vector<32xf32>
    %17 = vector.multi_reduction <add>, %16, %cst_22 [0] : vector<32x32xf32> to vector<32xf32>
    %18 = vector.shape_cast %17 : vector<32xf32> to vector<1x32xf32>
    %19 = vector.extract_strided_slice %18 {offsets = [0, 0], sizes = [1, 16], strides = [1, 1]} : vector<1x32xf32> to vector<1x16xf32>
    %cst_23 = arith.constant 3.125000e-02 : f32
    %20 = vector.broadcast %cst_23 : f32 to vector<1x16xf32>
    %21 = arith.mulf %19, %20 : vector<1x16xf32>
    %22 = vector.extract_strided_slice %18 {offsets = [0, 16], sizes = [1, 16], strides = [1, 1]} : vector<1x32xf32> to vector<1x16xf32>
    %cst_24 = arith.constant 3.125000e-02 : f32
    %23 = vector.broadcast %cst_24 : f32 to vector<1x16xf32>
    %24 = arith.mulf %22, %23 : vector<1x16xf32>
    %25 = arith.mulf %21, %21 : vector<1x16xf32>
    %26 = arith.subf %24, %25 : vector<1x16xf32>
    %cst_25 = arith.constant 0.000000e+00 : f32
    %27 = vector.broadcast %cst_25 : f32 to vector<1x16xf32>
    %28 = arith.maximumf %26, %27 : vector<1x16xf32>
    %c560 = arith.constant 560 : index
    %c0_26 = arith.constant 0 : index
    %29 = vector.load %arg1[%c560, %c0_26] : memref<584x32xf32, #tpu.memory_space<vmem>>, vector<1x16xf32>
    %c561 = arith.constant 561 : index
    %c0_27 = arith.constant 0 : index
    %30 = vector.load %arg1[%c561, %c0_27] : memref<584x32xf32, #tpu.memory_space<vmem>>, vector<1x16xf32>
    %31 = vector.broadcast %21 : vector<1x16xf32> to vector<32x16xf32>
    %32 = arith.subf %14, %31 : vector<32x16xf32>
    %cst_28 = arith.constant 9.99999974E-6 : f32
    %33 = vector.broadcast %cst_28 : f32 to vector<1x16xf32>
    %34 = arith.addf %28, %33 : vector<1x16xf32>
    %35 = math.rsqrt %34 : vector<1x16xf32>
    %36 = vector.broadcast %35 : vector<1x16xf32> to vector<32x16xf32>
    %37 = arith.mulf %32, %36 : vector<32x16xf32>
    %38 = vector.broadcast %29 : vector<1x16xf32> to vector<32x16xf32>
    %39 = arith.mulf %37, %38 : vector<32x16xf32>
    %40 = vector.broadcast %30 : vector<1x16xf32> to vector<32x16xf32>
    %41 = arith.addf %39, %40 : vector<32x16xf32>
    %42 = vector.extract_strided_slice %41 {offsets = [0, 0], sizes = [32, 8], strides = [1, 1]} : vector<32x16xf32> to vector<32x8xf32>
    %cst_29 = arith.constant 0.000000e+00 : f32
    %43 = vector.broadcast %cst_29 : f32 to vector<32x8xf32>
    %44 = arith.maximumf %42, %43 : vector<32x8xf32>
    %45 = vector.extract_strided_slice %41 {offsets = [0, 8], sizes = [32, 8], strides = [1, 1]} : vector<32x16xf32> to vector<32x8xf32>
    %46 = vector.shape_cast %44 : vector<32x8xf32> to vector<2x16x8xf32>
    %cst_30 = arith.constant 0.000000e+00 : f32
    %47 = vector.broadcast %cst_30 : f32 to vector<2x16x128xf32>
    %c0_31 = arith.constant 0 : index
    %c8_32 = arith.constant 8 : index
    %c0_33 = arith.constant 0 : index
    %48 = vector.load %arg3[%c0_31, %c8_32, %c0_33] : memref<2x32x128xf32, #tpu.memory_space<vmem>>, vector<2x16x128xf32>
    tpu.vector_store %arg3[%c0_31, %c8_32, %c0_33], %47 {strides = array<i32>} : memref<2x32x128xf32, #tpu.memory_space<vmem>>, vector<2x16x128xf32>,
    %c0_34 = arith.constant 0 : index
    %c10_35 = arith.constant 10 : index
    %c0_36 = arith.constant 0 : index
    %49 = vector.load %arg3[%c0_34, %c10_35, %c0_36] : memref<2x32x128xf32, #tpu.memory_space<vmem>>, vector<2x16x8xf32>
    tpu.vector_store %arg3[%c0_34, %c10_35, %c0_36], %46 {strides = array<i32>} : memref<2x32x128xf32, #tpu.memory_space<vmem>>, vector<2x16x8xf32>,
    %c0_37 = arith.constant 0 : index
    %c9_38 = arith.constant 9 : index
    %c8_39 = arith.constant 8 : index
    %50 = vector.load %arg3[%c0_37, %c9_38, %c8_39] : memref<2x32x128xf32, #tpu.memory_space<vmem>>, vector<2x16x8xf32>
    tpu.vector_store %arg3[%c0_37, %c9_38, %c8_39], %46 {strides = array<i32>} : memref<2x32x128xf32, #tpu.memory_space<vmem>>, vector<2x16x8xf32>,
    %c0_40 = arith.constant 0 : index
    %c8_41 = arith.constant 8 : index
    %c16_42 = arith.constant 16 : index
    %51 = vector.load %arg3[%c0_40, %c8_41, %c16_42] : memref<2x32x128xf32, #tpu.memory_space<vmem>>, vector<2x16x8xf32>
    tpu.vector_store %arg3[%c0_40, %c8_41, %c16_42], %46 {strides = array<i32>} : memref<2x32x128xf32, #tpu.memory_space<vmem>>, vector<2x16x8xf32>,
    %c0_43 = arith.constant 0 : index
    %c7_44 = arith.constant 7 : index
    %c24_45 = arith.constant 24 : index
    %52 = vector.load %arg3[%c0_43, %c7_44, %c24_45] : memref<2x32x128xf32, #tpu.memory_space<vmem>>, vector<2x16x8xf32>
    tpu.vector_store %arg3[%c0_43, %c7_44, %c24_45], %46 {strides = array<i32>} : memref<2x32x128xf32, #tpu.memory_space<vmem>>, vector<2x16x8xf32>,
    %c0_46 = arith.constant 0 : index
    %c6_47 = arith.constant 6 : index
    %c32 = arith.constant 32 : index
    %53 = vector.load %arg3[%c0_46, %c6_47, %c32] : memref<2x32x128xf32, #tpu.memory_space<vmem>>, vector<2x16x8xf32>
    tpu.vector_store %arg3[%c0_46, %c6_47, %c32], %46 {strides = array<i32>} : memref<2x32x128xf32, #tpu.memory_space<vmem>>, vector<2x16x8xf32>,
    %c0_48 = arith.constant 0 : index
    %c8_49 = arith.constant 8 : index
    %c0_50 = arith.constant 0 : index
    %54 = vector.load %arg3[%c0_48, %c8_49, %c0_50] : memref<2x32x128xf32, #tpu.memory_space<vmem>>, vector<2x16x40xf32>
    %55 = vector.shape_cast %54 : vector<2x16x40xf32> to vector<32x40xf32>
    %c32_51 = arith.constant 32 : index
    %c0_52 = arith.constant 0 : index
    %56 = vector.load %arg1[%c32_51, %c0_52] : memref<584x32xf32, #tpu.memory_space<vmem>>, vector<40x8xf32>
    %cst_53 = arith.constant dense<0.000000e+00> : vector<32x8xf32>
    %57 = tpu.matmul %55, %56, %cst_53 {dimension_numbers = #tpu.dot_dimension_numbers<[1], [0], [0], [1], [0, 0, 1, 1], [], []>} : vector<32x40xf32>, vector<40x8xf32>, vector<32x8xf32> -> vector<32x8xf32>
    %58 = arith.mulf %57, %57 : vector<32x8xf32>
    %59 = tpu.concatenate %57, %58 in 1 : vector<32x8xf32>, vector<32x8xf32> -> vector<32x16xf32>
    %cst_54 = arith.constant dense<0.000000e+00> : vector<16xf32>
    %60 = vector.multi_reduction <add>, %59, %cst_54 [0] : vector<32x16xf32> to vector<16xf32>
    %61 = vector.shape_cast %60 : vector<16xf32> to vector<1x16xf32>
    %62 = vector.extract_strided_slice %61 {offsets = [0, 0], sizes = [1, 8], strides = [1, 1]} : vector<1x16xf32> to vector<1x8xf32>
    %cst_55 = arith.constant 3.125000e-02 : f32
    %63 = vector.broadcast %cst_55 : f32 to vector<1x8xf32>
    %64 = arith.mulf %62, %63 : vector<1x8xf32>
    %65 = vector.extract_strided_slice %61 {offsets = [0, 8], sizes = [1, 8], strides = [1, 1]} : vector<1x16xf32> to vector<1x8xf32>
    %cst_56 = arith.constant 3.125000e-02 : f32
    %66 = vector.broadcast %cst_56 : f32 to vector<1x8xf32>
    %67 = arith.mulf %65, %66 : vector<1x8xf32>
    %68 = arith.mulf %64, %64 : vector<1x8xf32>
    %69 = arith.subf %67, %68 : vector<1x8xf32>
    %cst_57 = arith.constant 0.000000e+00 : f32
    %70 = vector.broadcast %cst_57 : f32 to vector<1x8xf32>
    %71 = arith.maximumf %69, %70 : vector<1x8xf32>
    %c562 = arith.constant 562 : index
    %c0_58 = arith.constant 0 : index
    %72 = vector.load %arg1[%c562, %c0_58] : memref<584x32xf32, #tpu.memory_space<vmem>>, vector<1x8xf32>
    %c563 = arith.constant 563 : index
    %c0_59 = arith.constant 0 : index
    %73 = vector.load %arg1[%c563, %c0_59] : memref<584x32xf32, #tpu.memory_space<vmem>>, vector<1x8xf32>
    %74 = vector.broadcast %64 : vector<1x8xf32> to vector<32x8xf32>
    %75 = arith.subf %57, %74 : vector<32x8xf32>
    %cst_60 = arith.constant 9.99999974E-6 : f32
    %76 = vector.broadcast %cst_60 : f32 to vector<1x8xf32>
    %77 = arith.addf %71, %76 : vector<1x8xf32>
    %78 = math.rsqrt %77 : vector<1x8xf32>
    %79 = vector.broadcast %78 : vector<1x8xf32> to vector<32x8xf32>
    %80 = arith.mulf %75, %79 : vector<32x8xf32>
    %81 = vector.broadcast %72 : vector<1x8xf32> to vector<32x8xf32>
    %82 = arith.mulf %80, %81 : vector<32x8xf32>
    %83 = vector.broadcast %73 : vector<1x8xf32> to vector<32x8xf32>
    %84 = arith.addf %82, %83 : vector<32x8xf32>
    %cst_61 = arith.constant 0.000000e+00 : f32
    %85 = vector.broadcast %cst_61 : f32 to vector<32x8xf32>
    %86 = arith.maximumf %84, %85 : vector<32x8xf32>
    %87 = vector.shape_cast %86 : vector<32x8xf32> to vector<2x16x8xf32>
    %cst_62 = arith.constant 0.000000e+00 : f32
    %88 = vector.broadcast %cst_62 : f32 to vector<2x16x128xf32>
    %c0_63 = arith.constant 0 : index
    %c8_64 = arith.constant 8 : index
    %c0_65 = arith.constant 0 : index
    %89 = vector.load %arg3[%c0_63, %c8_64, %c0_65] : memref<2x32x128xf32, #tpu.memory_space<vmem>>, vector<2x16x128xf32>
    tpu.vector_store %arg3[%c0_63, %c8_64, %c0_65], %88 {strides = array<i32>} : memref<2x32x128xf32, #tpu.memory_space<vmem>>, vector<2x16x128xf32>,
    %c0_66 = arith.constant 0 : index
    %c9_67 = arith.constant 9 : index
    %c0_68 = arith.constant 0 : index
    %90 = vector.load %arg3[%c0_66, %c9_67, %c0_68] : memref<2x32x128xf32, #tpu.memory_space<vmem>>, vector<2x16x8xf32>
    tpu.vector_store %arg3[%c0_66, %c9_67, %c0_68], %87 {strides = array<i32>} : memref<2x32x128xf32, #tpu.memory_space<vmem>>, vector<2x16x8xf32>,
    %c0_69 = arith.constant 0 : index
    %c8_70 = arith.constant 8 : index
    %c8_71 = arith.constant 8 : index
    %91 = vector.load %arg3[%c0_69, %c8_70, %c8_71] : memref<2x32x128xf32, #tpu.memory_space<vmem>>, vector<2x16x8xf32>
    tpu.vector_store %arg3[%c0_69, %c8_70, %c8_71], %87 {strides = array<i32>} : memref<2x32x128xf32, #tpu.memory_space<vmem>>, vector<2x16x8xf32>,
    %c0_72 = arith.constant 0 : index
    %c7_73 = arith.constant 7 : index
    %c16_74 = arith.constant 16 : index
    %92 = vector.load %arg3[%c0_72, %c7_73, %c16_74] : memref<2x32x128xf32, #tpu.memory_space<vmem>>, vector<2x16x8xf32>
    tpu.vector_store %arg3[%c0_72, %c7_73, %c16_74], %87 {strides = array<i32>} : memref<2x32x128xf32, #tpu.memory_space<vmem>>, vector<2x16x8xf32>,
    %c0_75 = arith.constant 0 : index
    %c8_76 = arith.constant 8 : index
    %c0_77 = arith.constant 0 : index
    %93 = vector.load %arg3[%c0_75, %c8_76, %c0_77] : memref<2x32x128xf32, #tpu.memory_space<vmem>>, vector<2x16x24xf32>
    %94 = vector.shape_cast %93 : vector<2x16x24xf32> to vector<32x24xf32>
    %c72 = arith.constant 72 : index
    %c0_78 = arith.constant 0 : index
    %95 = vector.load %arg1[%c72, %c0_78] : memref<584x32xf32, #tpu.memory_space<vmem>>, vector<24x8xf32>
    %cst_79 = arith.constant dense<0.000000e+00> : vector<32x8xf32>
    %96 = tpu.matmul %94, %95, %cst_79 {dimension_numbers = #tpu.dot_dimension_numbers<[1], [0], [0], [1], [0, 0, 1, 1], [], []>} : vector<32x24xf32>, vector<24x8xf32>, vector<32x8xf32> -> vector<32x8xf32>
    %97 = arith.mulf %96, %96 : vector<32x8xf32>
    %98 = tpu.concatenate %96, %97 in 1 : vector<32x8xf32>, vector<32x8xf32> -> vector<32x16xf32>
    %cst_80 = arith.constant dense<0.000000e+00> : vector<16xf32>
    %99 = vector.multi_reduction <add>, %98, %cst_80 [0] : vector<32x16xf32> to vector<16xf32>
    %100 = vector.shape_cast %99 : vector<16xf32> to vector<1x16xf32>
    %101 = vector.extract_strided_slice %100 {offsets = [0, 0], sizes = [1, 8], strides = [1, 1]} : vector<1x16xf32> to vector<1x8xf32>
    %cst_81 = arith.constant 3.125000e-02 : f32
    %102 = vector.broadcast %cst_81 : f32 to vector<1x8xf32>
    %103 = arith.mulf %101, %102 : vector<1x8xf32>
    %104 = vector.extract_strided_slice %100 {offsets = [0, 8], sizes = [1, 8], strides = [1, 1]} : vector<1x16xf32> to vector<1x8xf32>
    %cst_82 = arith.constant 3.125000e-02 : f32
    %105 = vector.broadcast %cst_82 : f32 to vector<1x8xf32>
    %106 = arith.mulf %104, %105 : vector<1x8xf32>
    %107 = arith.mulf %103, %103 : vector<1x8xf32>
    %108 = arith.subf %106, %107 : vector<1x8xf32>
    %cst_83 = arith.constant 0.000000e+00 : f32
    %109 = vector.broadcast %cst_83 : f32 to vector<1x8xf32>
    %110 = arith.maximumf %108, %109 : vector<1x8xf32>
    %c564 = arith.constant 564 : index
    %c0_84 = arith.constant 0 : index
    %111 = vector.load %arg1[%c564, %c0_84] : memref<584x32xf32, #tpu.memory_space<vmem>>, vector<1x8xf32>
    %c565 = arith.constant 565 : index
    %c0_85 = arith.constant 0 : index
    %112 = vector.load %arg1[%c565, %c0_85] : memref<584x32xf32, #tpu.memory_space<vmem>>, vector<1x8xf32>
    %113 = vector.broadcast %103 : vector<1x8xf32> to vector<32x8xf32>
    %114 = arith.subf %96, %113 : vector<32x8xf32>
    %cst_86 = arith.constant 9.99999974E-6 : f32
    %115 = vector.broadcast %cst_86 : f32 to vector<1x8xf32>
    %116 = arith.addf %110, %115 : vector<1x8xf32>
    %117 = math.rsqrt %116 : vector<1x8xf32>
    %118 = vector.broadcast %117 : vector<1x8xf32> to vector<32x8xf32>
    %119 = arith.mulf %114, %118 : vector<32x8xf32>
    %120 = vector.broadcast %111 : vector<1x8xf32> to vector<32x8xf32>
    %121 = arith.mulf %119, %120 : vector<32x8xf32>
    %122 = vector.broadcast %112 : vector<1x8xf32> to vector<32x8xf32>
    %123 = arith.addf %121, %122 : vector<32x8xf32>
    %124 = arith.addf %123, %45 : vector<32x8xf32>
    %cst_87 = arith.constant 0.000000e+00 : f32
    %125 = vector.broadcast %cst_87 : f32 to vector<32x8xf32>
    %126 = arith.maximumf %124, %125 : vector<32x8xf32>
    %127 = vector.shape_cast %126 : vector<32x8xf32> to vector<2x16x8xf32>
    %cst_88 = arith.constant 0.000000e+00 : f32
    %128 = vector.broadcast %cst_88 : f32 to vector<2x16x128xf32>
    %c0_89 = arith.constant 0 : index
    %c8_90 = arith.constant 8 : index
    %c0_91 = arith.constant 0 : index
    %129 = vector.load %arg3[%c0_89, %c8_90, %c0_91] : memref<2x32x128xf32, #tpu.memory_space<vmem>>, vector<2x16x128xf32>
    tpu.vector_store %arg3[%c0_89, %c8_90, %c0_91], %128 {strides = array<i32>} : memref<2x32x128xf32, #tpu.memory_space<vmem>>, vector<2x16x128xf32>,
    %c0_92 = arith.constant 0 : index
    %c11_93 = arith.constant 11 : index
    %c0_94 = arith.constant 0 : index
    %130 = vector.load %arg3[%c0_92, %c11_93, %c0_94] : memref<2x32x128xf32, #tpu.memory_space<vmem>>, vector<2x16x8xf32>
    tpu.vector_store %arg3[%c0_92, %c11_93, %c0_94], %127 {strides = array<i32>} : memref<2x32x128xf32, #tpu.memory_space<vmem>>, vector<2x16x8xf32>,
    %c0_95 = arith.constant 0 : index
    %c10_96 = arith.constant 10 : index
    %c8_97 = arith.constant 8 : index
    %131 = vector.load %arg3[%c0_95, %c10_96, %c8_97] : memref<2x32x128xf32, #tpu.memory_space<vmem>>, vector<2x16x8xf32>
    tpu.vector_store %arg3[%c0_95, %c10_96, %c8_97], %127 {strides = array<i32>} : memref<2x32x128xf32, #tpu.memory_space<vmem>>, vector<2x16x8xf32>,
    %c0_98 = arith.constant 0 : index
    %c9_99 = arith.constant 9 : index
    %c16_100 = arith.constant 16 : index
    %132 = vector.load %arg3[%c0_98, %c9_99, %c16_100] : memref<2x32x128xf32, #tpu.memory_space<vmem>>, vector<2x16x8xf32>
    tpu.vector_store %arg3[%c0_98, %c9_99, %c16_100], %127 {strides = array<i32>} : memref<2x32x128xf32, #tpu.memory_space<vmem>>, vector<2x16x8xf32>,
    %c0_101 = arith.constant 0 : index
    %c8_102 = arith.constant 8 : index
    %c24_103 = arith.constant 24 : index
    %133 = vector.load %arg3[%c0_101, %c8_102, %c24_103] : memref<2x32x128xf32, #tpu.memory_space<vmem>>, vector<2x16x8xf32>
    tpu.vector_store %arg3[%c0_101, %c8_102, %c24_103], %127 {strides = array<i32>} : memref<2x32x128xf32, #tpu.memory_space<vmem>>, vector<2x16x8xf32>,
    %c0_104 = arith.constant 0 : index
    %c7_105 = arith.constant 7 : index
    %c32_106 = arith.constant 32 : index
    %134 = vector.load %arg3[%c0_104, %c7_105, %c32_106] : memref<2x32x128xf32, #tpu.memory_space<vmem>>, vector<2x16x8xf32>
    tpu.vector_store %arg3[%c0_104, %c7_105, %c32_106], %127 {strides = array<i32>} : memref<2x32x128xf32, #tpu.memory_space<vmem>>, vector<2x16x8xf32>,
    %c0_107 = arith.constant 0 : index
    %c6_108 = arith.constant 6 : index
    %c40 = arith.constant 40 : index
    %135 = vector.load %arg3[%c0_107, %c6_108, %c40] : memref<2x32x128xf32, #tpu.memory_space<vmem>>, vector<2x16x8xf32>
    tpu.vector_store %arg3[%c0_107, %c6_108, %c40], %127 {strides = array<i32>} : memref<2x32x128xf32, #tpu.memory_space<vmem>>, vector<2x16x8xf32>,
    %c0_109 = arith.constant 0 : index
    %c5_110 = arith.constant 5 : index
    %c48 = arith.constant 48 : index
    %136 = vector.load %arg3[%c0_109, %c5_110, %c48] : memref<2x32x128xf32, #tpu.memory_space<vmem>>, vector<2x16x8xf32>
    tpu.vector_store %arg3[%c0_109, %c5_110, %c48], %127 {strides = array<i32>} : memref<2x32x128xf32, #tpu.memory_space<vmem>>, vector<2x16x8xf32>,
    %c0_111 = arith.constant 0 : index
    %c4_112 = arith.constant 4 : index
    %c56 = arith.constant 56 : index
    %137 = vector.load %arg3[%c0_111, %c4_112, %c56] : memref<2x32x128xf32, #tpu.memory_space<vmem>>, vector<2x16x8xf32>
    tpu.vector_store %arg3[%c0_111, %c4_112, %c56], %127 {strides = array<i32>} : memref<2x32x128xf32, #tpu.memory_space<vmem>>, vector<2x16x8xf32>,
    %c0_113 = arith.constant 0 : index
    %c8_114 = arith.constant 8 : index
    %c0_115 = arith.constant 0 : index
    %138 = vector.load %arg3[%c0_113, %c8_114, %c0_115] : memref<2x32x128xf32, #tpu.memory_space<vmem>>, vector<2x16x64xf32>
    %139 = vector.shape_cast %138 : vector<2x16x64xf32> to vector<32x64xf32>
    %c96 = arith.constant 96 : index
    %c0_116 = arith.constant 0 : index
    %140 = vector.load %arg1[%c96, %c0_116] : memref<584x32xf32, #tpu.memory_space<vmem>>, vector<64x32xf32>
    %cst_117 = arith.constant dense<0.000000e+00> : vector<32x32xf32>
    %141 = tpu.matmul %139, %140, %cst_117 {dimension_numbers = #tpu.dot_dimension_numbers<[1], [0], [0], [1], [0, 0, 1, 1], [], []>} : vector<32x64xf32>, vector<64x32xf32>, vector<32x32xf32> -> vector<32x32xf32>
    %142 = arith.mulf %141, %141 : vector<32x32xf32>
    %143 = tpu.concatenate %141, %142 in 1 : vector<32x32xf32>, vector<32x32xf32> -> vector<32x64xf32>
    %cst_118 = arith.constant dense<0.000000e+00> : vector<64xf32>
    %144 = vector.multi_reduction <add>, %143, %cst_118 [0] : vector<32x64xf32> to vector<64xf32>
    %145 = vector.shape_cast %144 : vector<64xf32> to vector<1x64xf32>
    %146 = vector.extract_strided_slice %145 {offsets = [0, 0], sizes = [1, 32], strides = [1, 1]} : vector<1x64xf32> to vector<1x32xf32>
    %cst_119 = arith.constant 3.125000e-02 : f32
    %147 = vector.broadcast %cst_119 : f32 to vector<1x32xf32>
    %148 = arith.mulf %146, %147 : vector<1x32xf32>
    %149 = vector.extract_strided_slice %145 {offsets = [0, 32], sizes = [1, 32], strides = [1, 1]} : vector<1x64xf32> to vector<1x32xf32>
    %cst_120 = arith.constant 3.125000e-02 : f32
    %150 = vector.broadcast %cst_120 : f32 to vector<1x32xf32>
    %151 = arith.mulf %149, %150 : vector<1x32xf32>
    %152 = arith.mulf %148, %148 : vector<1x32xf32>
    %153 = arith.subf %151, %152 : vector<1x32xf32>
    %cst_121 = arith.constant 0.000000e+00 : f32
    %154 = vector.broadcast %cst_121 : f32 to vector<1x32xf32>
    %155 = arith.maximumf %153, %154 : vector<1x32xf32>
    %c566 = arith.constant 566 : index
    %c0_122 = arith.constant 0 : index
    %156 = vector.load %arg1[%c566, %c0_122] : memref<584x32xf32, #tpu.memory_space<vmem>>, vector<1x32xf32>
    %c567 = arith.constant 567 : index
    %c0_123 = arith.constant 0 : index
    %157 = vector.load %arg1[%c567, %c0_123] : memref<584x32xf32, #tpu.memory_space<vmem>>, vector<1x32xf32>
    %158 = vector.broadcast %148 : vector<1x32xf32> to vector<32x32xf32>
    %159 = arith.subf %141, %158 : vector<32x32xf32>
    %cst_124 = arith.constant 9.99999974E-6 : f32
    %160 = vector.broadcast %cst_124 : f32 to vector<1x32xf32>
    %161 = arith.addf %155, %160 : vector<1x32xf32>
    %162 = math.rsqrt %161 : vector<1x32xf32>
    %163 = vector.broadcast %162 : vector<1x32xf32> to vector<32x32xf32>
    %164 = arith.mulf %159, %163 : vector<32x32xf32>
    %165 = vector.broadcast %156 : vector<1x32xf32> to vector<32x32xf32>
    %166 = arith.mulf %164, %165 : vector<32x32xf32>
    %167 = vector.broadcast %157 : vector<1x32xf32> to vector<32x32xf32>
    %168 = arith.addf %166, %167 : vector<32x32xf32>
    %169 = vector.extract_strided_slice %168 {offsets = [0, 0], sizes = [32, 16], strides = [1, 1]} : vector<32x32xf32> to vector<32x16xf32>
    %cst_125 = arith.constant 0.000000e+00 : f32
    %170 = vector.broadcast %cst_125 : f32 to vector<32x16xf32>
    %171 = arith.maximumf %169, %170 : vector<32x16xf32>
    %172 = vector.extract_strided_slice %168 {offsets = [0, 16], sizes = [32, 16], strides = [1, 1]} : vector<32x32xf32> to vector<32x16xf32>
    %173 = vector.shape_cast %171 : vector<32x16xf32> to vector<2x16x16xf32>
    %cst_126 = arith.constant 0.000000e+00 : f32
    %174 = vector.broadcast %cst_126 : f32 to vector<2x16x128xf32>
    %c0_127 = arith.constant 0 : index
    %c8_128 = arith.constant 8 : index
    %c0_129 = arith.constant 0 : index
    %175 = vector.load %arg3[%c0_127, %c8_128, %c0_129] : memref<2x32x128xf32, #tpu.memory_space<vmem>>, vector<2x16x128xf32>
    tpu.vector_store %arg3[%c0_127, %c8_128, %c0_129], %174 {strides = array<i32>} : memref<2x32x128xf32, #tpu.memory_space<vmem>>, vector<2x16x128xf32>,
    %c0_130 = arith.constant 0 : index
    %c10_131 = arith.constant 10 : index
    %c0_132 = arith.constant 0 : index
    %176 = vector.load %arg3[%c0_130, %c10_131, %c0_132] : memref<2x32x128xf32, #tpu.memory_space<vmem>>, vector<2x16x16xf32>
    tpu.vector_store %arg3[%c0_130, %c10_131, %c0_132], %173 {strides = array<i32>} : memref<2x32x128xf32, #tpu.memory_space<vmem>>, vector<2x16x16xf32>,
    %c0_133 = arith.constant 0 : index
    %c9_134 = arith.constant 9 : index
    %c16_135 = arith.constant 16 : index
    %177 = vector.load %arg3[%c0_133, %c9_134, %c16_135] : memref<2x32x128xf32, #tpu.memory_space<vmem>>, vector<2x16x16xf32>
    tpu.vector_store %arg3[%c0_133, %c9_134, %c16_135], %173 {strides = array<i32>} : memref<2x32x128xf32, #tpu.memory_space<vmem>>, vector<2x16x16xf32>,
    %c0_136 = arith.constant 0 : index
    %c8_137 = arith.constant 8 : index
    %c32_138 = arith.constant 32 : index
    %178 = vector.load %arg3[%c0_136, %c8_137, %c32_138] : memref<2x32x128xf32, #tpu.memory_space<vmem>>, vector<2x16x16xf32>
    tpu.vector_store %arg3[%c0_136, %c8_137, %c32_138], %173 {strides = array<i32>} : memref<2x32x128xf32, #tpu.memory_space<vmem>>, vector<2x16x16xf32>,
    %c0_139 = arith.constant 0 : index
    %c7_140 = arith.constant 7 : index
    %c48_141 = arith.constant 48 : index
    %179 = vector.load %arg3[%c0_139, %c7_140, %c48_141] : memref<2x32x128xf32, #tpu.memory_space<vmem>>, vector<2x16x16xf32>
    tpu.vector_store %arg3[%c0_139, %c7_140, %c48_141], %173 {strides = array<i32>} : memref<2x32x128xf32, #tpu.memory_space<vmem>>, vector<2x16x16xf32>,
    %c0_142 = arith.constant 0 : index
    %c6_143 = arith.constant 6 : index
    %c64 = arith.constant 64 : index
    %180 = vector.load %arg3[%c0_142, %c6_143, %c64] : memref<2x32x128xf32, #tpu.memory_space<vmem>>, vector<2x16x16xf32>
    tpu.vector_store %arg3[%c0_142, %c6_143, %c64], %173 {strides = array<i32>} : memref<2x32x128xf32, #tpu.memory_space<vmem>>, vector<2x16x16xf32>,
    %c0_144 = arith.constant 0 : index
    %c8_145 = arith.constant 8 : index
    %c0_146 = arith.constant 0 : index
    %181 = vector.load %arg3[%c0_144, %c8_145, %c0_146] : memref<2x32x128xf32, #tpu.memory_space<vmem>>, vector<2x16x80xf32>
    %182 = vector.shape_cast %181 : vector<2x16x80xf32> to vector<32x80xf32>
    %c160 = arith.constant 160 : index
    %c0_147 = arith.constant 0 : index
    %183 = vector.load %arg1[%c160, %c0_147] : memref<584x32xf32, #tpu.memory_space<vmem>>, vector<80x16xf32>
    %cst_148 = arith.constant dense<0.000000e+00> : vector<32x16xf32>
    %184 = tpu.matmul %182, %183, %cst_148 {dimension_numbers = #tpu.dot_dimension_numbers<[1], [0], [0], [1], [0, 0, 1, 1], [], []>} : vector<32x80xf32>, vector<80x16xf32>, vector<32x16xf32> -> vector<32x16xf32>
    %185 = arith.mulf %184, %184 : vector<32x16xf32>
    %186 = tpu.concatenate %184, %185 in 1 : vector<32x16xf32>, vector<32x16xf32> -> vector<32x32xf32>
    %cst_149 = arith.constant dense<0.000000e+00> : vector<32xf32>
    %187 = vector.multi_reduction <add>, %186, %cst_149 [0] : vector<32x32xf32> to vector<32xf32>
    %188 = vector.shape_cast %187 : vector<32xf32> to vector<1x32xf32>
    %189 = vector.extract_strided_slice %188 {offsets = [0, 0], sizes = [1, 16], strides = [1, 1]} : vector<1x32xf32> to vector<1x16xf32>
    %cst_150 = arith.constant 3.125000e-02 : f32
    %190 = vector.broadcast %cst_150 : f32 to vector<1x16xf32>
    %191 = arith.mulf %189, %190 : vector<1x16xf32>
    %192 = vector.extract_strided_slice %188 {offsets = [0, 16], sizes = [1, 16], strides = [1, 1]} : vector<1x32xf32> to vector<1x16xf32>
    %cst_151 = arith.constant 3.125000e-02 : f32
    %193 = vector.broadcast %cst_151 : f32 to vector<1x16xf32>
    %194 = arith.mulf %192, %193 : vector<1x16xf32>
    %195 = arith.mulf %191, %191 : vector<1x16xf32>
    %196 = arith.subf %194, %195 : vector<1x16xf32>
    %cst_152 = arith.constant 0.000000e+00 : f32
    %197 = vector.broadcast %cst_152 : f32 to vector<1x16xf32>
    %198 = arith.maximumf %196, %197 : vector<1x16xf32>
    %c568 = arith.constant 568 : index
    %c0_153 = arith.constant 0 : index
    %199 = vector.load %arg1[%c568, %c0_153] : memref<584x32xf32, #tpu.memory_space<vmem>>, vector<1x16xf32>
    %c569 = arith.constant 569 : index
    %c0_154 = arith.constant 0 : index
    %200 = vector.load %arg1[%c569, %c0_154] : memref<584x32xf32, #tpu.memory_space<vmem>>, vector<1x16xf32>
    %201 = vector.broadcast %191 : vector<1x16xf32> to vector<32x16xf32>
    %202 = arith.subf %184, %201 : vector<32x16xf32>
    %cst_155 = arith.constant 9.99999974E-6 : f32
    %203 = vector.broadcast %cst_155 : f32 to vector<1x16xf32>
    %204 = arith.addf %198, %203 : vector<1x16xf32>
    %205 = math.rsqrt %204 : vector<1x16xf32>
    %206 = vector.broadcast %205 : vector<1x16xf32> to vector<32x16xf32>
    %207 = arith.mulf %202, %206 : vector<32x16xf32>
    %208 = vector.broadcast %199 : vector<1x16xf32> to vector<32x16xf32>
    %209 = arith.mulf %207, %208 : vector<32x16xf32>
    %210 = vector.broadcast %200 : vector<1x16xf32> to vector<32x16xf32>
    %211 = arith.addf %209, %210 : vector<32x16xf32>
    %cst_156 = arith.constant 0.000000e+00 : f32
    %212 = vector.broadcast %cst_156 : f32 to vector<32x16xf32>
    %213 = arith.maximumf %211, %212 : vector<32x16xf32>
    %214 = vector.shape_cast %213 : vector<32x16xf32> to vector<2x16x16xf32>
    %cst_157 = arith.constant 0.000000e+00 : f32
    %215 = vector.broadcast %cst_157 : f32 to vector<2x16x128xf32>
    %c0_158 = arith.constant 0 : index
    %c8_159 = arith.constant 8 : index
    %c0_160 = arith.constant 0 : index
    %216 = vector.load %arg3[%c0_158, %c8_159, %c0_160] : memref<2x32x128xf32, #tpu.memory_space<vmem>>, vector<2x16x128xf32>
    tpu.vector_store %arg3[%c0_158, %c8_159, %c0_160], %215 {strides = array<i32>} : memref<2x32x128xf32, #tpu.memory_space<vmem>>, vector<2x16x128xf32>,
    %c0_161 = arith.constant 0 : index
    %c9_162 = arith.constant 9 : index
    %c0_163 = arith.constant 0 : index
    %217 = vector.load %arg3[%c0_161, %c9_162, %c0_163] : memref<2x32x128xf32, #tpu.memory_space<vmem>>, vector<2x16x16xf32>
    tpu.vector_store %arg3[%c0_161, %c9_162, %c0_163], %214 {strides = array<i32>} : memref<2x32x128xf32, #tpu.memory_space<vmem>>, vector<2x16x16xf32>,
    %c0_164 = arith.constant 0 : index
    %c8_165 = arith.constant 8 : index
    %c16_166 = arith.constant 16 : index
    %218 = vector.load %arg3[%c0_164, %c8_165, %c16_166] : memref<2x32x128xf32, #tpu.memory_space<vmem>>, vector<2x16x16xf32>
    tpu.vector_store %arg3[%c0_164, %c8_165, %c16_166], %214 {strides = array<i32>} : memref<2x32x128xf32, #tpu.memory_space<vmem>>, vector<2x16x16xf32>,
    %c0_167 = arith.constant 0 : index
    %c7_168 = arith.constant 7 : index
    %c32_169 = arith.constant 32 : index
    %219 = vector.load %arg3[%c0_167, %c7_168, %c32_169] : memref<2x32x128xf32, #tpu.memory_space<vmem>>, vector<2x16x16xf32>
    tpu.vector_store %arg3[%c0_167, %c7_168, %c32_169], %214 {strides = array<i32>} : memref<2x32x128xf32, #tpu.memory_space<vmem>>, vector<2x16x16xf32>,
    %c0_170 = arith.constant 0 : index
    %c8_171 = arith.constant 8 : index
    %c0_172 = arith.constant 0 : index
    %220 = vector.load %arg3[%c0_170, %c8_171, %c0_172] : memref<2x32x128xf32, #tpu.memory_space<vmem>>, vector<2x16x48xf32>
    %221 = vector.shape_cast %220 : vector<2x16x48xf32> to vector<32x48xf32>
    %c240 = arith.constant 240 : index
    %c0_173 = arith.constant 0 : index
    %222 = vector.load %arg1[%c240, %c0_173] : memref<584x32xf32, #tpu.memory_space<vmem>>, vector<48x16xf32>
    %cst_174 = arith.constant dense<0.000000e+00> : vector<32x16xf32>
    %223 = tpu.matmul %221, %222, %cst_174 {dimension_numbers = #tpu.dot_dimension_numbers<[1], [0], [0], [1], [0, 0, 1, 1], [], []>} : vector<32x48xf32>, vector<48x16xf32>, vector<32x16xf32> -> vector<32x16xf32>
    %224 = arith.mulf %223, %223 : vector<32x16xf32>
    %225 = tpu.concatenate %223, %224 in 1 : vector<32x16xf32>, vector<32x16xf32> -> vector<32x32xf32>
    %cst_175 = arith.constant dense<0.000000e+00> : vector<32xf32>
    %226 = vector.multi_reduction <add>, %225, %cst_175 [0] : vector<32x32xf32> to vector<32xf32>
    %227 = vector.shape_cast %226 : vector<32xf32> to vector<1x32xf32>
    %228 = vector.extract_strided_slice %227 {offsets = [0, 0], sizes = [1, 16], strides = [1, 1]} : vector<1x32xf32> to vector<1x16xf32>
    %cst_176 = arith.constant 3.125000e-02 : f32
    %229 = vector.broadcast %cst_176 : f32 to vector<1x16xf32>
    %230 = arith.mulf %228, %229 : vector<1x16xf32>
    %231 = vector.extract_strided_slice %227 {offsets = [0, 16], sizes = [1, 16], strides = [1, 1]} : vector<1x32xf32> to vector<1x16xf32>
    %cst_177 = arith.constant 3.125000e-02 : f32
    %232 = vector.broadcast %cst_177 : f32 to vector<1x16xf32>
    %233 = arith.mulf %231, %232 : vector<1x16xf32>
    %234 = arith.mulf %230, %230 : vector<1x16xf32>
    %235 = arith.subf %233, %234 : vector<1x16xf32>
    %cst_178 = arith.constant 0.000000e+00 : f32
    %236 = vector.broadcast %cst_178 : f32 to vector<1x16xf32>
    %237 = arith.maximumf %235, %236 : vector<1x16xf32>
    %c570 = arith.constant 570 : index
    %c0_179 = arith.constant 0 : index
    %238 = vector.load %arg1[%c570, %c0_179] : memref<584x32xf32, #tpu.memory_space<vmem>>, vector<1x16xf32>
    %c571 = arith.constant 571 : index
    %c0_180 = arith.constant 0 : index
    %239 = vector.load %arg1[%c571, %c0_180] : memref<584x32xf32, #tpu.memory_space<vmem>>, vector<1x16xf32>
    %240 = vector.broadcast %230 : vector<1x16xf32> to vector<32x16xf32>
    %241 = arith.subf %223, %240 : vector<32x16xf32>
    %cst_181 = arith.constant 9.99999974E-6 : f32
    %242 = vector.broadcast %cst_181 : f32 to vector<1x16xf32>
    %243 = arith.addf %237, %242 : vector<1x16xf32>
    %244 = math.rsqrt %243 : vector<1x16xf32>
    %245 = vector.broadcast %244 : vector<1x16xf32> to vector<32x16xf32>
    %246 = arith.mulf %241, %245 : vector<32x16xf32>
    %247 = vector.broadcast %238 : vector<1x16xf32> to vector<32x16xf32>
    %248 = arith.mulf %246, %247 : vector<32x16xf32>
    %249 = vector.broadcast %239 : vector<1x16xf32> to vector<32x16xf32>
    %250 = arith.addf %248, %249 : vector<32x16xf32>
    %251 = arith.addf %250, %172 : vector<32x16xf32>
    %cst_182 = arith.constant 0.000000e+00 : f32
    %252 = vector.broadcast %cst_182 : f32 to vector<32x16xf32>
    %253 = arith.maximumf %251, %252 : vector<32x16xf32>
    %254 = vector.shape_cast %253 : vector<32x16xf32> to vector<2x16x16xf32>
    %cst_183 = arith.constant 0.000000e+00 : f32
    %255 = vector.broadcast %cst_183 : f32 to vector<2x16x128xf32>
    %c0_184 = arith.constant 0 : index
    %c8_185 = arith.constant 8 : index
    %c0_186 = arith.constant 0 : index
    %256 = vector.load %arg3[%c0_184, %c8_185, %c0_186] : memref<2x32x128xf32, #tpu.memory_space<vmem>>, vector<2x16x128xf32>
    tpu.vector_store %arg3[%c0_184, %c8_185, %c0_186], %255 {strides = array<i32>} : memref<2x32x128xf32, #tpu.memory_space<vmem>>, vector<2x16x128xf32>,
    %c0_187 = arith.constant 0 : index
    %c11_188 = arith.constant 11 : index
    %c0_189 = arith.constant 0 : index
    %257 = vector.load %arg3[%c0_187, %c11_188, %c0_189] : memref<2x32x128xf32, #tpu.memory_space<vmem>>, vector<2x16x16xf32>
    tpu.vector_store %arg3[%c0_187, %c11_188, %c0_189], %254 {strides = array<i32>} : memref<2x32x128xf32, #tpu.memory_space<vmem>>, vector<2x16x16xf32>,
    %c0_190 = arith.constant 0 : index
    %c10_191 = arith.constant 10 : index
    %c16_192 = arith.constant 16 : index
    %258 = vector.load %arg3[%c0_190, %c10_191, %c16_192] : memref<2x32x128xf32, #tpu.memory_space<vmem>>, vector<2x16x16xf32>
    tpu.vector_store %arg3[%c0_190, %c10_191, %c16_192], %254 {strides = array<i32>} : memref<2x32x128xf32, #tpu.memory_space<vmem>>, vector<2x16x16xf32>,
    %c0_193 = arith.constant 0 : index
    %c9_194 = arith.constant 9 : index
    %c32_195 = arith.constant 32 : index
    %259 = vector.load %arg3[%c0_193, %c9_194, %c32_195] : memref<2x32x128xf32, #tpu.memory_space<vmem>>, vector<2x16x16xf32>
    tpu.vector_store %arg3[%c0_193, %c9_194, %c32_195], %254 {strides = array<i32>} : memref<2x32x128xf32, #tpu.memory_space<vmem>>, vector<2x16x16xf32>,
    %c0_196 = arith.constant 0 : index
    %c8_197 = arith.constant 8 : index
    %c48_198 = arith.constant 48 : index
    %260 = vector.load %arg3[%c0_196, %c8_197, %c48_198] : memref<2x32x128xf32, #tpu.memory_space<vmem>>, vector<2x16x16xf32>
    tpu.vector_store %arg3[%c0_196, %c8_197, %c48_198], %254 {strides = array<i32>} : memref<2x32x128xf32, #tpu.memory_space<vmem>>, vector<2x16x16xf32>,
    %c0_199 = arith.constant 0 : index
    %c7_200 = arith.constant 7 : index
    %c64_201 = arith.constant 64 : index
    %261 = vector.load %arg3[%c0_199, %c7_200, %c64_201] : memref<2x32x128xf32, #tpu.memory_space<vmem>>, vector<2x16x16xf32>
    tpu.vector_store %arg3[%c0_199, %c7_200, %c64_201], %254 {strides = array<i32>} : memref<2x32x128xf32, #tpu.memory_space<vmem>>, vector<2x16x16xf32>,
    %c0_202 = arith.constant 0 : index
    %c6_203 = arith.constant 6 : index
    %c80 = arith.constant 80 : index
    %262 = vector.load %arg3[%c0_202, %c6_203, %c80] : memref<2x32x128xf32, #tpu.memory_space<vmem>>, vector<2x16x16xf32>
    tpu.vector_store %arg3[%c0_202, %c6_203, %c80], %254 {strides = array<i32>} : memref<2x32x128xf32, #tpu.memory_space<vmem>>, vector<2x16x16xf32>,
    %c0_204 = arith.constant 0 : index
    %c5_205 = arith.constant 5 : index
    %c96_206 = arith.constant 96 : index
    %263 = vector.load %arg3[%c0_204, %c5_205, %c96_206] : memref<2x32x128xf32, #tpu.memory_space<vmem>>, vector<2x16x16xf32>
    tpu.vector_store %arg3[%c0_204, %c5_205, %c96_206], %254 {strides = array<i32>} : memref<2x32x128xf32, #tpu.memory_space<vmem>>, vector<2x16x16xf32>,
    %c0_207 = arith.constant 0 : index
    %c4_208 = arith.constant 4 : index
    %c112 = arith.constant 112 : index
    %264 = vector.load %arg3[%c0_207, %c4_208, %c112] : memref<2x32x128xf32, #tpu.memory_space<vmem>>, vector<2x16x16xf32>
    tpu.vector_store %arg3[%c0_207, %c4_208, %c112], %254 {strides = array<i32>} : memref<2x32x128xf32, #tpu.memory_space<vmem>>, vector<2x16x16xf32>,
    %c0_209 = arith.constant 0 : index
    %c8_210 = arith.constant 8 : index
    %c0_211 = arith.constant 0 : index
    %265 = vector.load %arg3[%c0_209, %c8_210, %c0_211] : memref<2x32x128xf32, #tpu.memory_space<vmem>>, vector<2x16x128xf32>
    %266 = vector.shape_cast %265 : vector<2x16x128xf32> to vector<32x128xf32>
    %c288 = arith.constant 288 : index
    %c0_212 = arith.constant 0 : index
    %267 = vector.load %arg1[%c288, %c0_212] : memref<584x32xf32, #tpu.memory_space<vmem>>, vector<128x16xf32>
    %cst_213 = arith.constant dense<0.000000e+00> : vector<32x16xf32>
    %268 = tpu.matmul %266, %267, %cst_213 {dimension_numbers = #tpu.dot_dimension_numbers<[1], [0], [0], [1], [0, 0, 1, 1], [], []>} : vector<32x128xf32>, vector<128x16xf32>, vector<32x16xf32> -> vector<32x16xf32>
    %269 = arith.mulf %268, %268 : vector<32x16xf32>
    %270 = tpu.concatenate %268, %269 in 1 : vector<32x16xf32>, vector<32x16xf32> -> vector<32x32xf32>
    %cst_214 = arith.constant dense<0.000000e+00> : vector<32xf32>
    %271 = vector.multi_reduction <add>, %270, %cst_214 [0] : vector<32x32xf32> to vector<32xf32>
    %272 = vector.shape_cast %271 : vector<32xf32> to vector<1x32xf32>
    %273 = vector.extract_strided_slice %272 {offsets = [0, 0], sizes = [1, 16], strides = [1, 1]} : vector<1x32xf32> to vector<1x16xf32>
    %cst_215 = arith.constant 3.125000e-02 : f32
    %274 = vector.broadcast %cst_215 : f32 to vector<1x16xf32>
    %275 = arith.mulf %273, %274 : vector<1x16xf32>
    %276 = vector.extract_strided_slice %272 {offsets = [0, 16], sizes = [1, 16], strides = [1, 1]} : vector<1x32xf32> to vector<1x16xf32>
    %cst_216 = arith.constant 3.125000e-02 : f32
    %277 = vector.broadcast %cst_216 : f32 to vector<1x16xf32>
    %278 = arith.mulf %276, %277 : vector<1x16xf32>
    %279 = arith.mulf %275, %275 : vector<1x16xf32>
    %280 = arith.subf %278, %279 : vector<1x16xf32>
    %cst_217 = arith.constant 0.000000e+00 : f32
    %281 = vector.broadcast %cst_217 : f32 to vector<1x16xf32>
    %282 = arith.maximumf %280, %281 : vector<1x16xf32>
    %c572 = arith.constant 572 : index
    %c0_218 = arith.constant 0 : index
    %283 = vector.load %arg1[%c572, %c0_218] : memref<584x32xf32, #tpu.memory_space<vmem>>, vector<1x16xf32>
    %c573 = arith.constant 573 : index
    %c0_219 = arith.constant 0 : index
    %284 = vector.load %arg1[%c573, %c0_219] : memref<584x32xf32, #tpu.memory_space<vmem>>, vector<1x16xf32>
    %285 = vector.broadcast %275 : vector<1x16xf32> to vector<32x16xf32>
    %286 = arith.subf %268, %285 : vector<32x16xf32>
    %cst_220 = arith.constant 9.99999974E-6 : f32
    %287 = vector.broadcast %cst_220 : f32 to vector<1x16xf32>
    %288 = arith.addf %282, %287 : vector<1x16xf32>
    %289 = math.rsqrt %288 : vector<1x16xf32>
    %290 = vector.broadcast %289 : vector<1x16xf32> to vector<32x16xf32>
    %291 = arith.mulf %286, %290 : vector<32x16xf32>
    %292 = vector.broadcast %283 : vector<1x16xf32> to vector<32x16xf32>
    %293 = arith.mulf %291, %292 : vector<32x16xf32>
    %294 = vector.broadcast %284 : vector<1x16xf32> to vector<32x16xf32>
    %295 = arith.addf %293, %294 : vector<32x16xf32>
    %cst_221 = arith.constant 0.000000e+00 : f32
    %296 = vector.broadcast %cst_221 : f32 to vector<32x16xf32>
    %297 = arith.maximumf %295, %296 : vector<32x16xf32>
    %298 = arith.mulf %253, %253 : vector<32x16xf32>
    %299 = tpu.concatenate %253, %298 in 1 : vector<32x16xf32>, vector<32x16xf32> -> vector<32x32xf32>
    %cst_222 = arith.constant dense<0.000000e+00> : vector<32xf32>
    %300 = vector.multi_reduction <add>, %299, %cst_222 [0] : vector<32x32xf32> to vector<32xf32>
    %301 = vector.shape_cast %300 : vector<32xf32> to vector<1x32xf32>
    %302 = vector.extract_strided_slice %301 {offsets = [0, 0], sizes = [1, 16], strides = [1, 1]} : vector<1x32xf32> to vector<1x16xf32>
    %cst_223 = arith.constant 3.125000e-02 : f32
    %303 = vector.broadcast %cst_223 : f32 to vector<1x16xf32>
    %304 = arith.mulf %302, %303 : vector<1x16xf32>
    %305 = vector.extract_strided_slice %301 {offsets = [0, 16], sizes = [1, 16], strides = [1, 1]} : vector<1x32xf32> to vector<1x16xf32>
    %cst_224 = arith.constant 3.125000e-02 : f32
    %306 = vector.broadcast %cst_224 : f32 to vector<1x16xf32>
    %307 = arith.mulf %305, %306 : vector<1x16xf32>
    %308 = arith.mulf %304, %304 : vector<1x16xf32>
    %309 = arith.subf %307, %308 : vector<1x16xf32>
    %cst_225 = arith.constant 0.000000e+00 : f32
    %310 = vector.broadcast %cst_225 : f32 to vector<1x16xf32>
    %311 = arith.maximumf %309, %310 : vector<1x16xf32>
    %c578 = arith.constant 578 : index
    %c0_226 = arith.constant 0 : index
    %312 = vector.load %arg1[%c578, %c0_226] : memref<584x32xf32, #tpu.memory_space<vmem>>, vector<1x16xf32>
    %c579 = arith.constant 579 : index
    %c0_227 = arith.constant 0 : index
    %313 = vector.load %arg1[%c579, %c0_227] : memref<584x32xf32, #tpu.memory_space<vmem>>, vector<1x16xf32>
    %314 = vector.broadcast %304 : vector<1x16xf32> to vector<32x16xf32>
    %315 = arith.subf %253, %314 : vector<32x16xf32>
    %cst_228 = arith.constant 9.99999974E-6 : f32
    %316 = vector.broadcast %cst_228 : f32 to vector<1x16xf32>
    %317 = arith.addf %311, %316 : vector<1x16xf32>
    %318 = math.rsqrt %317 : vector<1x16xf32>
    %319 = vector.broadcast %318 : vector<1x16xf32> to vector<32x16xf32>
    %320 = arith.mulf %315, %319 : vector<32x16xf32>
    %321 = vector.broadcast %312 : vector<1x16xf32> to vector<32x16xf32>
    %322 = arith.mulf %320, %321 : vector<32x16xf32>
    %323 = vector.broadcast %313 : vector<1x16xf32> to vector<32x16xf32>
    %324 = arith.addf %322, %323 : vector<32x16xf32>
    %325 = vector.shape_cast %297 : vector<32x16xf32> to vector<2x16x16xf32>
    %cst_229 = arith.constant 0.000000e+00 : f32
    %326 = vector.broadcast %cst_229 : f32 to vector<2x16x128xf32>
    %c0_230 = arith.constant 0 : index
    %c8_231 = arith.constant 8 : index
    %c0_232 = arith.constant 0 : index
    %327 = vector.load %arg3[%c0_230, %c8_231, %c0_232] : memref<2x32x128xf32, #tpu.memory_space<vmem>>, vector<2x16x128xf32>
    tpu.vector_store %arg3[%c0_230, %c8_231, %c0_232], %326 {strides = array<i32>} : memref<2x32x128xf32, #tpu.memory_space<vmem>>, vector<2x16x128xf32>,
    %c0_233 = arith.constant 0 : index
    %c10_234 = arith.constant 10 : index
    %c0_235 = arith.constant 0 : index
    %328 = vector.load %arg3[%c0_233, %c10_234, %c0_235] : memref<2x32x128xf32, #tpu.memory_space<vmem>>, vector<2x16x16xf32>
    tpu.vector_store %arg3[%c0_233, %c10_234, %c0_235], %325 {strides = array<i32>} : memref<2x32x128xf32, #tpu.memory_space<vmem>>, vector<2x16x16xf32>,
    %c0_236 = arith.constant 0 : index
    %c9_237 = arith.constant 9 : index
    %c16_238 = arith.constant 16 : index
    %329 = vector.load %arg3[%c0_236, %c9_237, %c16_238] : memref<2x32x128xf32, #tpu.memory_space<vmem>>, vector<2x16x16xf32>
    tpu.vector_store %arg3[%c0_236, %c9_237, %c16_238], %325 {strides = array<i32>} : memref<2x32x128xf32, #tpu.memory_space<vmem>>, vector<2x16x16xf32>,
    %c0_239 = arith.constant 0 : index
    %c8_240 = arith.constant 8 : index
    %c32_241 = arith.constant 32 : index
    %330 = vector.load %arg3[%c0_239, %c8_240, %c32_241] : memref<2x32x128xf32, #tpu.memory_space<vmem>>, vector<2x16x16xf32>
    tpu.vector_store %arg3[%c0_239, %c8_240, %c32_241], %325 {strides = array<i32>} : memref<2x32x128xf32, #tpu.memory_space<vmem>>, vector<2x16x16xf32>,
    %c0_242 = arith.constant 0 : index
    %c7_243 = arith.constant 7 : index
    %c48_244 = arith.constant 48 : index
    %331 = vector.load %arg3[%c0_242, %c7_243, %c48_244] : memref<2x32x128xf32, #tpu.memory_space<vmem>>, vector<2x16x16xf32>
    tpu.vector_store %arg3[%c0_242, %c7_243, %c48_244], %325 {strides = array<i32>} : memref<2x32x128xf32, #tpu.memory_space<vmem>>, vector<2x16x16xf32>,
    %c0_245 = arith.constant 0 : index
    %c6_246 = arith.constant 6 : index
    %c64_247 = arith.constant 64 : index
    %332 = vector.load %arg3[%c0_245, %c6_246, %c64_247] : memref<2x32x128xf32, #tpu.memory_space<vmem>>, vector<2x16x16xf32>
    tpu.vector_store %arg3[%c0_245, %c6_246, %c64_247], %325 {strides = array<i32>} : memref<2x32x128xf32, #tpu.memory_space<vmem>>, vector<2x16x16xf32>,
    %c0_248 = arith.constant 0 : index
    %c8_249 = arith.constant 8 : index
    %c0_250 = arith.constant 0 : index
    %333 = vector.load %arg3[%c0_248, %c8_249, %c0_250] : memref<2x32x128xf32, #tpu.memory_space<vmem>>, vector<2x16x80xf32>
    %334 = vector.shape_cast %333 : vector<2x16x80xf32> to vector<32x80xf32>
    %c416 = arith.constant 416 : index
    %c0_251 = arith.constant 0 : index
    %335 = vector.load %arg1[%c416, %c0_251] : memref<584x32xf32, #tpu.memory_space<vmem>>, vector<80x16xf32>
    %cst_252 = arith.constant dense<0.000000e+00> : vector<32x16xf32>
    %336 = tpu.matmul %334, %335, %cst_252 {dimension_numbers = #tpu.dot_dimension_numbers<[1], [0], [0], [1], [0, 0, 1, 1], [], []>} : vector<32x80xf32>, vector<80x16xf32>, vector<32x16xf32> -> vector<32x16xf32>
    %337 = arith.mulf %336, %336 : vector<32x16xf32>
    %338 = tpu.concatenate %336, %337 in 1 : vector<32x16xf32>, vector<32x16xf32> -> vector<32x32xf32>
    %cst_253 = arith.constant dense<0.000000e+00> : vector<32xf32>
    %339 = vector.multi_reduction <add>, %338, %cst_253 [0] : vector<32x32xf32> to vector<32xf32>
    %340 = vector.shape_cast %339 : vector<32xf32> to vector<1x32xf32>
    %341 = vector.extract_strided_slice %340 {offsets = [0, 0], sizes = [1, 16], strides = [1, 1]} : vector<1x32xf32> to vector<1x16xf32>
    %cst_254 = arith.constant 3.125000e-02 : f32
    %342 = vector.broadcast %cst_254 : f32 to vector<1x16xf32>
    %343 = arith.mulf %341, %342 : vector<1x16xf32>
    %344 = vector.extract_strided_slice %340 {offsets = [0, 16], sizes = [1, 16], strides = [1, 1]} : vector<1x32xf32> to vector<1x16xf32>
    %cst_255 = arith.constant 3.125000e-02 : f32
    %345 = vector.broadcast %cst_255 : f32 to vector<1x16xf32>
    %346 = arith.mulf %344, %345 : vector<1x16xf32>
    %347 = arith.mulf %343, %343 : vector<1x16xf32>
    %348 = arith.subf %346, %347 : vector<1x16xf32>
    %cst_256 = arith.constant 0.000000e+00 : f32
    %349 = vector.broadcast %cst_256 : f32 to vector<1x16xf32>
    %350 = arith.maximumf %348, %349 : vector<1x16xf32>
    %c574 = arith.constant 574 : index
    %c0_257 = arith.constant 0 : index
    %351 = vector.load %arg1[%c574, %c0_257] : memref<584x32xf32, #tpu.memory_space<vmem>>, vector<1x16xf32>
    %c575 = arith.constant 575 : index
    %c0_258 = arith.constant 0 : index
    %352 = vector.load %arg1[%c575, %c0_258] : memref<584x32xf32, #tpu.memory_space<vmem>>, vector<1x16xf32>
    %353 = vector.broadcast %343 : vector<1x16xf32> to vector<32x16xf32>
    %354 = arith.subf %336, %353 : vector<32x16xf32>
    %cst_259 = arith.constant 9.99999974E-6 : f32
    %355 = vector.broadcast %cst_259 : f32 to vector<1x16xf32>
    %356 = arith.addf %350, %355 : vector<1x16xf32>
    %357 = math.rsqrt %356 : vector<1x16xf32>
    %358 = vector.broadcast %357 : vector<1x16xf32> to vector<32x16xf32>
    %359 = arith.mulf %354, %358 : vector<32x16xf32>
    %360 = vector.broadcast %351 : vector<1x16xf32> to vector<32x16xf32>
    %361 = arith.mulf %359, %360 : vector<32x16xf32>
    %362 = vector.broadcast %352 : vector<1x16xf32> to vector<32x16xf32>
    %363 = arith.addf %361, %362 : vector<32x16xf32>
    %cst_260 = arith.constant 0.000000e+00 : f32
    %364 = vector.broadcast %cst_260 : f32 to vector<32x16xf32>
    %365 = arith.maximumf %363, %364 : vector<32x16xf32>
    %366 = vector.shape_cast %365 : vector<32x16xf32> to vector<2x16x16xf32>
    %cst_261 = arith.constant 0.000000e+00 : f32
    %367 = vector.broadcast %cst_261 : f32 to vector<2x16x128xf32>
    %c0_262 = arith.constant 0 : index
    %c8_263 = arith.constant 8 : index
    %c0_264 = arith.constant 0 : index
    %368 = vector.load %arg3[%c0_262, %c8_263, %c0_264] : memref<2x32x128xf32, #tpu.memory_space<vmem>>, vector<2x16x128xf32>
    tpu.vector_store %arg3[%c0_262, %c8_263, %c0_264], %367 {strides = array<i32>} : memref<2x32x128xf32, #tpu.memory_space<vmem>>, vector<2x16x128xf32>,
    %c0_265 = arith.constant 0 : index
    %c9_266 = arith.constant 9 : index
    %c0_267 = arith.constant 0 : index
    %369 = vector.load %arg3[%c0_265, %c9_266, %c0_267] : memref<2x32x128xf32, #tpu.memory_space<vmem>>, vector<2x16x16xf32>
    tpu.vector_store %arg3[%c0_265, %c9_266, %c0_267], %366 {strides = array<i32>} : memref<2x32x128xf32, #tpu.memory_space<vmem>>, vector<2x16x16xf32>,
    %c0_268 = arith.constant 0 : index
    %c8_269 = arith.constant 8 : index
    %c16_270 = arith.constant 16 : index
    %370 = vector.load %arg3[%c0_268, %c8_269, %c16_270] : memref<2x32x128xf32, #tpu.memory_space<vmem>>, vector<2x16x16xf32>
    tpu.vector_store %arg3[%c0_268, %c8_269, %c16_270], %366 {strides = array<i32>} : memref<2x32x128xf32, #tpu.memory_space<vmem>>, vector<2x16x16xf32>,
    %c0_271 = arith.constant 0 : index
    %c7_272 = arith.constant 7 : index
    %c32_273 = arith.constant 32 : index
    %371 = vector.load %arg3[%c0_271, %c7_272, %c32_273] : memref<2x32x128xf32, #tpu.memory_space<vmem>>, vector<2x16x16xf32>
    tpu.vector_store %arg3[%c0_271, %c7_272, %c32_273], %366 {strides = array<i32>} : memref<2x32x128xf32, #tpu.memory_space<vmem>>, vector<2x16x16xf32>,
    %c0_274 = arith.constant 0 : index
    %c8_275 = arith.constant 8 : index
    %c0_276 = arith.constant 0 : index
    %372 = vector.load %arg3[%c0_274, %c8_275, %c0_276] : memref<2x32x128xf32, #tpu.memory_space<vmem>>, vector<2x16x48xf32>
    %373 = vector.shape_cast %372 : vector<2x16x48xf32> to vector<32x48xf32>
    %c496 = arith.constant 496 : index
    %c0_277 = arith.constant 0 : index
    %374 = vector.load %arg1[%c496, %c0_277] : memref<584x32xf32, #tpu.memory_space<vmem>>, vector<48x16xf32>
    %cst_278 = arith.constant dense<0.000000e+00> : vector<32x16xf32>
    %375 = tpu.matmul %373, %374, %cst_278 {dimension_numbers = #tpu.dot_dimension_numbers<[1], [0], [0], [1], [0, 0, 1, 1], [], []>} : vector<32x48xf32>, vector<48x16xf32>, vector<32x16xf32> -> vector<32x16xf32>
    %376 = arith.mulf %375, %375 : vector<32x16xf32>
    %377 = tpu.concatenate %375, %376 in 1 : vector<32x16xf32>, vector<32x16xf32> -> vector<32x32xf32>
    %cst_279 = arith.constant dense<0.000000e+00> : vector<32xf32>
    %378 = vector.multi_reduction <add>, %377, %cst_279 [0] : vector<32x32xf32> to vector<32xf32>
    %379 = vector.shape_cast %378 : vector<32xf32> to vector<1x32xf32>
    %380 = vector.extract_strided_slice %379 {offsets = [0, 0], sizes = [1, 16], strides = [1, 1]} : vector<1x32xf32> to vector<1x16xf32>
    %cst_280 = arith.constant 3.125000e-02 : f32
    %381 = vector.broadcast %cst_280 : f32 to vector<1x16xf32>
    %382 = arith.mulf %380, %381 : vector<1x16xf32>
    %383 = vector.extract_strided_slice %379 {offsets = [0, 16], sizes = [1, 16], strides = [1, 1]} : vector<1x32xf32> to vector<1x16xf32>
    %cst_281 = arith.constant 3.125000e-02 : f32
    %384 = vector.broadcast %cst_281 : f32 to vector<1x16xf32>
    %385 = arith.mulf %383, %384 : vector<1x16xf32>
    %386 = arith.mulf %382, %382 : vector<1x16xf32>
    %387 = arith.subf %385, %386 : vector<1x16xf32>
    %cst_282 = arith.constant 0.000000e+00 : f32
    %388 = vector.broadcast %cst_282 : f32 to vector<1x16xf32>
    %389 = arith.maximumf %387, %388 : vector<1x16xf32>
    %c576 = arith.constant 576 : index
    %c0_283 = arith.constant 0 : index
    %390 = vector.load %arg1[%c576, %c0_283] : memref<584x32xf32, #tpu.memory_space<vmem>>, vector<1x16xf32>
    %c577 = arith.constant 577 : index
    %c0_284 = arith.constant 0 : index
    %391 = vector.load %arg1[%c577, %c0_284] : memref<584x32xf32, #tpu.memory_space<vmem>>, vector<1x16xf32>
    %392 = vector.broadcast %382 : vector<1x16xf32> to vector<32x16xf32>
    %393 = arith.subf %375, %392 : vector<32x16xf32>
    %cst_285 = arith.constant 9.99999974E-6 : f32
    %394 = vector.broadcast %cst_285 : f32 to vector<1x16xf32>
    %395 = arith.addf %389, %394 : vector<1x16xf32>
    %396 = math.rsqrt %395 : vector<1x16xf32>
    %397 = vector.broadcast %396 : vector<1x16xf32> to vector<32x16xf32>
    %398 = arith.mulf %393, %397 : vector<32x16xf32>
    %399 = vector.broadcast %390 : vector<1x16xf32> to vector<32x16xf32>
    %400 = arith.mulf %398, %399 : vector<32x16xf32>
    %401 = vector.broadcast %391 : vector<1x16xf32> to vector<32x16xf32>
    %402 = arith.addf %400, %401 : vector<32x16xf32>
    %403 = arith.addf %402, %324 : vector<32x16xf32>
    %cst_286 = arith.constant 0.000000e+00 : f32
    %404 = vector.broadcast %cst_286 : f32 to vector<32x16xf32>
    %405 = arith.maximumf %403, %404 : vector<32x16xf32>
    %406 = vector.shape_cast %405 : vector<32x16xf32> to vector<2x16x16xf32>
    %cst_287 = arith.constant dense<0.000000e+00> : vector<2x16xf32>
    %407 = vector.multi_reduction <add>, %406, %cst_287 [1] : vector<2x16x16xf32> to vector<2x16xf32>
    %cst_288 = arith.constant 1.600000e+01 : f32
    %408 = vector.broadcast %cst_288 : f32 to vector<2x16xf32>
    %409 = arith.divf %407, %408 : vector<2x16xf32>
    %c544 = arith.constant 544 : index
    %c0_289 = arith.constant 0 : index
    %410 = vector.load %arg1[%c544, %c0_289] : memref<584x32xf32, #tpu.memory_space<vmem>>, vector<16x5xf32>
    %c580 = arith.constant 580 : index
    %c0_290 = arith.constant 0 : index
    %411 = vector.load %arg1[%c580, %c0_290] : memref<584x32xf32, #tpu.memory_space<vmem>>, vector<1x5xf32>
    %cst_291 = arith.constant dense<0.000000e+00> : vector<2x5xf32>
    %412 = tpu.matmul %409, %410, %cst_291 {dimension_numbers = #tpu.dot_dimension_numbers<[1], [0], [0], [1], [0, 0, 1, 1], [], []>} : vector<2x16xf32>, vector<16x5xf32>, vector<2x5xf32> -> vector<2x5xf32>
    %413 = vector.broadcast %411 : vector<1x5xf32> to vector<2x5xf32>
    %414 = arith.addf %412, %413 : vector<2x5xf32>
    %cst_292 = arith.constant dense<0xFF800000> : vector<2xf32>
    %415 = vector.multi_reduction <maximumf>, %414, %cst_292 [1] : vector<2x5xf32> to vector<2xf32>
    %416 = vector.shape_cast %415 : vector<2xf32> to vector<2x1xf32>
    %417 = vector.broadcast %416 : vector<2x1xf32> to vector<2x5xf32>
    %418 = arith.subf %414, %417 : vector<2x5xf32>
    %419 = math.exp %418 : vector<2x5xf32>
    %cst_293 = arith.constant dense<0.000000e+00> : vector<2xf32>
    %420 = vector.multi_reduction <add>, %419, %cst_293 [1] : vector<2x5xf32> to vector<2xf32>
    %421 = vector.shape_cast %420 : vector<2xf32> to vector<2x1xf32>
    %422 = math.log %421 : vector<2x1xf32>
    %423 = vector.broadcast %422 : vector<2x1xf32> to vector<2x5xf32>
    %424 = arith.subf %418, %423 : vector<2x5xf32>
    %c0_294 = arith.constant 0 : index
    %c0_295 = arith.constant 0 : index
    %425 = vector.load %arg2[%c0_294, %c0_295] : memref<2x5xf32, #tpu.memory_space<vmem>>, vector<2x5xf32>
    tpu.vector_store %arg2[%c0_294, %c0_295], %424 {strides = array<i32>} : memref<2x5xf32, #tpu.memory_space<vmem>>, vector<2x5xf32>,
    return
  }
}

</mosaic_0001>

<bundles_post_ra>
// kernel: resnet_forward.1
= control target key start
LH: loop header
LB: loop body
LE: loop exit
PB: predicated region body
PF: predicated region fallthrough
CT: control target
= control target key end

     0   :  { %s2353_s11 = smov 8   ;;  %s2354_s12 = smov 4   ;;  %s3393_s0 = inlined_call_operand.vmem [shape: f32[2,16,4], index: 0, kind: input, shape index: {}]   ;;  %s3394_s1 = inlined_call_operand.vmem [shape: f32[584,32], index: 1, kind: input, shape index: {}]   ;;  %s3395_s2 = inlined_call_operand.hbm [shape: f32[2,5], index: 2, kind: output, shape index: {}]  }
   0x1   :  { %v12_v0 = vld [vmem:[%s3393_s0] sm:$0xff]  ;;  %s2355_s13 = smov 12   ;;  %v13_v1 = vld [vmem:[%s3393_s0 + $0x8] sm:$0xff] }
   0x2   :  { %46 = vrot.lane.b32.xlu1 %v12_v0, %s2353_s11  ;;  %29 = vrot.lane.b32.xlu0 %v12_v0, %s2354_s12 }
   0x3   :  { %63 = vrot.lane.b32.xlu2 %v12_v0, %s2355_s13 }
   0xa   :  { %48 = vrot.lane.b32.xlu1 %v13_v1, %s2353_s11  ;;  %31 = vrot.lane.b32.xlu0 %v13_v1, %s2354_s12 }
   0xb   :  { %7 = vsyncpa [#allocation4], 0  ;;  %65 = vrot.lane.b32.xlu2 %v13_v1, %s2355_s13  ;;  %s2356_s16 = smov 16   ;;  %s2357_s17 = smov 20   ;;  %v14_v2 = vld [vmem:[%s3393_s0 + $0x10] sm:$0xff]  ;;  %v15_v3 = vld [vmem:[%s3393_s0 + $0x18] sm:$0xff] }
   0xc   :  { %s2358_s18 = smov 24   ;;  %s2359_s19 = smov 28   ;;  %v2360_v4 = vmov 0.0   ;;  %vm20_vm0 = vcmask 31744   ;;  %vm41_vm1 = vcmask 64544   ;;  %vm58_vm2 = vcmask 97344  }
   0xd   :  { %16 = vst [vmem:[#allocation2 + $0x8] sm:$0xff] %v2360_v4  ;;  %vm75_vm3 = vcmask 130144   ;;  %v155_v11 = vld [vmem:[%s3394_s1 + $0x18] sm:$0xff]  ;;  %v154_v12 = vld [vmem:[%s3394_s1 + $0x10] sm:$0xff]  ;;  %v153_v13 = vld [vmem:[%s3394_s1 + $0x8] sm:$0xff]  ;;  %vm92_vm4 = vcmask 162944  }
   0xe   :  { %17 = vst [vmem:[#allocation2 + $0x10] sm:$0xff] %v2360_v4  ;;  %181 = vmatpush.msra.mxu0 %v155_v11  ;;  %v152_v14 = vld [vmem:[%s3394_s1] sm:$0xff]  ;;  %vm109_vm5 = vcmask 195744   ;;  %vm126_vm6 = vcmask 228544   ;;  %vm143_vm7 = vcmask 261344   ;;  %vm156_vm8 = vcmask 261120  }
   0xf   :  { %21 = vst.msk [vmem:[#allocation2 + $0xb] sm:$0xff] %vm20_vm0, %v12_v0  ;;  %vm218_vm9 = vcmask 130048   ;;  %s2361_s3 = smov 112   ;;  %vm288_vm13 = vcmask 64512   ;;  %s2362_s8 = smov 32   ;;  %vm309_vm14 = vcmask 130112  }
  0x10   :  { %18 = vst [vmem:[#allocation2 + $0x28] sm:$0xff] %v2360_v4  ;;  %182 = vmatpush.msra.mxu0 %v154_v12  ;;  %vm326_vm15 = vcmask 195712   ;;  %s2363_s22 = smov 120   ;;  %s2364_s10 = smov 40  }
  0x11   :  { %19 = vst [vmem:[#allocation2 + $0x30] sm:$0xff] %v2360_v4  ;;  %s2367_s29 = smov 96   ;;  %s2368_s7 = smov 64  }
  0x12   :  { %82 = vrot.lane.b32.xlu1 %v13_v1, %s2356_s16  ;;  %80 = vrot.lane.b32.xlu0 %v12_v0, %s2356_s16  ;;  %22 = vst.msk [vmem:[#allocation2 + $0x13] sm:$0xff] %vm20_vm0, %v13_v1  ;;  %s2369_s27 = smov 80   ;;  %s2207_s14 = sshll.u32 %s3395_s2, 4  ;;  %s2208_s14 = int_to_ptr.hbm [resolvable:$true] %s2207_s14 }
  0x13   :  { %97 = vrot.lane.b32.xlu2 %v12_v0, %s2357_s17  ;;  %23 = vst.msk [vmem:[#allocation2 + $0x2b] sm:$0xff] %vm20_vm0, %v14_v2  ;;  %183 = vmatpush.msra.mxu0 %v153_v13 }
  0x14   :  { %24 = vst.msk [vmem:[#allocation2 + $0x33] sm:$0xff] %vm20_vm0, %v15_v3  ;;  %vm343_vm0 = vcmask 261312  }
  0x15   :  { %184 = vmatpush.msra.mxu0 %v152_v14 }
  0x1a   :  { %114 = vrot.lane.b32.xlu1 %v12_v0, %s2358_s18  ;;  %99 = vrot.lane.b32.xlu0 %v13_v1, %s2357_s17 }
  0x1b   :  { %116 = vrot.lane.b32.xlu2 %v13_v1, %s2358_s18 }
  0x22   :  { %133 = vrot.lane.b32.xlu1 %v13_v1, %s2359_s19  ;;  %131 = vrot.lane.b32.xlu0 %v12_v0, %s2359_s19 }
  0x23   :  { %33 = vrot.lane.b32.xlu2 %v14_v2, %s2354_s12 }
  0x2a   :  { %35 = vrot.lane.b32.xlu0 %v15_v3, %s2354_s12  ;;  %50 = vrot.lane.b32.xlu1 %v14_v2, %s2353_s11  ;;  %s2365_s12 = smov 48  }
  0x2b   :  { %52 = vrot.lane.b32.xlu2 %v15_v3, %s2353_s11 }
  0x32   :  { %67 = vrot.lane.b32.xlu0 %v14_v2, %s2355_s13  ;;  %69 = vrot.lane.b32.xlu1 %v15_v3, %s2355_s13  ;;  %s2366_s13 = smov 56  }
  0x33   :  { %84 = vrot.lane.b32.xlu2 %v14_v2, %s2356_s16 }
  0x3a   :  { %86 = vrot.lane.b32.xlu0 %v15_v3, %s2356_s16  ;;  %101 = vrot.lane.b32.xlu1 %v14_v2, %s2357_s17 }
  0x3b   :  { %103 = vrot.lane.b32.xlu2 %v15_v3, %s2357_s17 }
  0x42   :  { %118 = vrot.lane.b32.xlu0 %v14_v2, %s2358_s18  ;;  %120 = vrot.lane.b32.xlu1 %v15_v3, %s2358_s18 }
  0x43   :  { %135 = vrot.lane.b32.xlu2 %v14_v2, %s2359_s19 }
  0x4a   :  { %137 = vrot.lane.b32.xlu0 %v15_v3, %s2359_s19 }
  0x5d   :  { %v64_v5 = vpop.permute.xlu2 %63 }
  0x65   :  { %v66_v6 = vpop.permute.xlu2 %65 }
  0x6d   :  { %v98_v7 = vpop.permute.xlu2 %97 }
  0x74   :  { %v47_v8 = vpop.permute.xlu1 %46  ;;  %v30_v9 = vpop.permute.xlu0 %29 }
  0x75   :  { %42 = vst.msk [vmem:[#allocation2 + $0xa] sm:$0xff] %vm41_vm1, %v30_v9  ;;  %v117_v10 = vpop.permute.xlu2 %116 }
  0x76   :  { %59 = vst.msk [vmem:[#allocation2 + $0x9] sm:$0xff] %vm58_vm2, %v47_v8 }
  0x77   :  { %76 = vst.msk [vmem:[#allocation2 + $0x8] sm:$0xff] %vm75_vm3, %v64_v5 }
  0x7c   :  { %v49_v15 = vpop.permute.xlu1 %48  ;;  %v32_v16 = vpop.permute.xlu0 %31 }
  0x7d   :  { %43 = vst.msk [vmem:[#allocation2 + $0x12] sm:$0xff] %vm41_vm1, %v32_v16  ;;  %v34_v17 = vpop.permute.xlu2 %33 }
  0x7e   :  { %60 = vst.msk [vmem:[#allocation2 + $0x11] sm:$0xff] %vm58_vm2, %v49_v15 }
  0x7f   :  { %77 = vst.msk [vmem:[#allocation2 + $0x10] sm:$0xff] %vm75_vm3, %v66_v6 }
  0x80   :  { %44 = vst.msk [vmem:[#allocation2 + $0x2a] sm:$0xff] %vm41_vm1, %v34_v17 }
  0x84   :  { %v83_v18 = vpop.permute.xlu1 %82  ;;  %v81_v19 = vpop.permute.xlu0 %80 }
  0x85   :  { %94 = vst.msk [vmem:[#allocation2 + $0xf] sm:$0xff] %vm92_vm4, %v83_v18  ;;  %v53_v24 = vpop.permute.xlu2 %52 }
  0x86   :  { %93 = vst.msk [vmem:[#allocation2 + $0x7] sm:$0xff] %vm92_vm4, %v81_v19 }
  0x87   :  { %110 = vst.msk [vmem:[#allocation2 + $0x6] sm:$0xff] %vm109_vm5, %v98_v7 }
  0x8c   :  { %v115_v20 = vpop.permute.xlu1 %114  ;;  %v100_v21 = vpop.permute.xlu0 %99 }
  0x8d   :  { %127 = vst.msk [vmem:[#allocation2 + $0x5] sm:$0xff] %vm126_vm6, %v115_v20  ;;  %v85_v28 = vpop.permute.xlu2 %84 }
  0x8e   :  { %111 = vst.msk [vmem:[#allocation2 + $0xe] sm:$0xff] %vm109_vm5, %v100_v21 }
  0x8f   :  { %128 = vst.msk [vmem:[#allocation2 + $0xd] sm:$0xff] %vm126_vm6, %v117_v10 }
  0x94   :  { %v134_v22 = vpop.permute.xlu1 %133  ;;  %v132_v23 = vpop.permute.xlu0 %131 }
  0x95   :  { %145 = vst.msk [vmem:[#allocation2 + $0xc] sm:$0xff] %vm143_vm7, %v134_v22  ;;  %v104_v32 = vpop.permute.xlu2 %103 }
  0x96   :  { %144 = vst.msk [vmem:[#allocation2 + $0x4] sm:$0xff] %vm143_vm7, %v132_v23 }
  0x9c   :  { %v36_v25 = vpop.permute.xlu0 %35  ;;  %v51_v26 = vpop.permute.xlu1 %50  ;;  %v149_v29 = vld [vmem:[#allocation2 + $0x10] sm:$0xff] }
  0x9d   :  { %45 = vst.msk [vmem:[#allocation2 + $0x32] sm:$0xff] %vm41_vm1, %v36_v25  ;;  %v148_v27 = vld [vmem:[#allocation2 + $0x8] sm:$0xff]  ;;  %v136_v35 = vpop.permute.xlu2 %135  ;;  %v2280_v25 = vld [vmem:[%s3394_s1 + $0x230] ss:$0 sm:$0xff]  ;;  %vm360_vm1 = vcmask 326912  }
  0x9e   :  { %2216 = vmatmul.msk.f32.vlgmr.msra.gmra.mxu0 %vm156_vm8, %v148_v27  ;;  %284 = vst [vmem:[#allocation2 + $0x8] sm:$0xff] %v2360_v4  ;;  %v2281_v27 = vld [vmem:[%s3394_s1 + $0x231] ss:$0 sm:$0xff] }
  0x9f   :  { %61 = vst.msk [vmem:[#allocation2 + $0x29] sm:$0xff] %vm58_vm2, %v51_v26 }
  0xa0   :  { %62 = vst.msk [vmem:[#allocation2 + $0x31] sm:$0xff] %vm58_vm2, %v53_v24  ;;  %vm374_vm2 = vcmask 326656  }
  0xa1   :  { %285 = vst [vmem:[#allocation2 + $0x10] sm:$0xff] %v2360_v4 }
  0xa4   :  { %v68_v30 = vpop.permute.xlu0 %67  ;;  %v70_v31 = vpop.permute.xlu1 %69 }
  0xa5   :  { %78 = vst.msk [vmem:[#allocation2 + $0x28] sm:$0xff] %vm75_vm3, %v68_v30 }
  0xa6   :  { %2217 = vmatmul.msk.f32.gmra.mxu0 %vm156_vm8, %v149_v29  ;;  %79 = vst.msk [vmem:[#allocation2 + $0x30] sm:$0xff] %vm75_vm3, %v70_v31 }
  0xa7   :  { %95 = vst.msk [vmem:[#allocation2 + $0x27] sm:$0xff] %vm92_vm4, %v85_v28 }
  0xac   :  { %v87_v33 = vpop.permute.xlu0 %86  ;;  %v102_v34 = vpop.permute.xlu1 %101 }
  0xad   :  { %96 = vst.msk [vmem:[#allocation2 + $0x2f] sm:$0xff] %vm92_vm4, %v87_v33 }
  0xae   :  { %112 = vst.msk [vmem:[#allocation2 + $0x26] sm:$0xff] %vm109_vm5, %v102_v34 }
  0xaf   :  { %113 = vst.msk [vmem:[#allocation2 + $0x2e] sm:$0xff] %vm109_vm5, %v104_v32 }
  0xb4   :  { %v119_v36 = vpop.permute.xlu0 %118  ;;  %v121_v37 = vpop.permute.xlu1 %120 }
  0xb5   :  { %129 = vst.msk [vmem:[#allocation2 + $0x25] sm:$0xff] %vm126_vm6, %v119_v36 }
  0xb6   :  { %130 = vst.msk [vmem:[#allocation2 + $0x2d] sm:$0xff] %vm126_vm6, %v121_v37  ;;  %vm552_vm6 = vcmask 195584  }
  0xb7   :  { %146 = vst.msk [vmem:[#allocation2 + $0x24] sm:$0xff] %vm143_vm7, %v136_v35 }
  0xbc   :  { %v138_v38 = vpop.permute.xlu0 %137 }
  0xbd   :  { %147 = vst.msk [vmem:[#allocation2 + $0x2c] sm:$0xff] %vm143_vm7, %v138_v38 }
  0xc4   :  { %v150_v39 = vld [vmem:[#allocation2 + $0x28] sm:$0xff]  ;;  %v151_v40 = vld [vmem:[#allocation2 + $0x30] sm:$0xff] }
  0xc5   :  { %2218 = vmatmul.msk.f32.gmra.mxu0 %vm156_vm8, %v150_v39  ;;  %286 = vst [vmem:[#allocation2 + $0x28] sm:$0xff] %v2360_v4 }
  0xc6   :  { %287 = vst [vmem:[#allocation2 + $0x30] sm:$0xff] %v2360_v4 }
  0xcd   :  { %2219 = vmatmul.msk.f32.gmra.mxu0 %vm156_vm8, %v151_v40 }
 0x11b   :  { %v2463_v41 = vpop.f32.mrf.mxu0 }
 0x11c   :  { %v198_v42 = vmul.f32 %v2463_v41, %v2463_v41 }
 0x11e   :  { %206 = vrot.lane.b32.xlu1 %v198_v42, %s2356_s16 }
 0x123   :  { %v189_v43 = vpop.f32.mrf.mxu0 }
 0x124   :  { %v199_v44 = vmul.f32 %v189_v43, %v189_v43 }
 0x126   :  { %208 = vrot.lane.b32.xlu2 %v199_v44, %s2356_s16 }
 0x142   :  { %v192_v45 = vpop.f32.mrf.mxu0 }
 0x143   :  { %v200_v46 = vmul.f32 %v192_v45, %v192_v45 }
 0x145   :  { %210 = vrot.lane.b32.xlu0 %v200_v46, %s2356_s16  ;;  %v372_v46 = vld [vmem:[%s3394_s1 + $0x38] sm:$0xff] }
 0x14a   :  { %v195_v47 = vpop.f32.mrf.mxu0 }
 0x14b   :  { %v201_v48 = vmul.f32 %v195_v47, %v195_v47 }
 0x14d   :  { %212 = vrot.lane.b32.xlu1 %v201_v48, %s2356_s16  ;;  %v370_v48 = vld [vmem:[%s3394_s1 + $0x28] sm:$0xff] }
 0x180   :  { %v209_v50 = vpop.permute.xlu2 %208 }
 0x181   :  { %v220_v53 = vsel %vm218_vm9, %v189_v43, %v209_v50 }
 0x182   :  { %v224_v56 = vsel %vm156_vm8, %v220_v53, 0.0 }
 0x190   :  { %v207_v49 = vpop.permute.xlu1 %206 }
 0x191   :  { %v219_v52 = vsel %vm218_vm9, %v2463_v41, %v207_v49  ;;  %v369_v49 = vld [vmem:[%s3394_s1 + $0x20] sm:$0xff] }
 0x192   :  { %v223_v55 = vsel %vm156_vm8, %v219_v52, 0.0 }
 0x193   :  { %v225_v58 = vadd.f32 %v224_v56, %v223_v55 }
 0x1b7   :  { %v211_v51 = vpop.permute.xlu0 %210 }
 0x1b8   :  { %v221_v54 = vsel %vm218_vm9, %v192_v45, %v211_v51 }
 0x1b9   :  { %v226_v57 = vsel %vm156_vm8, %v221_v54, 0.0 }
 0x1ba   :  { %v227_v60 = vadd.f32 %v226_v57, %v225_v58 }
 0x1bf   :  { %v213_v59 = vpop.permute.xlu1 %212 }
 0x1c0   :  { %v222_v61 = vsel %vm218_vm9, %v195_v47, %v213_v59 }
 0x1c1   :  { %v228_v62 = vsel %vm156_vm8, %v222_v61, 0.0 }
 0x1c2   :  { %v229_v63 = vadd.f32 %v228_v62, %v227_v60 }
 0x1c4   :  { %v230_v0 = vrot.slane %v229_v63, 4 }
 0x1c6   :  { %v231_v1 = vadd.f32 %v230_v0, %v229_v63 }
 0x1c8   :  { %v232_v2 = vrot.slane %v231_v1, 2 }
 0x1ca   :  { %v233_v3 = vadd.f32 %v232_v2, %v231_v1 }
 0x1cc   :  { %v234_v5 = vrot.slane %v233_v3, 1 }
 0x1ce   :  { %v235_v6 = vadd.f32 %v234_v5, %v233_v3 }
 0x1d0   :  { %v236_v7 = vmul.f32 0.03125, %v235_v6 }
 0x1d2   :  { %v237_v8 = vmul.f32 %v236_v7, %v236_v7  ;;  %v246_v21 = vsub.f32 %v2463_v41, %v236_v7  ;;  %v247_v22 = vsub.f32 %v189_v43, %v236_v7  ;;  %v248_v23 = vsub.f32 %v192_v45, %v236_v7  ;;  %v373_v45 = vld [vmem:[%s3394_s1 + $0x40] sm:$0xff] }
 0x1d3   :  { %v249_v24 = vsub.f32 %v195_v47, %v236_v7  ;;  %398 = vmatpush.msra.mxu1 %v373_v45  ;;  %v371_v47 = vld [vmem:[%s3394_s1 + $0x30] sm:$0xff] }
 0x1d4   :  { %239 = vrot.lane.b32.xlu2 %v237_v8, %s2356_s16 }
 0x1d5   :  { %399 = vmatpush.msra.mxu1 %v372_v46 }
 0x1d7   :  { %400 = vmatpush.msra.mxu1 %v371_v47 }
 0x1d9   :  { %401 = vmatpush.msra.mxu1 %v370_v48 }
 0x1db   :  { %402 = vmatpush.msra.mxu1 %v369_v49 }
 0x22e   :  { %v240_v9 = vpop.permute.xlu2 %239 }
 0x22f   :  { %v242_v10 = vsub.f32 %v236_v7, %v240_v9 }
 0x231   :  { %v243_v11 = vmax.f32 %v242_v10, 0.0 }
 0x233   :  { %v250_v12 = vadd.f32 1e-05, %v243_v11 }
 0x235   :  { %2301 = vrsqrt.f32 %v250_v12  ;;  %vm257_vm11 = vweird.f32 %v250_v12 }
 0x23b   :  { %v2302_v13 = vpop.eup %2301 }
 0x23c   :  { %v252_v14 = vmul.f32 %v2302_v13, %v250_v12  ;;  %vm258_vm10 = vweird.f32 %v2302_v13 }
 0x23d   :  { %vm259_vm12 = vmor %vm257_vm11, %vm258_vm10 }
 0x23e   :  { %v253_v15 = vmul.f32 %v2302_v13, %v252_v14 }
 0x240   :  { %v254_v16 = vmul.f32 0.5, %v253_v15 }
 0x242   :  { %v255_v17 = vsub.f32 1.5, %v254_v16 }
 0x244   :  { %v256_v18 = vmul.f32 %v2302_v13, %v255_v17 }
 0x246   :  { %v260_v19 = vsel %vm259_vm12, %v2302_v13, %v256_v18  ;;  %vm787_vm12 = vcmask 392512  }
 0x247   :  { %v261_v20 = vperm.slane %v260_v19, 0 }
 0x249   :  { %263 = vrot.lane.b32.xlu0 %v261_v20, %s2361_s3 }
 0x2bb   :  { %v264_v26 = vpop.permute.xlu0 %263 }
 0x2bc   :  { %v266_v28 = vmul.f32 %v264_v26, %v246_v21  ;;  %v267_v29 = vmul.f32 %v264_v26, %v247_v22  ;;  %v268_v30 = vmul.f32 %v264_v26, %v248_v23  ;;  %v269_v31 = vmul.f32 %v264_v26, %v249_v24 }
 0x2be   :  { %v271_v32 = vmul.f32 %v2280_v25, %v266_v28  ;;  %v272_v33 = vmul.f32 %v2280_v25, %v267_v29  ;;  %v273_v34 = vmul.f32 %v2280_v25, %v268_v30  ;;  %v274_v35 = vmul.f32 %v2280_v25, %v269_v31 }
 0x2c0   :  { %v2489_v36 = vadd.f32 %v2281_v27, %v271_v32  ;;  %v2491_v37 = vadd.f32 %v2281_v27, %v272_v33  ;;  %v2493_v38 = vadd.f32 %v2281_v27, %v273_v34  ;;  %v2495_v39 = vadd.f32 %v2281_v27, %v274_v35 }
 0x2c2   :  { %v281_v40 = vmax.f32 %v2491_v37, 0.0  ;;  %v280_v41 = vmax.f32 %v2489_v36, 0.0  ;;  %v282_v42 = vmax.f32 %v2493_v38, 0.0  ;;  %v283_v43 = vmax.f32 %v2495_v39, 0.0 }
 0x2c4   :  { %299 = vrot.lane.b32.xlu2 %v281_v40, %s2353_s11  ;;  %314 = vrot.lane.b32.xlu0 %v280_v41, %s2356_s16  ;;  %289 = vst.msk [vmem:[#allocation2 + $0xa] sm:$0xff] %vm288_vm13, %v280_v41 }
 0x2c5   :  { %297 = vrot.lane.b32.xlu1 %v280_v41, %s2353_s11  ;;  %290 = vst.msk [vmem:[#allocation2 + $0x12] sm:$0xff] %vm288_vm13, %v281_v40 }
 0x2c6   :  { %291 = vst.msk [vmem:[#allocation2 + $0x2a] sm:$0xff] %vm288_vm13, %v282_v42 }
 0x2c7   :  { %292 = vst.msk [vmem:[#allocation2 + $0x32] sm:$0xff] %vm288_vm13, %v283_v43 }
 0x2cc   :  { %331 = vrot.lane.b32.xlu2 %v280_v41, %s2358_s18  ;;  %333 = vrot.lane.b32.xlu0 %v281_v40, %s2358_s18 }
 0x2cd   :  { %316 = vrot.lane.b32.xlu1 %v281_v40, %s2356_s16 }
 0x2d4   :  { %350 = vrot.lane.b32.xlu2 %v281_v40, %s2362_s8  ;;  %301 = vrot.lane.b32.xlu0 %v282_v42, %s2353_s11 }
 0x2d5   :  { %348 = vrot.lane.b32.xlu1 %v280_v41, %s2362_s8 }
 0x2dc   :  { %318 = vrot.lane.b32.xlu2 %v282_v42, %s2356_s16  ;;  %320 = vrot.lane.b32.xlu0 %v283_v43, %s2356_s16 }
 0x2dd   :  { %303 = vrot.lane.b32.xlu1 %v283_v43, %s2353_s11 }
 0x2e4   :  { %337 = vrot.lane.b32.xlu2 %v283_v43, %s2358_s18  ;;  %352 = vrot.lane.b32.xlu0 %v282_v42, %s2362_s8 }
 0x2e5   :  { %335 = vrot.lane.b32.xlu1 %v282_v42, %s2358_s18 }
 0x2ed   :  { %354 = vrot.lane.b32.xlu1 %v283_v43, %s2362_s8 }
 0x31e   :  { %v300_v44 = vpop.permute.xlu2 %299 }
 0x31f   :  { %311 = vst.msk [vmem:[#allocation2 + $0x11] sm:$0xff] %vm309_vm14, %v300_v44 }
 0x326   :  { %v332_v50 = vpop.permute.xlu2 %331 }
 0x32e   :  { %v351_v53 = vpop.permute.xlu2 %350 }
 0x336   :  { %v315_v51 = vpop.permute.xlu0 %314  ;;  %v319_v57 = vpop.permute.xlu2 %318 }
 0x337   :  { %v298_v52 = vpop.permute.xlu1 %297 }
 0x338   :  { %310 = vst.msk [vmem:[#allocation2 + $0x9] sm:$0xff] %vm309_vm14, %v298_v52 }
 0x339   :  { %327 = vst.msk [vmem:[#allocation2 + $0x8] sm:$0xff] %vm326_vm15, %v315_v51 }
 0x33a   :  { %344 = vst.msk [vmem:[#allocation2 + $0x7] sm:$0xff] %vm343_vm0, %v332_v50 }
 0x33e   :  { %v334_v54 = vpop.permute.xlu0 %333  ;;  %v338_v63 = vpop.permute.xlu2 %337 }
 0x33f   :  { %v317_v55 = vpop.permute.xlu1 %316 }
 0x340   :  { %328 = vst.msk [vmem:[#allocation2 + $0x10] sm:$0xff] %vm326_vm15, %v317_v55 }
 0x341   :  { %345 = vst.msk [vmem:[#allocation2 + $0xf] sm:$0xff] %vm343_vm0, %v334_v54  ;;  %v2282_v54 = vld [vmem:[%s3394_s1 + $0x232] ss:$0 sm:$0xff] }
 0x342   :  { %362 = vst.msk [vmem:[#allocation2 + $0xe] sm:$0xff] %vm360_vm1, %v351_v53 }
 0x346   :  { %v302_v56 = vpop.permute.xlu0 %301 }
 0x347   :  { %312 = vst.msk [vmem:[#allocation2 + $0x29] sm:$0xff] %vm309_vm14, %v302_v56  ;;  %v349_v58 = vpop.permute.xlu1 %348 }
 0x348   :  { %329 = vst.msk [vmem:[#allocation2 + $0x28] sm:$0xff] %vm326_vm15, %v319_v57 }
 0x349   :  { %361 = vst.msk [vmem:[#allocation2 + $0x6] sm:$0xff] %vm360_vm1, %v349_v58  ;;  %v366_v59 = vld [vmem:[#allocation2 + $0x10] sm:$0xff] }
 0x34a   :  { %502 = vst [vmem:[#allocation2 + $0x10] sm:$0xff] %v2360_v4 }
 0x34e   :  { %v321_v60 = vpop.permute.xlu0 %320 }
 0x34f   :  { %v304_v61 = vpop.permute.xlu1 %303 }
 0x350   :  { %313 = vst.msk [vmem:[#allocation2 + $0x31] sm:$0xff] %vm309_vm14, %v304_v61  ;;  %v365_v62 = vld [vmem:[#allocation2 + $0x8] sm:$0xff] }
 0x351   :  { %330 = vst.msk [vmem:[#allocation2 + $0x30] sm:$0xff] %vm326_vm15, %v321_v60  ;;  %2220 = vmatmul.msk.f32.vlgmr.msra.gmra.mxu1 %vm374_vm2, %v365_v62  ;;  %v2283_v60 = vld [vmem:[%s3394_s1 + $0x233] ss:$0 sm:$0xff] }
 0x352   :  { %347 = vst.msk [vmem:[#allocation2 + $0x2f] sm:$0xff] %vm343_vm0, %v338_v63 }
 0x353   :  { %501 = vst [vmem:[#allocation2 + $0x8] sm:$0xff] %v2360_v4 }
 0x356   :  { %v353_v0 = vpop.permute.xlu0 %352 }
 0x357   :  { %v336_v1 = vpop.permute.xlu1 %335 }
 0x358   :  { %346 = vst.msk [vmem:[#allocation2 + $0x27] sm:$0xff] %vm343_vm0, %v336_v1 }
 0x359   :  { %363 = vst.msk [vmem:[#allocation2 + $0x26] sm:$0xff] %vm360_vm1, %v353_v0  ;;  %2221 = vmatmul.msk.f32.gmra.mxu1 %vm374_vm2, %v366_v59 }
 0x35f   :  { %v355_v2 = vpop.permute.xlu1 %354 }
 0x360   :  { %364 = vst.msk [vmem:[#allocation2 + $0x2e] sm:$0xff] %vm360_vm1, %v355_v2 }
 0x367   :  { %v367_v3 = vld [vmem:[#allocation2 + $0x28] sm:$0xff]  ;;  %v368_v5 = vld [vmem:[#allocation2 + $0x30] sm:$0xff] }
 0x368   :  { %2222 = vmatmul.msk.f32.gmra.mxu1 %vm374_vm2, %v367_v3  ;;  %503 = vst [vmem:[#allocation2 + $0x28] sm:$0xff] %v2360_v4 }
 0x369   :  { %504 = vst [vmem:[#allocation2 + $0x30] sm:$0xff] %v2360_v4 }
 0x370   :  { %2223 = vmatmul.msk.f32.gmra.mxu1 %vm374_vm2, %v368_v5  ;;  %vm821_vm2 = vcmask 523712  }
 0x3ce   :  { %v2560_v6 = vpop.f32.mrf.mxu1 }
 0x3cf   :  { %v416_v7 = vmul.f32 %v2560_v6, %v2560_v6 }
 0x3d1   :  { %424 = vrot.lane.b32.xlu2 %v416_v7, %s2353_s11 }
 0x3d6   :  { %v407_v8 = vpop.f32.mrf.mxu1 }
 0x3d7   :  { %v417_v9 = vmul.f32 %v407_v8, %v407_v8 }
 0x3d9   :  { %426 = vrot.lane.b32.xlu0 %v417_v9, %s2353_s11 }
 0x3e5   :  { %v410_v10 = vpop.f32.mrf.mxu1 }
 0x3e6   :  { %v418_v11 = vmul.f32 %v410_v10, %v410_v10 }
 0x3e8   :  { %428 = vrot.lane.b32.xlu1 %v418_v11, %s2353_s11 }
 0x3ed   :  { %v413_v12 = vpop.f32.mrf.mxu1 }
 0x3ee   :  { %v419_v13 = vmul.f32 %v413_v12, %v413_v12 }
 0x3f0   :  { %430 = vrot.lane.b32.xlu2 %v419_v13, %s2353_s11  ;;  %v551_v13 = vld [vmem:[%s3394_s1 + $0x58] sm:$0xff] }
 0x3f1   :  { %578 = vmatpush.msra.mxu2 %v551_v13 }
 0x42b   :  { %v425_v14 = vpop.permute.xlu2 %424 }
 0x42c   :  { %v436_v17 = vsel %vm288_vm13, %v2560_v6, %v425_v14  ;;  %v550_v14 = vld [vmem:[%s3394_s1 + $0x50] sm:$0xff] }
 0x42d   :  { %v440_v20 = vsel %vm218_vm9, %v436_v17, 0.0  ;;  %579 = vmatpush.msra.mxu2 %v550_v14  ;;  %v2284_v14 = vld [vmem:[%s3394_s1 + $0x234] ss:$0 sm:$0xff] }
 0x44a   :  { %v431_v19 = vpop.permute.xlu2 %430 }
 0x44b   :  { %v427_v15 = vpop.permute.xlu0 %426  ;;  %v439_v23 = vsel %vm288_vm13, %v413_v12, %v431_v19 }
 0x44c   :  { %v437_v16 = vsel %vm288_vm13, %v407_v8, %v427_v15  ;;  %v445_v27 = vsel %vm218_vm9, %v439_v23, 0.0 }
 0x44d   :  { %v441_v18 = vsel %vm218_vm9, %v437_v16, 0.0  ;;  %v549_v16 = vld [vmem:[%s3394_s1 + $0x48] sm:$0xff] }
 0x44e   :  { %v442_v22 = vadd.f32 %v441_v18, %v440_v20  ;;  %580 = vmatpush.msra.mxu2 %v549_v16  ;;  %v2285_v16 = vld [vmem:[%s3394_s1 + $0x235] ss:$0 sm:$0xff] }
 0x45a   :  { %v429_v21 = vpop.permute.xlu1 %428 }
 0x45b   :  { %v438_v24 = vsel %vm288_vm13, %v410_v10, %v429_v21 }
 0x45c   :  { %v443_v25 = vsel %vm218_vm9, %v438_v24, 0.0 }
 0x45d   :  { %v444_v26 = vadd.f32 %v443_v25, %v442_v22 }
 0x45f   :  { %v446_v28 = vadd.f32 %v445_v27, %v444_v26 }
 0x461   :  { %v447_v29 = vrot.slane %v446_v28, 4 }
 0x463   :  { %v448_v30 = vadd.f32 %v447_v29, %v446_v28 }
 0x465   :  { %v449_v31 = vrot.slane %v448_v30, 2 }
 0x467   :  { %v450_v32 = vadd.f32 %v449_v31, %v448_v30 }
 0x469   :  { %v451_v33 = vrot.slane %v450_v32, 1 }
 0x46b   :  { %v452_v34 = vadd.f32 %v451_v33, %v450_v32 }
 0x46d   :  { %v453_v35 = vmul.f32 0.03125, %v452_v34 }
 0x46f   :  { %v454_v40 = vmul.f32 %v453_v35, %v453_v35  ;;  %v464_v53 = vsub.f32 %v407_v8, %v453_v35  ;;  %v463_v55 = vsub.f32 %v2560_v6, %v453_v35  ;;  %v465_v56 = vsub.f32 %v410_v10, %v453_v35 }
 0x470   :  { %v466_v57 = vsub.f32 %v413_v12, %v453_v35 }
 0x471   :  { %456 = vrot.lane.b32.xlu0 %v454_v40, %s2353_s11 }
 0x4e3   :  { %v457_v41 = vpop.permute.xlu0 %456 }
 0x4e4   :  { %v459_v42 = vsub.f32 %v453_v35, %v457_v41 }
 0x4e6   :  { %v460_v43 = vmax.f32 %v459_v42, 0.0 }
 0x4e8   :  { %v467_v44 = vadd.f32 1e-05, %v460_v43 }
 0x4ea   :  { %2303 = vrsqrt.f32 %v467_v44  ;;  %vm474_vm4 = vweird.f32 %v467_v44 }
 0x4f0   :  { %v2304_v45 = vpop.eup %2303 }
 0x4f1   :  { %v469_v46 = vmul.f32 %v2304_v45, %v467_v44  ;;  %vm475_vm3 = vweird.f32 %v2304_v45 }
 0x4f2   :  { %vm476_vm5 = vmor %vm474_vm4, %vm475_vm3  ;;  %vm838_vm3 = vcmask 523264   ;;  %vm1006_vm4 = vcmask 392448  }
 0x4f3   :  { %v470_v47 = vmul.f32 %v2304_v45, %v469_v46 }
 0x4f5   :  { %v471_v48 = vmul.f32 0.5, %v470_v47 }
 0x4f7   :  { %v472_v49 = vsub.f32 1.5, %v471_v48 }
 0x4f9   :  { %v473_v50 = vmul.f32 %v2304_v45, %v472_v49 }
 0x4fb   :  { %v477_v51 = vsel %vm476_vm5, %v2304_v45, %v473_v50  ;;  %vm1023_vm5 = vcmask 523648  }
 0x4fc   :  { %v478_v52 = vperm.slane %v477_v51, 0 }
 0x4fe   :  { %480 = vrot.lane.b32.xlu1 %v478_v52, %s2363_s22 }
 0x570   :  { %v481_v58 = vpop.permute.xlu1 %480 }
 0x571   :  { %v484_v59 = vmul.f32 %v481_v58, %v464_v53  ;;  %v483_v61 = vmul.f32 %v481_v58, %v463_v55  ;;  %v485_v62 = vmul.f32 %v481_v58, %v465_v56  ;;  %v486_v63 = vmul.f32 %v481_v58, %v466_v57 }
 0x573   :  { %v489_v0 = vmul.f32 %v2282_v54, %v484_v59  ;;  %v488_v1 = vmul.f32 %v2282_v54, %v483_v61  ;;  %v490_v2 = vmul.f32 %v2282_v54, %v485_v62  ;;  %v491_v3 = vmul.f32 %v2282_v54, %v486_v63 }
 0x575   :  { %v494_v5 = vadd.f32 %v2283_v60, %v489_v0  ;;  %v493_v7 = vadd.f32 %v2283_v60, %v488_v1  ;;  %v495_v8 = vadd.f32 %v2283_v60, %v490_v2  ;;  %v496_v9 = vadd.f32 %v2283_v60, %v491_v3 }
 0x577   :  { %v498_v6 = vmax.f32 %v494_v5, 0.0  ;;  %v497_v10 = vmax.f32 %v493_v7, 0.0  ;;  %v499_v11 = vmax.f32 %v495_v8, 0.0  ;;  %v500_v12 = vmax.f32 %v496_v9, 0.0 }
 0x579   :  { %515 = vrot.lane.b32.xlu0 %v498_v6, %s2353_s11  ;;  %506 = vst.msk [vmem:[#allocation2 + $0x11] sm:$0xff] %vm288_vm13, %v498_v6  ;;  %529 = vrot.lane.b32.xlu1 %v497_v10, %s2356_s16 }
 0x57a   :  { %505 = vst.msk [vmem:[#allocation2 + $0x9] sm:$0xff] %vm288_vm13, %v497_v10  ;;  %513 = vrot.lane.b32.xlu2 %v497_v10, %s2353_s11 }
 0x57b   :  { %507 = vst.msk [vmem:[#allocation2 + $0x29] sm:$0xff] %vm288_vm13, %v499_v11 }
 0x57c   :  { %508 = vst.msk [vmem:[#allocation2 + $0x31] sm:$0xff] %vm288_vm13, %v500_v12 }
 0x581   :  { %517 = vrot.lane.b32.xlu0 %v499_v11, %s2353_s11  ;;  %519 = vrot.lane.b32.xlu1 %v500_v12, %s2353_s11 }
 0x582   :  { %531 = vrot.lane.b32.xlu2 %v498_v6, %s2356_s16 }
 0x589   :  { %535 = vrot.lane.b32.xlu0 %v500_v12, %s2356_s16 }
 0x58a   :  { %533 = vrot.lane.b32.xlu2 %v499_v11, %s2356_s16 }
 0x5d4   :  { %v514_v15 = vpop.permute.xlu2 %513 }
 0x5d5   :  { %525 = vst.msk [vmem:[#allocation2 + $0x8] sm:$0xff] %vm309_vm14, %v514_v15 }
 0x5dc   :  { %v532_v17 = vpop.permute.xlu2 %531 }
 0x5e4   :  { %v534_v22 = vpop.permute.xlu2 %533 }
 0x5eb   :  { %v516_v18 = vpop.permute.xlu0 %515  ;;  %v530_v19 = vpop.permute.xlu1 %529 }
 0x5ec   :  { %526 = vst.msk [vmem:[#allocation2 + $0x10] sm:$0xff] %vm309_vm14, %v516_v18 }
 0x5ed   :  { %542 = vst.msk [vmem:[#allocation2 + $0xf] sm:$0xff] %vm326_vm15, %v532_v17 }
 0x5ee   :  { %541 = vst.msk [vmem:[#allocation2 + $0x7] sm:$0xff] %vm326_vm15, %v530_v19 }
 0x5f3   :  { %v518_v20 = vpop.permute.xlu0 %517  ;;  %v520_v21 = vpop.permute.xlu1 %519 }
 0x5f4   :  { %527 = vst.msk [vmem:[#allocation2 + $0x28] sm:$0xff] %vm309_vm14, %v518_v20  ;;  %v546_v24 = vld [vmem:[#allocation2 + $0x10] sm:$0xff] }
 0x5f5   :  { %543 = vst.msk [vmem:[#allocation2 + $0x27] sm:$0xff] %vm326_vm15, %v534_v22  ;;  %v545_v23 = vld [vmem:[#allocation2 + $0x8] sm:$0xff] }
 0x5f6   :  { %528 = vst.msk [vmem:[#allocation2 + $0x30] sm:$0xff] %vm309_vm14, %v520_v21  ;;  %2224 = vmatmul.msk.f32.vlgmr.msra.gmra.mxu2 %vm552_vm6, %v545_v23 }
 0x5f7   :  { %699 = vst [vmem:[#allocation2 + $0x8] sm:$0xff] %v2360_v4 }
 0x5f8   :  { %700 = vst [vmem:[#allocation2 + $0x10] sm:$0xff] %v2360_v4 }
 0x5fb   :  { %v536_v25 = vpop.permute.xlu0 %535 }
 0x5fc   :  { %544 = vst.msk [vmem:[#allocation2 + $0x2f] sm:$0xff] %vm326_vm15, %v536_v25 }
 0x5fe   :  { %2225 = vmatmul.msk.f32.gmra.mxu2 %vm552_vm6, %v546_v24 }
 0x603   :  { %v547_v26 = vld [vmem:[#allocation2 + $0x28] sm:$0xff]  ;;  %v548_v27 = vld [vmem:[#allocation2 + $0x30] sm:$0xff] }
 0x604   :  { %701 = vst [vmem:[#allocation2 + $0x28] sm:$0xff] %v2360_v4 }
 0x605   :  { %702 = vst [vmem:[#allocation2 + $0x30] sm:$0xff] %v2360_v4 }
 0x606   :  { %2226 = vmatmul.msk.f32.gmra.mxu2 %vm552_vm6, %v547_v26 }
 0x60e   :  { %2227 = vmatmul.msk.f32.gmra.mxu2 %vm552_vm6, %v548_v27  ;;  %vm1040_vm6 = vcmask 654848  }
 0x679   :  { %v2623_v28 = vpop.f32.mrf.mxu2 }
 0x67a   :  { %v594_v29 = vmul.f32 %v2623_v28, %v2623_v28 }
 0x67c   :  { %602 = vrot.lane.b32.xlu1 %v594_v29, %s2353_s11 }
 0x681   :  { %v2628_v30 = vpop.f32.mrf.mxu2 }
 0x682   :  { %v595_v31 = vmul.f32 %v2628_v30, %v2628_v30 }
 0x684   :  { %604 = vrot.lane.b32.xlu2 %v595_v31, %s2353_s11 }
 0x689   :  { %v2633_v32 = vpop.f32.mrf.mxu2 }
 0x68a   :  { %v596_v33 = vmul.f32 %v2633_v32, %v2633_v32 }
 0x68c   :  { %606 = vrot.lane.b32.xlu0 %v596_v33, %s2353_s11 }
 0x691   :  { %v591_v34 = vpop.f32.mrf.mxu2 }
 0x692   :  { %v597_v35 = vmul.f32 %v591_v34, %v591_v34 }
 0x694   :  { %683 = vrot.lane.b32.xlu0 %v2493_v38, %s2363_s22  ;;  %608 = vrot.lane.b32.xlu1 %v597_v35, %s2353_s11 }
 0x69c   :  { %679 = vrot.lane.b32.xlu1 %v2489_v36, %s2363_s22 }
 0x6a4   :  { %685 = vrot.lane.b32.xlu1 %v2495_v39, %s2363_s22 }
 0x6de   :  { %v605_v41 = vpop.permute.xlu2 %604 }
 0x6df   :  { %v615_v44 = vsel %vm288_vm13, %v2628_v30, %v605_v41 }
 0x6e0   :  { %v619_v46 = vsel %vm218_vm9, %v615_v44, 0.0 }
 0x6ee   :  { %v603_v40 = vpop.permute.xlu1 %602 }
 0x6ef   :  { %v614_v43 = vsel %vm288_vm13, %v2623_v28, %v603_v40 }
 0x6f0   :  { %v618_v45 = vsel %vm218_vm9, %v614_v43, 0.0 }
 0x6f1   :  { %v620_v47 = vadd.f32 %v619_v46, %v618_v45  ;;  %v837_v45 = vld [vmem:[%s3394_s1 + $0x98] sm:$0xff]  ;;  %v836_v46 = vld [vmem:[%s3394_s1 + $0x90] sm:$0xff] }
 0x6f2   :  { %859 = vmatpush.msra.mxu3 %v837_v45 }
 0x6f4   :  { %860 = vmatpush.msra.mxu3 %v836_v46 }
 0x6fe   :  { %v607_v42 = vpop.permute.xlu0 %606 }
 0x6ff   :  { %v616_v38 = vsel %vm288_vm13, %v2633_v32, %v607_v42 }
 0x700   :  { %v621_v36 = vsel %vm218_vm9, %v616_v38, 0.0 }
 0x701   :  { %v622_v48 = vadd.f32 %v621_v36, %v620_v47  ;;  %v835_v36 = vld [vmem:[%s3394_s1 + $0x88] sm:$0xff]  ;;  %v834_v47 = vld [vmem:[%s3394_s1 + $0x80] sm:$0xff] }
 0x702   :  { %861 = vmatpush.msra.mxu3 %v835_v36 }
 0x704   :  { %862 = vmatpush.msra.mxu3 %v834_v47 }
 0x706   :  { %v609_v39 = vpop.permute.xlu1 %608  ;;  %v684_v6 = vpop.permute.xlu0 %683 }
 0x707   :  { %v617_v49 = vsel %vm288_vm13, %v591_v34, %v609_v39 }
 0x708   :  { %v623_v50 = vsel %vm218_vm9, %v617_v49, 0.0 }
 0x709   :  { %v624_v51 = vadd.f32 %v623_v50, %v622_v48  ;;  %v833_v50 = vld [vmem:[%s3394_s1 + $0x78] sm:$0xff] }
 0x70a   :  { %863 = vmatpush.msra.mxu3 %v833_v50 }
 0x70b   :  { %v625_v52 = vrot.slane %v624_v51, 4 }
 0x70d   :  { %v626_v53 = vadd.f32 %v625_v52, %v624_v51  ;;  %v832_v51 = vld [vmem:[%s3394_s1 + $0x70] sm:$0xff]  ;;  %v831_v52 = vld [vmem:[%s3394_s1 + $0x68] sm:$0xff] }
 0x70e   :  { %864 = vmatpush.msra.mxu3 %v832_v51 }
 0x70f   :  { %v627_v54 = vrot.slane %v626_v53, 2 }
 0x710   :  { %865 = vmatpush.msra.mxu3 %v831_v52 }
 0x711   :  { %v628_v55 = vadd.f32 %v627_v54, %v626_v53  ;;  %v830_v53 = vld [vmem:[%s3394_s1 + $0x60] sm:$0xff] }
 0x712   :  { %866 = vmatpush.msra.mxu3 %v830_v53 }
 0x713   :  { %v629_v56 = vrot.slane %v628_v55, 1 }
 0x715   :  { %v630_v57 = vadd.f32 %v629_v56, %v628_v55 }
 0x717   :  { %v631_v58 = vmul.f32 0.03125, %v630_v57 }
 0x719   :  { %v632_v59 = vmul.f32 %v631_v58, %v631_v58  ;;  %v641_v10 = vsub.f32 %v2623_v28, %v631_v58  ;;  %v642_v11 = vsub.f32 %v2628_v30, %v631_v58  ;;  %v643_v12 = vsub.f32 %v2633_v32, %v631_v58 }
 0x71a   :  { %v644_v13 = vsub.f32 %v591_v34, %v631_v58 }
 0x71b   :  { %634 = vrot.lane.b32.xlu2 %v632_v59, %s2353_s11 }
 0x723   :  { %681 = vrot.lane.b32.xlu2 %v2491_v37, %s2363_s22  ;;  %v680_v37 = vpop.permute.xlu1 %679 }
 0x72b   :  { %v686_v29 = vpop.permute.xlu1 %685 }
 0x775   :  { %v635_v60 = vpop.permute.xlu2 %634 }
 0x776   :  { %v637_v61 = vsub.f32 %v631_v58, %v635_v60 }
 0x778   :  { %v638_v62 = vmax.f32 %v637_v61, 0.0 }
 0x77a   :  { %v645_v63 = vadd.f32 1e-05, %v638_v62 }
 0x77c   :  { %2305 = vrsqrt.f32 %v645_v63  ;;  %vm652_vm10 = vweird.f32 %v645_v63 }
 0x77d   :  { %v682_v30 = vpop.permute.xlu2 %681 }
 0x782   :  { %v2306_v0 = vpop.eup %2305 }
 0x783   :  { %v647_v1 = vmul.f32 %v2306_v0, %v645_v63  ;;  %vm653_vm7 = vweird.f32 %v2306_v0 }
 0x784   :  { %vm654_vm11 = vmor %vm652_vm10, %vm653_vm7  ;;  %vm1059_vm7 = vcmask 654336  }
 0x785   :  { %v648_v2 = vmul.f32 %v2306_v0, %v647_v1 }
 0x787   :  { %v649_v3 = vmul.f32 0.5, %v648_v2 }
 0x789   :  { %v650_v5 = vsub.f32 1.5, %v649_v3 }
 0x78b   :  { %v651_v7 = vmul.f32 %v2306_v0, %v650_v5 }
 0x78d   :  { %v655_v8 = vsel %vm654_vm11, %v2306_v0, %v651_v7 }
 0x78e   :  { %v656_v9 = vperm.slane %v655_v8, 0 }
 0x790   :  { %658 = vrot.lane.b32.xlu0 %v656_v9, %s2363_s22 }
 0x802   :  { %v659_v15 = vpop.permute.xlu0 %658 }
 0x803   :  { %v661_v17 = vmul.f32 %v659_v15, %v641_v10  ;;  %v662_v18 = vmul.f32 %v659_v15, %v642_v11  ;;  %v663_v19 = vmul.f32 %v659_v15, %v643_v12  ;;  %v664_v20 = vmul.f32 %v659_v15, %v644_v13 }
 0x805   :  { %v666_v21 = vmul.f32 %v2284_v14, %v661_v17  ;;  %v667_v22 = vmul.f32 %v2284_v14, %v662_v18  ;;  %v668_v23 = vmul.f32 %v2284_v14, %v663_v19  ;;  %v669_v24 = vmul.f32 %v2284_v14, %v664_v20 }
 0x807   :  { %v671_v25 = vadd.f32 %v2285_v16, %v666_v21  ;;  %v672_v26 = vadd.f32 %v2285_v16, %v667_v22  ;;  %v673_v27 = vadd.f32 %v2285_v16, %v668_v23  ;;  %v674_v28 = vadd.f32 %v2285_v16, %v669_v24 }
 0x809   :  { %v691_v31 = vadd.f32 %v680_v37, %v671_v25  ;;  %v692_v32 = vadd.f32 %v682_v30, %v672_v26  ;;  %v693_v33 = vadd.f32 %v684_v6, %v673_v27  ;;  %v694_v34 = vadd.f32 %v686_v29, %v674_v28 }
 0x80b   :  { %v695_v35 = vmax.f32 %v691_v31, 0.0  ;;  %v696_v40 = vmax.f32 %v692_v32, 0.0  ;;  %v697_v41 = vmax.f32 %v693_v33, 0.0  ;;  %v698_v42 = vmax.f32 %v694_v34, 0.0 }
 0x80d   :  { %703 = vst.msk [vmem:[#allocation2 + $0xb] sm:$0xff] %vm288_vm13, %v695_v35  ;;  %713 = vrot.lane.b32.xlu0 %v696_v40, %s2353_s11  ;;  %727 = vrot.lane.b32.xlu1 %v695_v35, %s2356_s16 }
 0x80e   :  { %704 = vst.msk [vmem:[#allocation2 + $0x13] sm:$0xff] %vm288_vm13, %v696_v40  ;;  %711 = vrot.lane.b32.xlu2 %v695_v35, %s2353_s11 }
 0x80f   :  { %705 = vst.msk [vmem:[#allocation2 + $0x2b] sm:$0xff] %vm288_vm13, %v697_v41 }
 0x810   :  { %706 = vst.msk [vmem:[#allocation2 + $0x33] sm:$0xff] %vm288_vm13, %v698_v42  ;;  %vm804_vm13 = vcmask 458112  }
 0x815   :  { %743 = vrot.lane.b32.xlu0 %v695_v35, %s2358_s18  ;;  %745 = vrot.lane.b32.xlu1 %v696_v40, %s2358_s18 }
 0x816   :  { %729 = vrot.lane.b32.xlu2 %v696_v40, %s2356_s16 }
 0x81d   :  { %761 = vrot.lane.b32.xlu0 %v696_v40, %s2362_s8  ;;  %775 = vrot.lane.b32.xlu1 %v695_v35, %s2364_s10 }
 0x81e   :  { %759 = vrot.lane.b32.xlu2 %v695_v35, %s2362_s8 }
 0x825   :  { %792 = vrot.lane.b32.xlu0 %v695_v35, %s2365_s12  ;;  %794 = vrot.lane.b32.xlu1 %v696_v40, %s2365_s12 }
 0x826   :  { %777 = vrot.lane.b32.xlu2 %v696_v40, %s2364_s10 }
 0x82d   :  { %811 = vrot.lane.b32.xlu0 %v696_v40, %s2366_s13  ;;  %715 = vrot.lane.b32.xlu1 %v697_v41, %s2353_s11 }
 0x82e   :  { %809 = vrot.lane.b32.xlu2 %v695_v35, %s2366_s13 }
 0x835   :  { %731 = vrot.lane.b32.xlu0 %v697_v41, %s2356_s16  ;;  %733 = vrot.lane.b32.xlu1 %v698_v42, %s2356_s16 }
 0x836   :  { %717 = vrot.lane.b32.xlu2 %v698_v42, %s2353_s11 }
 0x83d   :  { %749 = vrot.lane.b32.xlu0 %v698_v42, %s2358_s18  ;;  %763 = vrot.lane.b32.xlu1 %v697_v41, %s2362_s8 }
 0x83e   :  { %747 = vrot.lane.b32.xlu2 %v697_v41, %s2358_s18 }
 0x845   :  { %779 = vrot.lane.b32.xlu0 %v697_v41, %s2364_s10  ;;  %781 = vrot.lane.b32.xlu1 %v698_v42, %s2364_s10  ;;  %s2371_s10 = smov [#allocation3]  }
 0x846   :  { %765 = vrot.lane.b32.xlu2 %v698_v42, %s2362_s8 }
 0x84d   :  { %798 = vrot.lane.b32.xlu0 %v698_v42, %s2365_s12  ;;  %813 = vrot.lane.b32.xlu1 %v697_v41, %s2366_s13 }
 0x84e   :  { %796 = vrot.lane.b32.xlu2 %v697_v41, %s2365_s12 }
 0x856   :  { %815 = vrot.lane.b32.xlu2 %v698_v42, %s2366_s13  ;;  %s2205_s13 = sshll.u32 %s2371_s10, 4  ;;  %s2206_s13 = int_to_ptr.vmem [resolvable:$true] %s2205_s13 }
 0x868   :  { %v712_v43 = vpop.permute.xlu2 %711 }
 0x869   :  { %723 = vst.msk [vmem:[#allocation2 + $0xa] sm:$0xff] %vm309_vm14, %v712_v43 }
 0x870   :  { %v730_v44 = vpop.permute.xlu2 %729 }
 0x878   :  { %v760_v38 = vpop.permute.xlu2 %759 }
 0x87f   :  { %v714_v39 = vpop.permute.xlu0 %713  ;;  %v728_v48 = vpop.permute.xlu1 %727 }
 0x880   :  { %724 = vst.msk [vmem:[#allocation2 + $0x12] sm:$0xff] %vm309_vm14, %v714_v39  ;;  %v778_v49 = vpop.permute.xlu2 %777 }
 0x881   :  { %740 = vst.msk [vmem:[#allocation2 + $0x11] sm:$0xff] %vm326_vm15, %v730_v44 }
 0x882   :  { %739 = vst.msk [vmem:[#allocation2 + $0x9] sm:$0xff] %vm326_vm15, %v728_v48 }
 0x887   :  { %v744_v54 = vpop.permute.xlu0 %743  ;;  %v746_v55 = vpop.permute.xlu1 %745 }
 0x888   :  { %755 = vst.msk [vmem:[#allocation2 + $0x8] sm:$0xff] %vm343_vm0, %v744_v54  ;;  %v810_v56 = vpop.permute.xlu2 %809 }
 0x889   :  { %771 = vst.msk [vmem:[#allocation2 + $0x7] sm:$0xff] %vm360_vm1, %v760_v38 }
 0x88a   :  { %756 = vst.msk [vmem:[#allocation2 + $0x10] sm:$0xff] %vm343_vm0, %v746_v55 }
 0x88f   :  { %v762_v57 = vpop.permute.xlu0 %761  ;;  %v776_v58 = vpop.permute.xlu1 %775 }
 0x890   :  { %772 = vst.msk [vmem:[#allocation2 + $0xf] sm:$0xff] %vm360_vm1, %v762_v57  ;;  %v718_v59 = vpop.permute.xlu2 %717 }
 0x891   :  { %726 = vst.msk [vmem:[#allocation2 + $0x32] sm:$0xff] %vm309_vm14, %v718_v59 }
 0x892   :  { %788 = vst.msk [vmem:[#allocation2 + $0x6] sm:$0xff] %vm787_vm12, %v776_v58 }
 0x893   :  { %789 = vst.msk [vmem:[#allocation2 + $0xe] sm:$0xff] %vm787_vm12, %v778_v49 }
 0x897   :  { %v793_v60 = vpop.permute.xlu0 %792  ;;  %v795_v61 = vpop.permute.xlu1 %794 }
 0x898   :  { %805 = vst.msk [vmem:[#allocation2 + $0x5] sm:$0xff] %vm804_vm13, %v793_v60  ;;  %v748_v0 = vpop.permute.xlu2 %747 }
 0x899   :  { %822 = vst.msk [vmem:[#allocation2 + $0x4] sm:$0xff] %vm821_vm2, %v810_v56 }
 0x89a   :  { %806 = vst.msk [vmem:[#allocation2 + $0xd] sm:$0xff] %vm804_vm13, %v795_v61 }
 0x89f   :  { %v812_v62 = vpop.permute.xlu0 %811  ;;  %v716_v63 = vpop.permute.xlu1 %715 }
 0x8a0   :  { %823 = vst.msk [vmem:[#allocation2 + $0xc] sm:$0xff] %vm821_vm2, %v812_v62  ;;  %v766_v7 = vpop.permute.xlu2 %765 }
 0x8a1   :  { %725 = vst.msk [vmem:[#allocation2 + $0x2a] sm:$0xff] %vm309_vm14, %v716_v63 }
 0x8a7   :  { %v732_v1 = vpop.permute.xlu0 %731  ;;  %v734_v2 = vpop.permute.xlu1 %733  ;;  %v826_v3 = vld [vmem:[#allocation2 + $0x8] sm:$0xff]  ;;  %v827_v5 = vld [vmem:[#allocation2 + $0x10] sm:$0xff] }
 0x8a8   :  { %741 = vst.msk [vmem:[#allocation2 + $0x29] sm:$0xff] %vm326_vm15, %v732_v1  ;;  %2228 = vmatmul.msk.f32.vlgmr.msra.gmra.mxu3 %vm838_vm3, %v826_v3  ;;  %v797_v6 = vpop.permute.xlu2 %796 }
 0x8a9   :  { %757 = vst.msk [vmem:[#allocation2 + $0x28] sm:$0xff] %vm343_vm0, %v748_v0  ;;  %v2286_v0 = vld [vmem:[%s3394_s1 + $0x236] ss:$0 sm:$0xff] }
 0x8aa   :  { %742 = vst.msk [vmem:[#allocation2 + $0x31] sm:$0xff] %vm326_vm15, %v734_v2  ;;  %v2287_v2 = vld [vmem:[%s3394_s1 + $0x237] ss:$0 sm:$0xff] }
 0x8ab   :  { %965 = vst [vmem:[#allocation2 + $0x8] sm:$0xff] %v2360_v4 }
 0x8ac   :  { %966 = vst [vmem:[#allocation2 + $0x10] sm:$0xff] %v2360_v4 }
 0x8af   :  { %v750_v8 = vpop.permute.xlu0 %749  ;;  %v764_v9 = vpop.permute.xlu1 %763 }
 0x8b0   :  { %758 = vst.msk [vmem:[#allocation2 + $0x30] sm:$0xff] %vm343_vm0, %v750_v8  ;;  %2229 = vmatmul.msk.f32.gmra.mxu3 %vm838_vm3, %v827_v5  ;;  %v816_v13 = vpop.permute.xlu2 %815 }
 0x8b1   :  { %774 = vst.msk [vmem:[#allocation2 + $0x2f] sm:$0xff] %vm360_vm1, %v766_v7 }
 0x8b2   :  { %773 = vst.msk [vmem:[#allocation2 + $0x27] sm:$0xff] %vm360_vm1, %v764_v9  ;;  %vm989_vm1 = vcmask 261248  }
 0x8b7   :  { %v780_v37 = vpop.permute.xlu0 %779  ;;  %v782_v10 = vpop.permute.xlu1 %781 }
 0x8b8   :  { %790 = vst.msk [vmem:[#allocation2 + $0x26] sm:$0xff] %vm787_vm12, %v780_v37 }
 0x8b9   :  { %807 = vst.msk [vmem:[#allocation2 + $0x25] sm:$0xff] %vm804_vm13, %v797_v6 }
 0x8ba   :  { %791 = vst.msk [vmem:[#allocation2 + $0x2e] sm:$0xff] %vm787_vm12, %v782_v10 }
 0x8bf   :  { %v799_v11 = vpop.permute.xlu0 %798  ;;  %v814_v12 = vpop.permute.xlu1 %813 }
 0x8c0   :  { %808 = vst.msk [vmem:[#allocation2 + $0x2d] sm:$0xff] %vm804_vm13, %v799_v11  ;;  %vm1240_vm13 = vcmask 392192  }
 0x8c1   :  { %825 = vst.msk [vmem:[#allocation2 + $0x2c] sm:$0xff] %vm821_vm2, %v816_v13 }
 0x8c2   :  { %824 = vst.msk [vmem:[#allocation2 + $0x24] sm:$0xff] %vm821_vm2, %v814_v12 }
 0x8c8   :  { %v829_v14 = vld [vmem:[#allocation2 + $0x30] sm:$0xff] }
 0x8c9   :  { %v828_v15 = vld [vmem:[#allocation2 + $0x28] sm:$0xff]  ;;  %968 = vst [vmem:[#allocation2 + $0x30] sm:$0xff] %v2360_v4 }
 0x8ca   :  { %2230 = vmatmul.msk.f32.gmra.mxu3 %vm838_vm3, %v828_v15  ;;  %967 = vst [vmem:[#allocation2 + $0x28] sm:$0xff] %v2360_v4 }
 0x8d2   :  { %2231 = vmatmul.msk.f32.gmra.mxu3 %vm838_vm3, %v829_v14 }
 0x92b   :  { %v868_v16 = vpop.f32.mrf.mxu3 }
 0x92c   :  { %v880_v17 = vmul.f32 %v868_v16, %v868_v16 }
 0x92e   :  { %888 = vrot.lane.b32.xlu0 %v880_v17, %s2362_s8 }
 0x933   :  { %v871_v18 = vpop.f32.mrf.mxu3 }
 0x934   :  { %v881_v19 = vmul.f32 %v871_v18, %v871_v18 }
 0x936   :  { %890 = vrot.lane.b32.xlu1 %v881_v19, %s2362_s8  ;;  %v1058_v19 = vld [vmem:[%s3394_s1 + $0xe8] sm:$0xff] }
 0x937   :  { %1078 = vmatpush.msrb.mxu2 %v1058_v19 }
 0x94d   :  { %v874_v20 = vpop.f32.mrf.mxu3 }
 0x94e   :  { %v882_v21 = vmul.f32 %v874_v20, %v874_v20 }
 0x950   :  { %892 = vrot.lane.b32.xlu2 %v882_v21, %s2362_s8  ;;  %v1056_v21 = vld [vmem:[%s3394_s1 + $0xd8] sm:$0xff] }
 0x955   :  { %v877_v22 = vpop.f32.mrf.mxu3 }
 0x956   :  { %v883_v23 = vmul.f32 %v877_v22, %v877_v22 }
 0x958   :  { %894 = vrot.lane.b32.xlu0 %v883_v23, %s2362_s8  ;;  %v1055_v23 = vld [vmem:[%s3394_s1 + $0xd0] sm:$0xff] }
 0x9a0   :  { %v889_v25 = vpop.permute.xlu0 %888 }
 0x9a1   :  { %v900_v28 = vsel %vm156_vm8, %v868_v16, %v889_v25  ;;  %v1053_v25 = vld [vmem:[%s3394_s1 + $0xc0] sm:$0xff] }
 0x9a2   :  { %v904_v31 = vsel %vm838_vm3, %v900_v28, 0.0  ;;  %v1051_v28 = vld [vmem:[%s3394_s1 + $0xb0] sm:$0xff] }
 0x9a8   :  { %v891_v24 = vpop.permute.xlu1 %890 }
 0x9a9   :  { %v901_v26 = vsel %vm156_vm8, %v871_v18, %v891_v24  ;;  %v1054_v24 = vld [vmem:[%s3394_s1 + $0xc8] sm:$0xff] }
 0x9aa   :  { %v893_v27 = vpop.permute.xlu2 %892  ;;  %v905_v29 = vsel %vm838_vm3, %v901_v26, 0.0 }
 0x9ab   :  { %v902_v30 = vsel %vm156_vm8, %v874_v20, %v893_v27  ;;  %v906_v32 = vadd.f32 %v905_v29, %v904_v31  ;;  %v1052_v27 = vld [vmem:[%s3394_s1 + $0xb8] sm:$0xff]  ;;  %v1050_v29 = vld [vmem:[%s3394_s1 + $0xa8] sm:$0xff] }
 0x9ac   :  { %v907_v33 = vsel %vm838_vm3, %v902_v30, 0.0  ;;  %v1049_v30 = vld [vmem:[%s3394_s1 + $0xa0] sm:$0xff] }
 0x9ad   :  { %v908_v35 = vadd.f32 %v907_v33, %v906_v32 }
 0x9ca   :  { %v895_v34 = vpop.permute.xlu0 %894 }
 0x9cb   :  { %v903_v40 = vsel %vm156_vm8, %v877_v22, %v895_v34 }
 0x9cc   :  { %v909_v41 = vsel %vm838_vm3, %v903_v40, 0.0 }
 0x9cd   :  { %v910_v42 = vadd.f32 %v909_v41, %v908_v35 }
 0x9cf   :  { %v911_v43 = vrot.slane %v910_v42, 4 }
 0x9d1   :  { %v912_v44 = vadd.f32 %v911_v43, %v910_v42 }
 0x9d3   :  { %v913_v38 = vrot.slane %v912_v44, 2 }
 0x9d5   :  { %v914_v45 = vadd.f32 %v913_v38, %v912_v44 }
 0x9d7   :  { %v915_v46 = vrot.slane %v914_v45, 1 }
 0x9d9   :  { %v916_v36 = vadd.f32 %v915_v46, %v914_v45 }
 0x9db   :  { %v917_v47 = vmul.f32 0.03125, %v916_v36 }
 0x9dd   :  { %v918_v39 = vmul.f32 %v917_v47, %v917_v47  ;;  %v927_v60 = vsub.f32 %v868_v16, %v917_v47  ;;  %v928_v61 = vsub.f32 %v871_v18, %v917_v47  ;;  %v929_v62 = vsub.f32 %v874_v20, %v917_v47  ;;  %v1057_v20 = vld [vmem:[%s3394_s1 + $0xe0] sm:$0xff] }
 0x9de   :  { %v930_v63 = vsub.f32 %v877_v22, %v917_v47  ;;  %1079 = vmatpush.msrb.mxu2 %v1057_v20 }
 0x9df   :  { %920 = vrot.lane.b32.xlu1 %v918_v39, %s2362_s8 }
 0x9e0   :  { %1080 = vmatpush.msrb.mxu2 %v1056_v21 }
 0x9e2   :  { %1081 = vmatpush.msrb.mxu2 %v1055_v23 }
 0x9e4   :  { %1082 = vmatpush.msrb.mxu2 %v1054_v24 }
 0x9e6   :  { %1083 = vmatpush.msrb.mxu2 %v1053_v25 }
 0x9e8   :  { %1084 = vmatpush.msrb.mxu2 %v1052_v27 }
 0x9ea   :  { %1085 = vmatpush.msrb.mxu2 %v1051_v28 }
 0x9ec   :  { %1086 = vmatpush.msrb.mxu2 %v1050_v29 }
 0x9ee   :  { %1087 = vmatpush.msrb.mxu2 %v1049_v30 }
 0xa51   :  { %v921_v48 = vpop.permute.xlu1 %920 }
 0xa52   :  { %v923_v49 = vsub.f32 %v917_v47, %v921_v48 }
 0xa54   :  { %v924_v50 = vmax.f32 %v923_v49, 0.0 }
 0xa56   :  { %v931_v51 = vadd.f32 1e-05, %v924_v50 }
 0xa58   :  { %2307 = vrsqrt.f32 %v931_v51  ;;  %vm938_vm15 = vweird.f32 %v931_v51 }
 0xa5e   :  { %v2308_v52 = vpop.eup %2307 }
 0xa5f   :  { %v933_v53 = vmul.f32 %v2308_v52, %v931_v51  ;;  %vm939_vm14 = vweird.f32 %v2308_v52 }
 0xa60   :  { %vm940_vm0 = vmor %vm938_vm15, %vm939_vm14  ;;  %vm1475_vm15 = vcmask 786048  }
 0xa61   :  { %v934_v54 = vmul.f32 %v2308_v52, %v933_v53 }
 0xa63   :  { %v935_v55 = vmul.f32 0.5, %v934_v54 }
 0xa65   :  { %v936_v56 = vsub.f32 1.5, %v935_v55 }
 0xa67   :  { %v937_v57 = vmul.f32 %v2308_v52, %v936_v56 }
 0xa69   :  { %v941_v58 = vsel %vm940_vm0, %v2308_v52, %v937_v57  ;;  %vm1492_vm0 = vcmask 917248  }
 0xa6a   :  { %v942_v59 = vperm.slane %v941_v58, 0 }
 0xa6c   :  { %944 = vrot.lane.b32.xlu2 %v942_v59, %s2367_s29 }
 0xac6   :  { %v945_v1 = vpop.permute.xlu2 %944 }
 0xac7   :  { %v947_v3 = vmul.f32 %v945_v1, %v927_v60  ;;  %v948_v5 = vmul.f32 %v945_v1, %v928_v61  ;;  %v949_v7 = vmul.f32 %v945_v1, %v929_v62  ;;  %v950_v8 = vmul.f32 %v945_v1, %v930_v63 }
 0xac9   :  { %v952_v9 = vmul.f32 %v2286_v0, %v947_v3  ;;  %v953_v6 = vmul.f32 %v2286_v0, %v948_v5  ;;  %v954_v37 = vmul.f32 %v2286_v0, %v949_v7  ;;  %v955_v10 = vmul.f32 %v2286_v0, %v950_v8 }
 0xacb   :  { %v2773_v11 = vadd.f32 %v2287_v2, %v952_v9  ;;  %v2775_v12 = vadd.f32 %v2287_v2, %v953_v6  ;;  %v2777_v13 = vadd.f32 %v2287_v2, %v954_v37  ;;  %v2779_v14 = vadd.f32 %v2287_v2, %v955_v10 }
 0xacd   :  { %v961_v15 = vmax.f32 %v2773_v11, 0.0  ;;  %v962_v16 = vmax.f32 %v2775_v12, 0.0  ;;  %v963_v17 = vmax.f32 %v2777_v13, 0.0  ;;  %v964_v18 = vmax.f32 %v2779_v14, 0.0 }
 0xacf   :  { %969 = vst.msk [vmem:[#allocation2 + $0xa] sm:$0xff] %vm218_vm9, %v961_v15  ;;  %979 = vrot.lane.b32.xlu1 %v962_v16, %s2356_s16  ;;  %994 = vrot.lane.b32.xlu2 %v961_v15, %s2362_s8 }
 0xad0   :  { %970 = vst.msk [vmem:[#allocation2 + $0x12] sm:$0xff] %vm218_vm9, %v962_v16  ;;  %977 = vrot.lane.b32.xlu0 %v961_v15, %s2356_s16 }
 0xad1   :  { %971 = vst.msk [vmem:[#allocation2 + $0x2a] sm:$0xff] %vm218_vm9, %v963_v17 }
 0xad2   :  { %972 = vst.msk [vmem:[#allocation2 + $0x32] sm:$0xff] %vm218_vm9, %v964_v18 }
 0xad7   :  { %1011 = vrot.lane.b32.xlu1 %v961_v15, %s2365_s12  ;;  %1013 = vrot.lane.b32.xlu2 %v962_v16, %s2365_s12 }
 0xad8   :  { %996 = vrot.lane.b32.xlu0 %v962_v16, %s2362_s8 }
 0xadf   :  { %1030 = vrot.lane.b32.xlu1 %v962_v16, %s2368_s7  ;;  %981 = vrot.lane.b32.xlu2 %v963_v17, %s2356_s16 }
 0xae0   :  { %1028 = vrot.lane.b32.xlu0 %v961_v15, %s2368_s7 }
 0xae7   :  { %998 = vrot.lane.b32.xlu1 %v963_v17, %s2362_s8  ;;  %1000 = vrot.lane.b32.xlu2 %v964_v18, %s2362_s8 }
 0xae8   :  { %983 = vrot.lane.b32.xlu0 %v964_v18, %s2356_s16 }
 0xaef   :  { %1017 = vrot.lane.b32.xlu1 %v964_v18, %s2365_s12  ;;  %1032 = vrot.lane.b32.xlu2 %v963_v17, %s2368_s7 }
 0xaf0   :  { %1015 = vrot.lane.b32.xlu0 %v963_v17, %s2365_s12 }
 0xaf8   :  { %1034 = vrot.lane.b32.xlu0 %v964_v18, %s2368_s7 }
 0xb29   :  { %v995_v22 = vpop.permute.xlu2 %994 }
 0xb31   :  { %v1014_v26 = vpop.permute.xlu2 %1013 }
 0xb39   :  { %v982_v31 = vpop.permute.xlu2 %981 }
 0xb3a   :  { %992 = vst.msk [vmem:[#allocation2 + $0x29] sm:$0xff] %vm989_vm1, %v982_v31 }
 0xb41   :  { %v980_v32 = vpop.permute.xlu1 %979  ;;  %v1001_v42 = vpop.permute.xlu2 %1000 }
 0xb42   :  { %991 = vst.msk [vmem:[#allocation2 + $0x11] sm:$0xff] %vm989_vm1, %v980_v32  ;;  %v978_v33 = vpop.permute.xlu0 %977 }
 0xb43   :  { %990 = vst.msk [vmem:[#allocation2 + $0x9] sm:$0xff] %vm989_vm1, %v978_v33 }
 0xb44   :  { %1007 = vst.msk [vmem:[#allocation2 + $0x8] sm:$0xff] %vm1006_vm4, %v995_v22 }
 0xb49   :  { %v1012_v34 = vpop.permute.xlu1 %1011  ;;  %v1033_v47 = vpop.permute.xlu2 %1032 }
 0xb4a   :  { %1024 = vst.msk [vmem:[#allocation2 + $0x7] sm:$0xff] %vm1023_vm5, %v1012_v34  ;;  %v997_v35 = vpop.permute.xlu0 %996 }
 0xb4b   :  { %1008 = vst.msk [vmem:[#allocation2 + $0x10] sm:$0xff] %vm1006_vm4, %v997_v35 }
 0xb4c   :  { %1025 = vst.msk [vmem:[#allocation2 + $0xf] sm:$0xff] %vm1023_vm5, %v1014_v26 }
 0xb51   :  { %v1031_v40 = vpop.permute.xlu1 %1030 }
 0xb52   :  { %1042 = vst.msk [vmem:[#allocation2 + $0xe] sm:$0xff] %vm1040_vm6, %v1031_v40  ;;  %v1029_v41 = vpop.permute.xlu0 %1028 }
 0xb53   :  { %1041 = vst.msk [vmem:[#allocation2 + $0x6] sm:$0xff] %vm1040_vm6, %v1029_v41  ;;  %v2288_v41 = vld [vmem:[%s3394_s1 + $0x238] ss:$0 sm:$0xff] }
 0xb59   :  { %v999_v43 = vpop.permute.xlu1 %998  ;;  %v1046_v45 = vld [vmem:[#allocation2 + $0x10] sm:$0xff] }
 0xb5a   :  { %1009 = vst.msk [vmem:[#allocation2 + $0x28] sm:$0xff] %vm1006_vm4, %v999_v43  ;;  %v984_v44 = vpop.permute.xlu0 %983  ;;  %v1045_v38 = vld [vmem:[#allocation2 + $0x8] sm:$0xff] }
 0xb5b   :  { %993 = vst.msk [vmem:[#allocation2 + $0x31] sm:$0xff] %vm989_vm1, %v984_v44  ;;  %2232 = vmatmul.msk.f32.vlgmr.msrb.gmra.mxu2 %vm1059_vm7, %v1045_v38 }
 0xb5c   :  { %1010 = vst.msk [vmem:[#allocation2 + $0x30] sm:$0xff] %vm1006_vm4, %v1001_v42 }
 0xb5d   :  { %1186 = vst [vmem:[#allocation2 + $0x8] sm:$0xff] %v2360_v4 }
 0xb5e   :  { %1187 = vst [vmem:[#allocation2 + $0x10] sm:$0xff] %v2360_v4 }
 0xb61   :  { %v1018_v46 = vpop.permute.xlu1 %1017 }
 0xb62   :  { %1027 = vst.msk [vmem:[#allocation2 + $0x2f] sm:$0xff] %vm1023_vm5, %v1018_v46  ;;  %v1016_v36 = vpop.permute.xlu0 %1015  ;;  %v2289_v46 = vld [vmem:[%s3394_s1 + $0x239] ss:$0 sm:$0xff] }
 0xb63   :  { %1026 = vst.msk [vmem:[#allocation2 + $0x27] sm:$0xff] %vm1023_vm5, %v1016_v36  ;;  %2233 = vmatmul.msk.f32.gmra.mxu2 %vm1059_vm7, %v1046_v45 }
 0xb64   :  { %1043 = vst.msk [vmem:[#allocation2 + $0x26] sm:$0xff] %vm1040_vm6, %v1033_v47 }
 0xb6a   :  { %v1035_v39 = vpop.permute.xlu0 %1034 }
 0xb6b   :  { %1044 = vst.msk [vmem:[#allocation2 + $0x2e] sm:$0xff] %vm1040_vm6, %v1035_v39 }
 0xb72   :  { %v1047_v48 = vld [vmem:[#allocation2 + $0x28] sm:$0xff]  ;;  %v1048_v49 = vld [vmem:[#allocation2 + $0x30] sm:$0xff] }
 0xb73   :  { %2234 = vmatmul.msk.f32.gmra.mxu2 %vm1059_vm7, %v1047_v48  ;;  %1188 = vst [vmem:[#allocation2 + $0x28] sm:$0xff] %v2360_v4 }
 0xb74   :  { %1189 = vst [vmem:[#allocation2 + $0x30] sm:$0xff] %v2360_v4 }
 0xb7b   :  { %2235 = vmatmul.msk.f32.gmra.mxu2 %vm1059_vm7, %v1048_v49 }
 0xbde   :  { %v1089_v50 = vpop.f32.mrf.mxu2 }
 0xbdf   :  { %v1101_v51 = vmul.f32 %v1089_v50, %v1089_v50 }
 0xbe1   :  { %1109 = vrot.lane.b32.xlu1 %v1101_v51, %s2356_s16 }
 0xbe6   :  { %v1092_v52 = vpop.f32.mrf.mxu2 }
 0xbe7   :  { %v1102_v53 = vmul.f32 %v1092_v52, %v1092_v52 }
 0xbe9   :  { %1111 = vrot.lane.b32.xlu2 %v1102_v53, %s2356_s16 }
 0xbf6   :  { %v1095_v54 = vpop.f32.mrf.mxu2 }
 0xbf7   :  { %v1103_v55 = vmul.f32 %v1095_v54, %v1095_v54 }
 0xbf9   :  { %1113 = vrot.lane.b32.xlu0 %v1103_v55, %s2356_s16 }
 0xbfe   :  { %v1098_v56 = vpop.f32.mrf.mxu2 }
 0xbff   :  { %v1104_v57 = vmul.f32 %v1098_v56, %v1098_v56 }
 0xc01   :  { %1115 = vrot.lane.b32.xlu1 %v1104_v57, %s2356_s16  ;;  %v1239_v57 = vld [vmem:[%s3394_s1 + $0x118] sm:$0xff] }
 0xc02   :  { %1263 = vmatpush.msrb.mxu0 %v1239_v57 }
 0xc43   :  { %v1112_v59 = vpop.permute.xlu2 %1111 }
 0xc44   :  { %v1122_v62 = vsel %vm218_vm9, %v1092_v52, %v1112_v59  ;;  %v1237_v59 = vld [vmem:[%s3394_s1 + $0x108] sm:$0xff] }
 0xc45   :  { %v1126_v1 = vsel %vm156_vm8, %v1122_v62, 0.0 }
 0xc53   :  { %v1110_v58 = vpop.permute.xlu1 %1109 }
 0xc54   :  { %v1121_v61 = vsel %vm218_vm9, %v1089_v50, %v1110_v58  ;;  %v1238_v58 = vld [vmem:[%s3394_s1 + $0x110] sm:$0xff] }
 0xc55   :  { %v1125_v0 = vsel %vm156_vm8, %v1121_v61, 0.0  ;;  %1264 = vmatpush.msrb.mxu0 %v1238_v58  ;;  %v1235_v61 = vld [vmem:[%s3394_s1 + $0xf8] sm:$0xff] }
 0xc56   :  { %v1127_v3 = vadd.f32 %v1126_v1, %v1125_v0 }
 0xc57   :  { %1265 = vmatpush.msrb.mxu0 %v1237_v59 }
 0xc6b   :  { %v1114_v60 = vpop.permute.xlu0 %1113 }
 0xc6c   :  { %v1123_v63 = vsel %vm218_vm9, %v1095_v54, %v1114_v60  ;;  %v1236_v60 = vld [vmem:[%s3394_s1 + $0x100] sm:$0xff] }
 0xc6d   :  { %v1128_v2 = vsel %vm156_vm8, %v1123_v63, 0.0  ;;  %1266 = vmatpush.msrb.mxu0 %v1236_v60  ;;  %v1234_v63 = vld [vmem:[%s3394_s1 + $0xf0] sm:$0xff] }
 0xc6e   :  { %v1129_v7 = vadd.f32 %v1128_v2, %v1127_v3 }
 0xc6f   :  { %1267 = vmatpush.msrb.mxu0 %v1235_v61  ;;  %v2290_v61 = vld [vmem:[%s3394_s1 + $0x23a] ss:$0 sm:$0xff] }
 0xc71   :  { %1268 = vmatpush.msrb.mxu0 %v1234_v63  ;;  %v2291_v63 = vld [vmem:[%s3394_s1 + $0x23b] ss:$0 sm:$0xff] }
 0xc73   :  { %v1116_v5 = vpop.permute.xlu1 %1115 }
 0xc74   :  { %v1124_v8 = vsel %vm218_vm9, %v1098_v56, %v1116_v5 }
 0xc75   :  { %v1130_v9 = vsel %vm156_vm8, %v1124_v8, 0.0 }
 0xc76   :  { %v1131_v6 = vadd.f32 %v1130_v9, %v1129_v7 }
 0xc78   :  { %v1132_v37 = vrot.slane %v1131_v6, 4 }
 0xc7a   :  { %v1133_v10 = vadd.f32 %v1132_v37, %v1131_v6 }
 0xc7c   :  { %v1134_v15 = vrot.slane %v1133_v10, 2 }
 0xc7e   :  { %v1135_v16 = vadd.f32 %v1134_v15, %v1133_v10 }
 0xc80   :  { %v1136_v17 = vrot.slane %v1135_v16, 1 }
 0xc82   :  { %v1137_v18 = vadd.f32 %v1136_v17, %v1135_v16 }
 0xc84   :  { %v1138_v19 = vmul.f32 0.03125, %v1137_v18 }
 0xc86   :  { %v1139_v20 = vmul.f32 %v1138_v19, %v1138_v19  ;;  %v1148_v33 = vsub.f32 %v1089_v50, %v1138_v19  ;;  %v1149_v34 = vsub.f32 %v1092_v52, %v1138_v19  ;;  %v1150_v35 = vsub.f32 %v1095_v54, %v1138_v19 }
 0xc87   :  { %v1151_v40 = vsub.f32 %v1098_v56, %v1138_v19 }
 0xc88   :  { %1141 = vrot.lane.b32.xlu2 %v1139_v20, %s2356_s16 }
 0xce2   :  { %v1142_v21 = vpop.permute.xlu2 %1141 }
 0xce3   :  { %v1144_v22 = vsub.f32 %v1138_v19, %v1142_v21 }
 0xce5   :  { %v1145_v23 = vmax.f32 %v1144_v22, 0.0 }
 0xce7   :  { %v1152_v24 = vadd.f32 1e-05, %v1145_v23 }
 0xce9   :  { %2309 = vrsqrt.f32 %v1152_v24  ;;  %vm1159_vm11 = vweird.f32 %v1152_v24 }
 0xcef   :  { %v2310_v25 = vpop.eup %2309 }
 0xcf0   :  { %v1154_v26 = vmul.f32 %v2310_v25, %v1152_v24  ;;  %vm1160_vm10 = vweird.f32 %v2310_v25 }
 0xcf1   :  { %vm1161_vm12 = vmor %vm1159_vm11, %vm1160_vm10  ;;  %vm1509_vm10 = vcmask 1048448  }
 0xcf2   :  { %v1155_v27 = vmul.f32 %v2310_v25, %v1154_v26 }
 0xcf4   :  { %v1156_v28 = vmul.f32 0.5, %v1155_v27 }
 0xcf6   :  { %v1157_v29 = vsub.f32 1.5, %v1156_v28 }
 0xcf8   :  { %v1158_v30 = vmul.f32 %v2310_v25, %v1157_v29 }
 0xcfa   :  { %v1162_v31 = vsel %vm1161_vm12, %v2310_v25, %v1158_v30 }
 0xcfb   :  { %v1163_v32 = vperm.slane %v1162_v31, 0 }
 0xcfd   :  { %1165 = vrot.lane.b32.xlu0 %v1163_v32, %s2361_s3 }
 0xd6f   :  { %v1166_v42 = vpop.permute.xlu0 %1165 }
 0xd70   :  { %v1168_v43 = vmul.f32 %v1166_v42, %v1148_v33  ;;  %v1169_v44 = vmul.f32 %v1166_v42, %v1149_v34  ;;  %v1170_v38 = vmul.f32 %v1166_v42, %v1150_v35  ;;  %v1171_v45 = vmul.f32 %v1166_v42, %v1151_v40 }
 0xd72   :  { %v1174_v36 = vmul.f32 %v2288_v41, %v1169_v44  ;;  %v1173_v47 = vmul.f32 %v2288_v41, %v1168_v43  ;;  %v1175_v39 = vmul.f32 %v2288_v41, %v1170_v38  ;;  %v1176_v48 = vmul.f32 %v2288_v41, %v1171_v45 }
 0xd74   :  { %v1179_v49 = vadd.f32 %v2289_v46, %v1174_v36  ;;  %v1178_v50 = vadd.f32 %v2289_v46, %v1173_v47  ;;  %v1180_v51 = vadd.f32 %v2289_v46, %v1175_v39  ;;  %v1181_v52 = vadd.f32 %v2289_v46, %v1176_v48 }
 0xd76   :  { %v1183_v53 = vmax.f32 %v1179_v49, 0.0  ;;  %v1182_v54 = vmax.f32 %v1178_v50, 0.0  ;;  %v1184_v55 = vmax.f32 %v1180_v51, 0.0  ;;  %v1185_v56 = vmax.f32 %v1181_v52, 0.0 }
 0xd78   :  { %1200 = vrot.lane.b32.xlu2 %v1183_v53, %s2356_s16  ;;  %1191 = vst.msk [vmem:[#allocation2 + $0x11] sm:$0xff] %vm218_vm9, %v1183_v53  ;;  %1214 = vrot.lane.b32.xlu0 %v1182_v54, %s2362_s8 }
 0xd79   :  { %1190 = vst.msk [vmem:[#allocation2 + $0x9] sm:$0xff] %vm218_vm9, %v1182_v54  ;;  %1198 = vrot.lane.b32.xlu1 %v1182_v54, %s2356_s16 }
 0xd7a   :  { %1192 = vst.msk [vmem:[#allocation2 + $0x29] sm:$0xff] %vm218_vm9, %v1184_v55 }
 0xd7b   :  { %1193 = vst.msk [vmem:[#allocation2 + $0x31] sm:$0xff] %vm218_vm9, %v1185_v56 }
 0xd80   :  { %1202 = vrot.lane.b32.xlu2 %v1184_v55, %s2356_s16  ;;  %1204 = vrot.lane.b32.xlu0 %v1185_v56, %s2356_s16 }
 0xd81   :  { %1216 = vrot.lane.b32.xlu1 %v1183_v53, %s2362_s8 }
 0xd88   :  { %1220 = vrot.lane.b32.xlu2 %v1185_v56, %s2362_s8 }
 0xd89   :  { %1218 = vrot.lane.b32.xlu1 %v1184_v55, %s2362_s8 }
 0xdd2   :  { %v1201_v62 = vpop.permute.xlu2 %1200 }
 0xdd3   :  { %1211 = vst.msk [vmem:[#allocation2 + $0x10] sm:$0xff] %vm989_vm1, %v1201_v62 }
 0xdda   :  { %v1203_v0 = vpop.permute.xlu2 %1202 }
 0xddb   :  { %1212 = vst.msk [vmem:[#allocation2 + $0x28] sm:$0xff] %vm989_vm1, %v1203_v0 }
 0xde2   :  { %v1221_v5 = vpop.permute.xlu2 %1220 }
 0xdea   :  { %v1215_v1 = vpop.permute.xlu0 %1214 }
 0xdeb   :  { %v1199_v2 = vpop.permute.xlu1 %1198 }
 0xdec   :  { %1210 = vst.msk [vmem:[#allocation2 + $0x8] sm:$0xff] %vm989_vm1, %v1199_v2 }
 0xded   :  { %1226 = vst.msk [vmem:[#allocation2 + $0x7] sm:$0xff] %vm1006_vm4, %v1215_v1 }
 0xdf2   :  { %v1205_v3 = vpop.permute.xlu0 %1204 }
 0xdf3   :  { %1213 = vst.msk [vmem:[#allocation2 + $0x30] sm:$0xff] %vm989_vm1, %v1205_v3  ;;  %v1217_v7 = vpop.permute.xlu1 %1216 }
 0xdf4   :  { %1229 = vst.msk [vmem:[#allocation2 + $0x2f] sm:$0xff] %vm1006_vm4, %v1221_v5 }
 0xdf5   :  { %1227 = vst.msk [vmem:[#allocation2 + $0xf] sm:$0xff] %vm1006_vm4, %v1217_v7 }
 0xdfb   :  { %v1219_v8 = vpop.permute.xlu1 %1218  ;;  %v1233_v37 = vld [vmem:[#allocation2 + $0x30] sm:$0xff] }
 0xdfc   :  { %1228 = vst.msk [vmem:[#allocation2 + $0x27] sm:$0xff] %vm1006_vm4, %v1219_v8  ;;  %v1230_v9 = vld [vmem:[#allocation2 + $0x8] sm:$0xff]  ;;  %v1231_v6 = vld [vmem:[#allocation2 + $0x10] sm:$0xff] }
 0xdfd   :  { %2236 = vmatmul.msk.f32.vlgmr.msrb.gmra.mxu0 %vm1240_vm13, %v1230_v9  ;;  %1387 = vst [vmem:[#allocation2 + $0x8] sm:$0xff] %v2360_v4 }
 0xdfe   :  { %1388 = vst [vmem:[#allocation2 + $0x10] sm:$0xff] %v2360_v4 }
 0xdff   :  { %1390 = vst [vmem:[#allocation2 + $0x30] sm:$0xff] %v2360_v4 }
 0xe03   :  { %v1232_v10 = vld [vmem:[#allocation2 + $0x28] sm:$0xff] }
 0xe04   :  { %1389 = vst [vmem:[#allocation2 + $0x28] sm:$0xff] %v2360_v4 }
 0xe05   :  { %2237 = vmatmul.msk.f32.gmra.mxu0 %vm1240_vm13, %v1231_v6 }
 0xe0d   :  { %2238 = vmatmul.msk.f32.gmra.mxu0 %vm1240_vm13, %v1232_v10 }
 0xe15   :  { %2239 = vmatmul.msk.f32.gmra.mxu0 %vm1240_vm13, %v1233_v37 }
 0xe7a   :  { %v2925_v15 = vpop.f32.mrf.mxu0 }
 0xe7b   :  { %v1282_v16 = vmul.f32 %v2925_v15, %v2925_v15 }
 0xe7d   :  { %1290 = vrot.lane.b32.xlu0 %v1282_v16, %s2356_s16 }
 0xe82   :  { %v2930_v17 = vpop.f32.mrf.mxu0 }
 0xe83   :  { %v1283_v18 = vmul.f32 %v2930_v17, %v2930_v17 }
 0xe85   :  { %1292 = vrot.lane.b32.xlu1 %v1283_v18, %s2356_s16 }
 0xe8a   :  { %v2935_v19 = vpop.f32.mrf.mxu0 }
 0xe8b   :  { %v1284_v20 = vmul.f32 %v2935_v19, %v2935_v19 }
 0xe8d   :  { %1294 = vrot.lane.b32.xlu2 %v1284_v20, %s2356_s16 }
 0xe92   :  { %v1279_v21 = vpop.f32.mrf.mxu0 }
 0xe93   :  { %v1285_v22 = vmul.f32 %v1279_v21, %v1279_v21 }
 0xe95   :  { %1371 = vrot.lane.b32.xlu2 %v2777_v13, %s2361_s3  ;;  %1296 = vrot.lane.b32.xlu0 %v1285_v22, %s2356_s16 }
 0xe9d   :  { %1367 = vrot.lane.b32.xlu0 %v2773_v11, %s2361_s3 }
 0xea5   :  { %1373 = vrot.lane.b32.xlu0 %v2779_v14, %s2361_s3 }
 0xee7   :  { %v1295_v27 = vpop.permute.xlu2 %1294 }
 0xee8   :  { %v1304_v29 = vsel %vm218_vm9, %v2935_v19, %v1295_v27  ;;  %v1533_v27 = vld [vmem:[%s3394_s1 + $0x198] sm:$0xff] }
 0xee9   :  { %v1309_v30 = vsel %vm156_vm8, %v1304_v29, 0.0  ;;  %1534 = vmatpush.msrb.mxu1 %v1533_v27  ;;  %v1530_v29 = vld [vmem:[%s3394_s1 + $0x180] sm:$0xff] }
 0xeef   :  { %v1291_v24 = vpop.permute.xlu0 %1290  ;;  %v1372_v56 = vpop.permute.xlu2 %1371 }
 0xef0   :  { %v1302_v26 = vsel %vm218_vm9, %v2925_v15, %v1291_v24 }
 0xef1   :  { %v1306_v13 = vsel %vm156_vm8, %v1302_v26, 0.0 }
 0xef7   :  { %v1293_v23 = vpop.permute.xlu1 %1292 }
 0xef8   :  { %v1303_v25 = vsel %vm218_vm9, %v2930_v17, %v1293_v23 }
 0xef9   :  { %v1307_v28 = vsel %vm156_vm8, %v1303_v25, 0.0 }
 0xefa   :  { %v1308_v11 = vadd.f32 %v1307_v28, %v1306_v13  ;;  %v1532_v28 = vld [vmem:[%s3394_s1 + $0x190] sm:$0xff]  ;;  %v1531_v13 = vld [vmem:[%s3394_s1 + $0x188] sm:$0xff] }
 0xefb   :  { %1535 = vmatpush.msrb.mxu1 %v1532_v28 }
 0xefc   :  { %v1310_v31 = vadd.f32 %v1309_v30, %v1308_v11  ;;  %v1529_v11 = vld [vmem:[%s3394_s1 + $0x178] sm:$0xff]  ;;  %v1528_v30 = vld [vmem:[%s3394_s1 + $0x170] sm:$0xff] }
 0xefd   :  { %1536 = vmatpush.msrb.mxu1 %v1531_v13 }
 0xeff   :  { %1537 = vmatpush.msrb.mxu1 %v1530_v29 }
 0xf01   :  { %1538 = vmatpush.msrb.mxu1 %v1529_v11 }
 0xf03   :  { %1539 = vmatpush.msrb.mxu1 %v1528_v30 }
 0xf07   :  { %v1297_v14 = vpop.permute.xlu0 %1296 }
 0xf08   :  { %v1305_v32 = vsel %vm218_vm9, %v1279_v21, %v1297_v14 }
 0xf09   :  { %v1311_v33 = vsel %vm156_vm8, %v1305_v32, 0.0  ;;  %v1526_v32 = vld [vmem:[%s3394_s1 + $0x160] sm:$0xff] }
 0xf0a   :  { %v1312_v34 = vadd.f32 %v1311_v33, %v1310_v31  ;;  %v1527_v31 = vld [vmem:[%s3394_s1 + $0x168] sm:$0xff]  ;;  %v1525_v33 = vld [vmem:[%s3394_s1 + $0x158] sm:$0xff] }
 0xf0b   :  { %1540 = vmatpush.msrb.mxu1 %v1527_v31 }
 0xf0c   :  { %v1313_v35 = vrot.slane %v1312_v34, 4 }
 0xf0d   :  { %1541 = vmatpush.msrb.mxu1 %v1526_v32 }
 0xf0e   :  { %v1314_v40 = vadd.f32 %v1313_v35, %v1312_v34  ;;  %v1524_v34 = vld [vmem:[%s3394_s1 + $0x150] sm:$0xff]  ;;  %v1523_v35 = vld [vmem:[%s3394_s1 + $0x148] sm:$0xff] }
 0xf0f   :  { %1542 = vmatpush.msrb.mxu1 %v1525_v33 }
 0xf10   :  { %v1315_v41 = vrot.slane %v1314_v40, 2 }
 0xf11   :  { %1543 = vmatpush.msrb.mxu1 %v1524_v34 }
 0xf12   :  { %v1316_v42 = vadd.f32 %v1315_v41, %v1314_v40 }
 0xf13   :  { %1544 = vmatpush.msrb.mxu1 %v1523_v35 }
 0xf14   :  { %v1317_v43 = vrot.slane %v1316_v42, 1 }
 0xf16   :  { %v1318_v44 = vadd.f32 %v1317_v43, %v1316_v42  ;;  %v1522_v42 = vld [vmem:[%s3394_s1 + $0x140] sm:$0xff] }
 0xf17   :  { %1545 = vmatpush.msrb.mxu1 %v1522_v42 }
 0xf18   :  { %v1319_v38 = vmul.f32 0.03125, %v1318_v44  ;;  %v1521_v44 = vld [vmem:[%s3394_s1 + $0x138] sm:$0xff] }
 0xf19   :  { %1546 = vmatpush.msrb.mxu1 %v1521_v44 }
 0xf1a   :  { %v1320_v45 = vmul.f32 %v1319_v38, %v1319_v38  ;;  %v1329_v57 = vsub.f32 %v2925_v15, %v1319_v38  ;;  %v1330_v58 = vsub.f32 %v2930_v17, %v1319_v38  ;;  %v1331_v59 = vsub.f32 %v2935_v19, %v1319_v38 }
 0xf1b   :  { %v1332_v60 = vsub.f32 %v1279_v21, %v1319_v38 }
 0xf1c   :  { %1322 = vrot.lane.b32.xlu1 %v1320_v45, %s2356_s16  ;;  %v1519_v45 = vld [vmem:[%s3394_s1 + $0x128] sm:$0xff] }
 0xf24   :  { %1369 = vrot.lane.b32.xlu1 %v2775_v12, %s2361_s3  ;;  %v1368_v12 = vpop.permute.xlu0 %1367 }
 0xf2c   :  { %v1374_v16 = vpop.permute.xlu0 %1373 }
 0xf8e   :  { %v1323_v46 = vpop.permute.xlu1 %1322 }
 0xf8f   :  { %v1325_v36 = vsub.f32 %v1319_v38, %v1323_v46  ;;  %v1520_v38 = vld [vmem:[%s3394_s1 + $0x130] sm:$0xff] }
 0xf90   :  { %1547 = vmatpush.msrb.mxu1 %v1520_v38 }
 0xf91   :  { %v1326_v47 = vmax.f32 %v1325_v36, 0.0  ;;  %v1518_v36 = vld [vmem:[%s3394_s1 + $0x120] sm:$0xff] }
 0xf92   :  { %1548 = vmatpush.msrb.mxu1 %v1519_v45 }
 0xf93   :  { %v1333_v39 = vadd.f32 1e-05, %v1326_v47 }
 0xf94   :  { %1549 = vmatpush.msrb.mxu1 %v1518_v36 }
 0xf95   :  { %2311 = vrsqrt.f32 %v1333_v39  ;;  %vm1340_vm3 = vweird.f32 %v1333_v39 }
 0xf96   :  { %v1370_v17 = vpop.permute.xlu1 %1369 }
 0xf9b   :  { %v2312_v48 = vpop.eup %2311 }
 0xf9c   :  { %v1335_v49 = vmul.f32 %v2312_v48, %v1333_v39  ;;  %vm1341_vm2 = vweird.f32 %v2312_v48 }
 0xf9d   :  { %vm1342_vm14 = vmor %vm1340_vm3, %vm1341_vm2 }
 0xf9e   :  { %v1336_v50 = vmul.f32 %v2312_v48, %v1335_v49 }
 0xfa0   :  { %v1337_v51 = vmul.f32 0.5, %v1336_v50 }
 0xfa2   :  { %v1338_v52 = vsub.f32 1.5, %v1337_v51 }
 0xfa4   :  { %v1339_v53 = vmul.f32 %v2312_v48, %v1338_v52 }
 0xfa6   :  { %v1343_v54 = vsel %vm1342_vm14, %v2312_v48, %v1339_v53 }
 0xfa7   :  { %v1344_v55 = vperm.slane %v1343_v54, 0 }
 0xfa9   :  { %1346 = vrot.lane.b32.xlu2 %v1344_v55, %s2361_s3 }
0x1003   :  { %v1347_v62 = vpop.permute.xlu2 %1346 }
0x1004   :  { %v1349_v0 = vmul.f32 %v1347_v62, %v1329_v57  ;;  %v1350_v1 = vmul.f32 %v1347_v62, %v1330_v58  ;;  %v1351_v2 = vmul.f32 %v1347_v62, %v1331_v59  ;;  %v1352_v3 = vmul.f32 %v1347_v62, %v1332_v60 }
0x1006   :  { %v1354_v5 = vmul.f32 %v2290_v61, %v1349_v0  ;;  %v1355_v7 = vmul.f32 %v2290_v61, %v1350_v1  ;;  %v1356_v8 = vmul.f32 %v2290_v61, %v1351_v2  ;;  %v1357_v9 = vmul.f32 %v2290_v61, %v1352_v3 }
0x1008   :  { %v1359_v6 = vadd.f32 %v2291_v63, %v1354_v5  ;;  %v1360_v37 = vadd.f32 %v2291_v63, %v1355_v7  ;;  %v1361_v10 = vadd.f32 %v2291_v63, %v1356_v8  ;;  %v1362_v15 = vadd.f32 %v2291_v63, %v1357_v9 }
0x100a   :  { %v1379_v18 = vadd.f32 %v1368_v12, %v1359_v6  ;;  %v1380_v19 = vadd.f32 %v1370_v17, %v1360_v37  ;;  %v1381_v20 = vadd.f32 %v1372_v56, %v1361_v10  ;;  %v1382_v21 = vadd.f32 %v1374_v16, %v1362_v15 }
0x100c   :  { %v2971_v22 = vmax.f32 %v1379_v18, 0.0  ;;  %v2973_v23 = vmax.f32 %v1380_v19, 0.0  ;;  %v2975_v24 = vmax.f32 %v1381_v20, 0.0  ;;  %v2977_v25 = vmax.f32 %v1382_v21, 0.0 }
0x100e   :  { %1391 = vst.msk [vmem:[#allocation2 + $0xb] sm:$0xff] %vm218_vm9, %v2971_v22  ;;  %1401 = vrot.lane.b32.xlu2 %v2973_v23, %s2356_s16  ;;  %1415 = vrot.lane.b32.xlu0 %v2971_v22, %s2362_s8 }
0x100f   :  { %1392 = vst.msk [vmem:[#allocation2 + $0x13] sm:$0xff] %vm218_vm9, %v2973_v23  ;;  %1399 = vrot.lane.b32.xlu1 %v2971_v22, %s2356_s16 }
0x1010   :  { %1393 = vst.msk [vmem:[#allocation2 + $0x2b] sm:$0xff] %vm218_vm9, %v2975_v24 }
0x1011   :  { %1394 = vst.msk [vmem:[#allocation2 + $0x33] sm:$0xff] %vm218_vm9, %v2977_v25 }
0x1016   :  { %1431 = vrot.lane.b32.xlu2 %v2971_v22, %s2365_s12  ;;  %1433 = vrot.lane.b32.xlu0 %v2973_v23, %s2365_s12 }
0x1017   :  { %1417 = vrot.lane.b32.xlu1 %v2973_v23, %s2362_s8 }
0x101e   :  { %1449 = vrot.lane.b32.xlu2 %v2973_v23, %s2368_s7  ;;  %1463 = vrot.lane.b32.xlu0 %v2971_v22, %s2369_s27 }
0x101f   :  { %1447 = vrot.lane.b32.xlu1 %v2971_v22, %s2368_s7 }
0x1026   :  { %1480 = vrot.lane.b32.xlu2 %v2971_v22, %s2367_s29  ;;  %1482 = vrot.lane.b32.xlu0 %v2973_v23, %s2367_s29 }
0x1027   :  { %1465 = vrot.lane.b32.xlu1 %v2973_v23, %s2369_s27 }
0x102e   :  { %1499 = vrot.lane.b32.xlu2 %v2973_v23, %s2361_s3  ;;  %1403 = vrot.lane.b32.xlu0 %v2975_v24, %s2356_s16 }
0x102f   :  { %1497 = vrot.lane.b32.xlu1 %v2971_v22, %s2361_s3 }
0x1036   :  { %1419 = vrot.lane.b32.xlu2 %v2975_v24, %s2362_s8  ;;  %1421 = vrot.lane.b32.xlu0 %v2977_v25, %s2362_s8 }
0x1037   :  { %1405 = vrot.lane.b32.xlu1 %v2977_v25, %s2356_s16 }
0x103e   :  { %1437 = vrot.lane.b32.xlu2 %v2977_v25, %s2365_s12  ;;  %1451 = vrot.lane.b32.xlu0 %v2975_v24, %s2368_s7 }
0x103f   :  { %1435 = vrot.lane.b32.xlu1 %v2975_v24, %s2365_s12 }
0x1046   :  { %1467 = vrot.lane.b32.xlu2 %v2975_v24, %s2369_s27  ;;  %1469 = vrot.lane.b32.xlu0 %v2977_v25, %s2369_s27 }
0x1047   :  { %1453 = vrot.lane.b32.xlu1 %v2977_v25, %s2368_s7 }
0x104e   :  { %1486 = vrot.lane.b32.xlu2 %v2977_v25, %s2367_s29  ;;  %1501 = vrot.lane.b32.xlu0 %v2975_v24, %s2361_s3 }
0x104f   :  { %1484 = vrot.lane.b32.xlu1 %v2975_v24, %s2367_s29 }
0x1057   :  { %1503 = vrot.lane.b32.xlu1 %v2977_v25, %s2361_s3 }
0x1068   :  { %v1402_v26 = vpop.permute.xlu2 %1401 }
0x1069   :  { %1412 = vst.msk [vmem:[#allocation2 + $0x12] sm:$0xff] %vm989_vm1, %v1402_v26 }
0x1070   :  { %v1432_v14 = vpop.permute.xlu2 %1431 }
0x1078   :  { %v1450_v40 = vpop.permute.xlu2 %1449 }
0x1080   :  { %v1416_v41 = vpop.permute.xlu0 %1415  ;;  %v1481_v47 = vpop.permute.xlu2 %1480 }
0x1081   :  { %v1400_v43 = vpop.permute.xlu1 %1399 }
0x1082   :  { %1411 = vst.msk [vmem:[#allocation2 + $0xa] sm:$0xff] %vm989_vm1, %v1400_v43 }
0x1083   :  { %1427 = vst.msk [vmem:[#allocation2 + $0x9] sm:$0xff] %vm1006_vm4, %v1416_v41 }
0x1084   :  { %1443 = vst.msk [vmem:[#allocation2 + $0x8] sm:$0xff] %vm1023_vm5, %v1432_v14 }
0x1088   :  { %v1434_v46 = vpop.permute.xlu0 %1433  ;;  %v1500_v50 = vpop.permute.xlu2 %1499 }
0x1089   :  { %v1418_v39 = vpop.permute.xlu1 %1417 }
0x108a   :  { %1428 = vst.msk [vmem:[#allocation2 + $0x11] sm:$0xff] %vm1006_vm4, %v1418_v39 }
0x108b   :  { %1444 = vst.msk [vmem:[#allocation2 + $0x10] sm:$0xff] %vm1023_vm5, %v1434_v46 }
0x108c   :  { %1460 = vst.msk [vmem:[#allocation2 + $0xf] sm:$0xff] %vm1040_vm6, %v1450_v40 }
0x1090   :  { %v1464_v48 = vpop.permute.xlu0 %1463  ;;  %v1420_v53 = vpop.permute.xlu2 %1419 }
0x1091   :  { %v1448_v49 = vpop.permute.xlu1 %1447 }
0x1092   :  { %1459 = vst.msk [vmem:[#allocation2 + $0x7] sm:$0xff] %vm1040_vm6, %v1448_v49 }
0x1093   :  { %1476 = vst.msk [vmem:[#allocation2 + $0x6] sm:$0xff] %vm1475_vm15, %v1464_v48 }
0x1094   :  { %1493 = vst.msk [vmem:[#allocation2 + $0x5] sm:$0xff] %vm1492_vm0, %v1481_v47 }
0x1098   :  { %v1483_v51 = vpop.permute.xlu0 %1482  ;;  %v1438_v12 = vpop.permute.xlu2 %1437 }
0x1099   :  { %v1466_v52 = vpop.permute.xlu1 %1465 }
0x109a   :  { %1477 = vst.msk [vmem:[#allocation2 + $0xe] sm:$0xff] %vm1475_vm15, %v1466_v52 }
0x109b   :  { %1494 = vst.msk [vmem:[#allocation2 + $0xd] sm:$0xff] %vm1492_vm0, %v1483_v51 }
0x109c   :  { %1511 = vst.msk [vmem:[#allocation2 + $0xc] sm:$0xff] %vm1509_vm10, %v1500_v50 }
0x10a0   :  { %v1404_v54 = vpop.permute.xlu0 %1403  ;;  %v1468_v61 = vpop.permute.xlu2 %1467 }
0x10a1   :  { %v1498_v55 = vpop.permute.xlu1 %1497  ;;  %1413 = vst.msk [vmem:[#allocation2 + $0x2a] sm:$0xff] %vm989_vm1, %v1404_v54 }
0x10a2   :  { %1510 = vst.msk [vmem:[#allocation2 + $0x4] sm:$0xff] %vm1509_vm10, %v1498_v55 }
0x10a3   :  { %1429 = vst.msk [vmem:[#allocation2 + $0x29] sm:$0xff] %vm1006_vm4, %v1420_v53  ;;  %v1515_v56 = vld [vmem:[#allocation2 + $0x10] sm:$0xff] }
0x10a4   :  { %1730 = vst [vmem:[#allocation2 + $0x10] sm:$0xff] %v2360_v4 }
0x10a8   :  { %v1422_v57 = vpop.permute.xlu0 %1421  ;;  %v1487_v1 = vpop.permute.xlu2 %1486 }
0x10a9   :  { %v1406_v58 = vpop.permute.xlu1 %1405  ;;  %v1514_v59 = vld [vmem:[#allocation2 + $0x8] sm:$0xff] }
0x10aa   :  { %1414 = vst.msk [vmem:[#allocation2 + $0x32] sm:$0xff] %vm989_vm1, %v1406_v58  ;;  %1550 = vmatmul.f32.vlgmr.msrb.gmra.mxu1 %v1514_v59  ;;  %v2292_v59 = vld [vmem:[%s3394_s1 + $0x23c] ss:$0 sm:$0xff] }
0x10ab   :  { %1430 = vst.msk [vmem:[#allocation2 + $0x31] sm:$0xff] %vm1006_vm4, %v1422_v57 }
0x10ac   :  { %1446 = vst.msk [vmem:[#allocation2 + $0x30] sm:$0xff] %vm1023_vm5, %v1438_v12 }
0x10ad   :  { %1729 = vst [vmem:[#allocation2 + $0x8] sm:$0xff] %v2360_v4 }
0x10b0   :  { %v1452_v60 = vpop.permute.xlu0 %1451 }
0x10b1   :  { %v1436_v62 = vpop.permute.xlu1 %1435 }
0x10b2   :  { %1445 = vst.msk [vmem:[#allocation2 + $0x28] sm:$0xff] %vm1023_vm5, %v1436_v62  ;;  %1553 = vmatmul.f32.gmra.mxu1 %v1515_v56 }
0x10b3   :  { %1461 = vst.msk [vmem:[#allocation2 + $0x27] sm:$0xff] %vm1040_vm6, %v1452_v60 }
0x10b4   :  { %1478 = vst.msk [vmem:[#allocation2 + $0x26] sm:$0xff] %vm1475_vm15, %v1468_v61  ;;  %v2293_v61 = vld [vmem:[%s3394_s1 + $0x23d] ss:$0 sm:$0xff] }
0x10b8   :  { %v1470_v63 = vpop.permute.xlu0 %1469 }
0x10b9   :  { %v1454_v0 = vpop.permute.xlu1 %1453 }
0x10ba   :  { %1462 = vst.msk [vmem:[#allocation2 + $0x2f] sm:$0xff] %vm1040_vm6, %v1454_v0 }
0x10bb   :  { %1479 = vst.msk [vmem:[#allocation2 + $0x2e] sm:$0xff] %vm1475_vm15, %v1470_v63 }
0x10bc   :  { %1496 = vst.msk [vmem:[#allocation2 + $0x2d] sm:$0xff] %vm1492_vm0, %v1487_v1 }
0x10c0   :  { %v1502_v2 = vpop.permute.xlu0 %1501 }
0x10c1   :  { %v1485_v3 = vpop.permute.xlu1 %1484 }
0x10c2   :  { %1495 = vst.msk [vmem:[#allocation2 + $0x25] sm:$0xff] %vm1492_vm0, %v1485_v3  ;;  %vm2162_vm0 = vcmask 1041409  }
0x10c3   :  { %1512 = vst.msk [vmem:[#allocation2 + $0x24] sm:$0xff] %vm1509_vm10, %v1502_v2 }
0x10c9   :  { %v1504_v5 = vpop.permute.xlu1 %1503 }
0x10ca   :  { %1513 = vst.msk [vmem:[#allocation2 + $0x2c] sm:$0xff] %vm1509_vm10, %v1504_v5  ;;  %vm2186_vm10 = vcmask 33792  }
0x10d1   :  { %v1516_v7 = vld [vmem:[#allocation2 + $0x28] sm:$0xff]  ;;  %v1517_v8 = vld [vmem:[#allocation2 + $0x30] sm:$0xff] }
0x10d2   :  { %1556 = vmatmul.f32.gmra.mxu1 %v1516_v7  ;;  %1731 = vst [vmem:[#allocation2 + $0x28] sm:$0xff] %v2360_v4 }
0x10d3   :  { %1732 = vst [vmem:[#allocation2 + $0x30] sm:$0xff] %v2360_v4 }
0x10da   :  { %1559 = vmatmul.f32.gmra.mxu1 %v1517_v8 }
0x1127   :  { %v1551_v9 = vpop.f32.mrf.mxu1 }
0x1128   :  { %v1563_v6 = vmul.f32 %v1551_v9, %v1551_v9 }
0x112a   :  { %1571 = vrot.lane.b32.xlu2 %v1563_v6, %s2356_s16 }
0x112f   :  { %v1554_v37 = vpop.f32.mrf.mxu1 }
0x1130   :  { %v1564_v10 = vmul.f32 %v1554_v37, %v1554_v37 }
0x1132   :  { %1573 = vrot.lane.b32.xlu0 %v1564_v10, %s2356_s16 }
0x114f   :  { %v1557_v15 = vpop.f32.mrf.mxu1 }
0x1150   :  { %v1565_v16 = vmul.f32 %v1557_v15, %v1557_v15 }
0x1152   :  { %1575 = vrot.lane.b32.xlu1 %v1565_v16, %s2356_s16 }
0x1157   :  { %v1560_v17 = vpop.f32.mrf.mxu1 }
0x1158   :  { %v1566_v18 = vmul.f32 %v1560_v17, %v1560_v17 }
0x115a   :  { %1577 = vrot.lane.b32.xlu2 %v1566_v18, %s2356_s16  ;;  %v1818_v18 = vld [vmem:[%s3394_s1 + $0x1e8] sm:$0xff] }
0x115b   :  { %1837 = vmatpush.msrb.mxu3 %v1818_v18 }
0x1184   :  { %v1572_v19 = vpop.permute.xlu2 %1571 }
0x1185   :  { %v1583_v26 = vsel %vm218_vm9, %v1551_v9, %v1572_v19  ;;  %v1817_v19 = vld [vmem:[%s3394_s1 + $0x1e0] sm:$0xff] }
0x1186   :  { %v1587_v13 = vsel %vm156_vm8, %v1583_v26, 0.0  ;;  %1838 = vmatpush.msrb.mxu3 %v1817_v19  ;;  %v1814_v26 = vld [vmem:[%s3394_s1 + $0x1c8] sm:$0xff] }
0x11a4   :  { %v1574_v20 = vpop.permute.xlu0 %1573 }
0x11a5   :  { %v1584_v21 = vsel %vm218_vm9, %v1554_v37, %v1574_v20  ;;  %v1816_v20 = vld [vmem:[%s3394_s1 + $0x1d8] sm:$0xff] }
0x11a6   :  { %v1588_v27 = vsel %vm156_vm8, %v1584_v21, 0.0  ;;  %v1815_v21 = vld [vmem:[%s3394_s1 + $0x1d0] sm:$0xff]  ;;  %1839 = vmatpush.msrb.mxu3 %v1816_v20 }
0x11a7   :  { %v1589_v11 = vadd.f32 %v1588_v27, %v1587_v13  ;;  %v1812_v13 = vld [vmem:[%s3394_s1 + $0x1b8] sm:$0xff] }
0x11a8   :  { %1840 = vmatpush.msrb.mxu3 %v1815_v21 }
0x11aa   :  { %1841 = vmatpush.msrb.mxu3 %v1814_v26 }
0x11b4   :  { %v1578_v28 = vpop.permute.xlu2 %1577 }
0x11b5   :  { %v1586_v30 = vsel %vm218_vm9, %v1560_v17, %v1578_v28  ;;  %v1813_v28 = vld [vmem:[%s3394_s1 + $0x1c0] sm:$0xff] }
0x11b6   :  { %v1592_v33 = vsel %vm156_vm8, %v1586_v30, 0.0  ;;  %1842 = vmatpush.msrb.mxu3 %v1813_v28  ;;  %v1810_v30 = vld [vmem:[%s3394_s1 + $0x1a8] sm:$0xff] }
0x11b8   :  { %1843 = vmatpush.msrb.mxu3 %v1812_v13 }
0x11c4   :  { %v1576_v29 = vpop.permute.xlu1 %1575 }
0x11c5   :  { %v1585_v14 = vsel %vm218_vm9, %v1557_v15, %v1576_v29 }
0x11c6   :  { %v1590_v31 = vsel %vm156_vm8, %v1585_v14, 0.0  ;;  %v1809_v14 = vld [vmem:[%s3394_s1 + $0x1a0] sm:$0xff] }
0x11c7   :  { %v1591_v32 = vadd.f32 %v1590_v31, %v1589_v11  ;;  %v1811_v11 = vld [vmem:[%s3394_s1 + $0x1b0] sm:$0xff] }
0x11c8   :  { %1844 = vmatpush.msrb.mxu3 %v1811_v11 }
0x11c9   :  { %v1593_v34 = vadd.f32 %v1592_v33, %v1591_v32 }
0x11ca   :  { %1845 = vmatpush.msrb.mxu3 %v1810_v30 }
0x11cb   :  { %v1594_v35 = vrot.slane %v1593_v34, 4 }
0x11cc   :  { %1846 = vmatpush.msrb.mxu3 %v1809_v14 }
0x11cd   :  { %v1595_v40 = vadd.f32 %v1594_v35, %v1593_v34 }
0x11cf   :  { %v1596_v41 = vrot.slane %v1595_v40, 2 }
0x11d1   :  { %v1597_v42 = vadd.f32 %v1596_v41, %v1595_v40 }
0x11d3   :  { %v1598_v43 = vrot.slane %v1597_v42, 1 }
0x11d5   :  { %v1599_v44 = vadd.f32 %v1598_v43, %v1597_v42 }
0x11d7   :  { %v1600_v38 = vmul.f32 0.03125, %v1599_v44 }
0x11d9   :  { %v1601_v45 = vmul.f32 %v1600_v38, %v1600_v38  ;;  %v1610_v56 = vsub.f32 %v1551_v9, %v1600_v38  ;;  %v1611_v12 = vsub.f32 %v1554_v37, %v1600_v38  ;;  %v1612_v57 = vsub.f32 %v1557_v15, %v1600_v38 }
0x11da   :  { %v1613_v58 = vsub.f32 %v1560_v17, %v1600_v38 }
0x11db   :  { %1603 = vrot.lane.b32.xlu0 %v1601_v45, %s2356_s16 }
0x124d   :  { %v1604_v46 = vpop.permute.xlu0 %1603 }
0x124e   :  { %v1606_v36 = vsub.f32 %v1600_v38, %v1604_v46 }
0x1250   :  { %v1607_v47 = vmax.f32 %v1606_v36, 0.0 }
0x1252   :  { %v1614_v39 = vadd.f32 1e-05, %v1607_v47 }
0x1254   :  { %2313 = vrsqrt.f32 %v1614_v39  ;;  %vm1621_vm12 = vweird.f32 %v1614_v39 }
0x125a   :  { %v2314_v48 = vpop.eup %2313 }
0x125b   :  { %v1616_v49 = vmul.f32 %v2314_v48, %v1614_v39  ;;  %vm1622_vm11 = vweird.f32 %v2314_v48 }
0x125c   :  { %vm1623_vm2 = vmor %vm1621_vm12, %vm1622_vm11 }
0x125d   :  { %v1617_v50 = vmul.f32 %v2314_v48, %v1616_v49 }
0x125f   :  { %v1618_v51 = vmul.f32 0.5, %v1617_v50 }
0x1261   :  { %v1619_v52 = vsub.f32 1.5, %v1618_v51 }
0x1263   :  { %v1620_v53 = vmul.f32 %v2314_v48, %v1619_v52 }
0x1265   :  { %v1624_v54 = vsel %vm1623_vm2, %v2314_v48, %v1620_v53 }
0x1266   :  { %v1625_v55 = vperm.slane %v1624_v54, 0 }
0x1268   :  { %1627 = vrot.lane.b32.xlu1 %v1625_v55, %s2361_s3 }
0x12da   :  { %v1628_v60 = vpop.permute.xlu1 %1627 }
0x12db   :  { %v1630_v62 = vmul.f32 %v1628_v60, %v1610_v56  ;;  %v1631_v63 = vmul.f32 %v1628_v60, %v1611_v12  ;;  %v1632_v0 = vmul.f32 %v1628_v60, %v1612_v57  ;;  %v1633_v1 = vmul.f32 %v1628_v60, %v1613_v58 }
0x12dd   :  { %v1635_v2 = vmul.f32 %v2292_v59, %v1630_v62  ;;  %v1636_v3 = vmul.f32 %v2292_v59, %v1631_v63  ;;  %v1637_v5 = vmul.f32 %v2292_v59, %v1632_v0  ;;  %v1638_v7 = vmul.f32 %v2292_v59, %v1633_v1 }
0x12df   :  { %v1640_v8 = vadd.f32 %v2293_v61, %v1635_v2  ;;  %v1641_v9 = vadd.f32 %v2293_v61, %v1636_v3  ;;  %v1642_v6 = vadd.f32 %v2293_v61, %v1637_v5  ;;  %v1643_v37 = vadd.f32 %v2293_v61, %v1638_v7 }
0x12e1   :  { %v1644_v10 = vmax.f32 %v1640_v8, 0.0  ;;  %v1645_v15 = vmax.f32 %v1641_v9, 0.0  ;;  %v1646_v16 = vmax.f32 %v1642_v6, 0.0  ;;  %v1647_v17 = vmax.f32 %v1643_v37, 0.0 }
0x12e3   :  { %1733 = vst.msk [vmem:[#allocation2 + $0xa] sm:$0xff] %vm218_vm9, %v1644_v10  ;;  %1743 = vrot.lane.b32.xlu0 %v1645_v15, %s2356_s16  ;;  %1757 = vrot.lane.b32.xlu1 %v1644_v10, %s2362_s8 }
0x12e4   :  { %1734 = vst.msk [vmem:[#allocation2 + $0x12] sm:$0xff] %vm218_vm9, %v1645_v15  ;;  %1741 = vrot.lane.b32.xlu2 %v1644_v10, %s2356_s16 }
0x12e5   :  { %1735 = vst.msk [vmem:[#allocation2 + $0x2a] sm:$0xff] %vm218_vm9, %v1646_v16 }
0x12e6   :  { %1736 = vst.msk [vmem:[#allocation2 + $0x32] sm:$0xff] %vm218_vm9, %v1647_v17 }
0x12eb   :  { %1773 = vrot.lane.b32.xlu0 %v1644_v10, %s2365_s12  ;;  %1775 = vrot.lane.b32.xlu1 %v1645_v15, %s2365_s12 }
0x12ec   :  { %1759 = vrot.lane.b32.xlu2 %v1645_v15, %s2362_s8 }
0x12f3   :  { %1791 = vrot.lane.b32.xlu0 %v1645_v15, %s2368_s7  ;;  %1745 = vrot.lane.b32.xlu1 %v1646_v16, %s2356_s16 }
0x12f4   :  { %1789 = vrot.lane.b32.xlu2 %v1644_v10, %s2368_s7 }
0x12fb   :  { %1761 = vrot.lane.b32.xlu0 %v1646_v16, %s2362_s8  ;;  %1763 = vrot.lane.b32.xlu1 %v1647_v17, %s2362_s8 }
0x12fc   :  { %1747 = vrot.lane.b32.xlu2 %v1647_v17, %s2356_s16 }
0x1303   :  { %1779 = vrot.lane.b32.xlu0 %v1647_v17, %s2365_s12  ;;  %1793 = vrot.lane.b32.xlu1 %v1646_v16, %s2368_s7 }
0x1304   :  { %1777 = vrot.lane.b32.xlu2 %v1646_v16, %s2365_s12 }
0x130c   :  { %1795 = vrot.lane.b32.xlu2 %v1647_v17, %s2368_s7 }
0x133e   :  { %v1742_v27 = vpop.permute.xlu2 %1741 }
0x133f   :  { %1753 = vst.msk [vmem:[#allocation2 + $0x9] sm:$0xff] %vm989_vm1, %v1742_v27 }
0x1346   :  { %v1760_v29 = vpop.permute.xlu2 %1759 }
0x134e   :  { %v1790_v31 = vpop.permute.xlu2 %1789 }
0x1355   :  { %v1744_v32 = vpop.permute.xlu0 %1743  ;;  %v1758_v33 = vpop.permute.xlu1 %1757 }
0x1356   :  { %1754 = vst.msk [vmem:[#allocation2 + $0x11] sm:$0xff] %vm989_vm1, %v1744_v32  ;;  %v1748_v34 = vpop.permute.xlu2 %1747 }
0x1357   :  { %1770 = vst.msk [vmem:[#allocation2 + $0x10] sm:$0xff] %vm1006_vm4, %v1760_v29 }
0x1358   :  { %1769 = vst.msk [vmem:[#allocation2 + $0x8] sm:$0xff] %vm1006_vm4, %v1758_v33 }
0x1359   :  { %1756 = vst.msk [vmem:[#allocation2 + $0x31] sm:$0xff] %vm989_vm1, %v1748_v34 }
0x135d   :  { %v1774_v35 = vpop.permute.xlu0 %1773  ;;  %v1776_v40 = vpop.permute.xlu1 %1775 }
0x135e   :  { %1785 = vst.msk [vmem:[#allocation2 + $0x7] sm:$0xff] %vm1023_vm5, %v1774_v35  ;;  %v1778_v43 = vpop.permute.xlu2 %1777 }
0x135f   :  { %1801 = vst.msk [vmem:[#allocation2 + $0x6] sm:$0xff] %vm1040_vm6, %v1790_v31 }
0x1360   :  { %1786 = vst.msk [vmem:[#allocation2 + $0xf] sm:$0xff] %vm1023_vm5, %v1776_v40  ;;  %v2294_v40 = vld [vmem:[%s3394_s1 + $0x23e] ss:$0 sm:$0xff] }
0x1365   :  { %v1792_v41 = vpop.permute.xlu0 %1791  ;;  %v1746_v42 = vpop.permute.xlu1 %1745 }
0x1366   :  { %1802 = vst.msk [vmem:[#allocation2 + $0xe] sm:$0xff] %vm1040_vm6, %v1792_v41  ;;  %v1796_v39 = vpop.permute.xlu2 %1795 }
0x1367   :  { %1755 = vst.msk [vmem:[#allocation2 + $0x29] sm:$0xff] %vm989_vm1, %v1746_v42 }
0x136d   :  { %v1762_v44 = vpop.permute.xlu0 %1761  ;;  %v1764_v38 = vpop.permute.xlu1 %1763  ;;  %v1805_v45 = vld [vmem:[#allocation2 + $0x8] sm:$0xff]  ;;  %v1806_v46 = vld [vmem:[#allocation2 + $0x10] sm:$0xff] }
0x136e   :  { %1771 = vst.msk [vmem:[#allocation2 + $0x28] sm:$0xff] %vm1006_vm4, %v1762_v44  ;;  %2240 = vmatmul.msk.f32.vlgmr.msrb.gmra.mxu3 %vm1059_vm7, %v1805_v45  ;;  %v2295_v45 = vld [vmem:[%s3394_s1 + $0x23f] ss:$0 sm:$0xff] }
0x136f   :  { %1787 = vst.msk [vmem:[#allocation2 + $0x27] sm:$0xff] %vm1023_vm5, %v1778_v43 }
0x1370   :  { %1772 = vst.msk [vmem:[#allocation2 + $0x30] sm:$0xff] %vm1006_vm4, %v1764_v38 }
0x1371   :  { %1945 = vst [vmem:[#allocation2 + $0x8] sm:$0xff] %v2360_v4 }
0x1372   :  { %1946 = vst [vmem:[#allocation2 + $0x10] sm:$0xff] %v2360_v4 }
0x1375   :  { %v1780_v36 = vpop.permute.xlu0 %1779  ;;  %v1794_v47 = vpop.permute.xlu1 %1793 }
0x1376   :  { %1788 = vst.msk [vmem:[#allocation2 + $0x2f] sm:$0xff] %vm1023_vm5, %v1780_v36  ;;  %2241 = vmatmul.msk.f32.gmra.mxu3 %vm1059_vm7, %v1806_v46 }
0x1377   :  { %1804 = vst.msk [vmem:[#allocation2 + $0x2e] sm:$0xff] %vm1040_vm6, %v1796_v39 }
0x1378   :  { %1803 = vst.msk [vmem:[#allocation2 + $0x26] sm:$0xff] %vm1040_vm6, %v1794_v47 }
0x137e   :  { %v1808_v48 = vld [vmem:[#allocation2 + $0x30] sm:$0xff] }
0x137f   :  { %v1807_v49 = vld [vmem:[#allocation2 + $0x28] sm:$0xff]  ;;  %1948 = vst [vmem:[#allocation2 + $0x30] sm:$0xff] %v2360_v4 }
0x1380   :  { %2242 = vmatmul.msk.f32.gmra.mxu3 %vm1059_vm7, %v1807_v49  ;;  %1947 = vst [vmem:[#allocation2 + $0x28] sm:$0xff] %v2360_v4 }
0x1388   :  { %2243 = vmatmul.msk.f32.gmra.mxu3 %vm1059_vm7, %v1808_v48 }
0x13f1   :  { %v1848_v50 = vpop.f32.mrf.mxu3 }
0x13f2   :  { %v1860_v51 = vmul.f32 %v1848_v50, %v1848_v50 }
0x13f4   :  { %1868 = vrot.lane.b32.xlu0 %v1860_v51, %s2356_s16 }
0x13f9   :  { %v1851_v52 = vpop.f32.mrf.mxu3 }
0x13fa   :  { %v1861_v53 = vmul.f32 %v1851_v52, %v1851_v52 }
0x13fc   :  { %1870 = vrot.lane.b32.xlu1 %v1861_v53, %s2356_s16 }
0x1403   :  { %v1854_v54 = vpop.f32.mrf.mxu3 }
0x1404   :  { %v1862_v55 = vmul.f32 %v1854_v54, %v1854_v54 }
0x1406   :  { %1872 = vrot.lane.b32.xlu2 %v1862_v55, %s2356_s16 }
0x140b   :  { %v1857_v56 = vpop.f32.mrf.mxu3 }
0x140c   :  { %v1863_v12 = vmul.f32 %v1857_v56, %v1857_v56 }
0x140e   :  { %1874 = vrot.lane.b32.xlu0 %v1863_v12, %s2356_s16  ;;  %v1649_v12 = vmul.f32 %v2973_v23, %v2973_v23 }
0x1460   :  { %v1873_v60 = vpop.permute.xlu2 %1872 }
0x1461   :  { %v1882_v63 = vsel %vm218_vm9, %v1854_v54, %v1873_v60  ;;  %v1995_v60 = vld [vmem:[%s3394_s1 + $0x200] sm:$0xff] }
0x1462   :  { %v1887_v1 = vsel %vm156_vm8, %v1882_v63, 0.0  ;;  %v1993_v63 = vld [vmem:[%s3394_s1 + $0x1f0] sm:$0xff] }
0x1466   :  { %v1869_v4 = vpop.permute.xlu0 %1868 }
0x1467   :  { %v1880_v59 = vsel %vm218_vm9, %v1848_v50, %v1869_v4  ;;  %v1998_v4 = vld [vmem:[%s3394_s1 + $0x218] sm:$0xff] }
0x1468   :  { %v1884_v62 = vsel %vm156_vm8, %v1880_v59, 0.0  ;;  %2250 = vmatpush.msra.mxu2 %v1998_v4  ;;  %2021 = vmatpush.msra.mxu0 %v1998_v4  ;;  %v1996_v59 = vld [vmem:[%s3394_s1 + $0x208] sm:$0xff] }
0x1469   :  { %2249 = vmatpush.msra.mxu1 %v1998_v4 }
0x146e   :  { %v1871_v57 = vpop.permute.xlu1 %1870 }
0x146f   :  { %v1881_v58 = vsel %vm218_vm9, %v1851_v52, %v1871_v57  ;;  %v1650_v57 = vmul.f32 %v2975_v24, %v2975_v24 }
0x1470   :  { %v1885_v61 = vsel %vm156_vm8, %v1881_v58, 0.0  ;;  %v1997_v58 = vld [vmem:[%s3394_s1 + $0x210] sm:$0xff] }
0x1471   :  { %v1886_v0 = vadd.f32 %v1885_v61, %v1884_v62  ;;  %2252 = vmatpush.msra.mxu2 %v1997_v58  ;;  %2022 = vmatpush.msra.mxu0 %v1997_v58  ;;  %v1994_v62 = vld [vmem:[%s3394_s1 + $0x1f8] sm:$0xff] }
0x1472   :  { %2251 = vmatpush.msra.mxu1 %v1997_v58 }
0x1473   :  { %v1888_v3 = vadd.f32 %v1887_v1, %v1886_v0  ;;  %2254 = vmatpush.msra.mxu2 %v1996_v59  ;;  %2023 = vmatpush.msra.mxu0 %v1996_v59 }
0x1474   :  { %2253 = vmatpush.msra.mxu1 %v1996_v59 }
0x1475   :  { %2256 = vmatpush.msra.mxu2 %v1995_v60  ;;  %2024 = vmatpush.msra.mxu0 %v1995_v60 }
0x1476   :  { %2255 = vmatpush.msra.mxu1 %v1995_v60 }
0x1477   :  { %2258 = vmatpush.msra.mxu2 %v1994_v62  ;;  %2025 = vmatpush.msra.mxu0 %v1994_v62 }
0x1478   :  { %2257 = vmatpush.msra.mxu1 %v1994_v62 }
0x1479   :  { %2260 = vmatpush.msra.mxu2 %v1993_v63  ;;  %2026 = vmatpush.msra.mxu0 %v1993_v63 }
0x147a   :  { %2259 = vmatpush.msra.mxu1 %v1993_v63 }
0x1480   :  { %v1875_v2 = vpop.permute.xlu0 %1874 }
0x1481   :  { %v1883_v5 = vsel %vm218_vm9, %v1857_v56, %v1875_v2 }
0x1482   :  { %v1889_v7 = vsel %vm156_vm8, %v1883_v5, 0.0 }
0x1483   :  { %v1890_v8 = vadd.f32 %v1889_v7, %v1888_v3 }
0x1485   :  { %v1891_v9 = vrot.slane %v1890_v8, 4 }
0x1487   :  { %v1892_v6 = vadd.f32 %v1891_v9, %v1890_v8 }
0x1489   :  { %v1893_v37 = vrot.slane %v1892_v6, 2 }
0x148b   :  { %v1894_v10 = vadd.f32 %v1893_v37, %v1892_v6 }
0x148d   :  { %v1895_v15 = vrot.slane %v1894_v10, 1 }
0x148f   :  { %v1896_v16 = vadd.f32 %v1895_v15, %v1894_v10 }
0x1491   :  { %v1897_v17 = vmul.f32 0.03125, %v1896_v16 }
0x1493   :  { %v1898_v18 = vmul.f32 %v1897_v17, %v1897_v17  ;;  %v1907_v32 = vsub.f32 %v1848_v50, %v1897_v17  ;;  %v1908_v33 = vsub.f32 %v1851_v52, %v1897_v17  ;;  %v1909_v34 = vsub.f32 %v1854_v54, %v1897_v17 }
0x1494   :  { %v1910_v35 = vsub.f32 %v1857_v56, %v1897_v17  ;;  %v1648_v56 = vmul.f32 %v2971_v22, %v2971_v22 }
0x1495   :  { %1900 = vrot.lane.b32.xlu1 %v1898_v18, %s2356_s16 }
0x1507   :  { %v1901_v19 = vpop.permute.xlu1 %1900 }
0x1508   :  { %v1903_v20 = vsub.f32 %v1897_v17, %v1901_v19 }
0x150a   :  { %v1904_v21 = vmax.f32 %v1903_v20, 0.0 }
0x150c   :  { %v1911_v26 = vadd.f32 1e-05, %v1904_v21 }
0x150e   :  { %2315 = vrsqrt.f32 %v1911_v26  ;;  %vm1918_vm6 = vweird.f32 %v1911_v26 }
0x1514   :  { %v2316_v27 = vpop.eup %2315 }
0x1515   :  { %v1913_v28 = vmul.f32 %v2316_v27, %v1911_v26  ;;  %vm1919_vm5 = vweird.f32 %v2316_v27  ;;  %v1651_v26 = vmul.f32 %v2977_v25, %v2977_v25 }
0x1516   :  { %vm1920_vm7 = vmor %vm1918_vm6, %vm1919_vm5 }
0x1517   :  { %v1914_v13 = vmul.f32 %v2316_v27, %v1913_v28 }
0x1519   :  { %v1915_v29 = vmul.f32 0.5, %v1914_v13 }
0x151b   :  { %v1916_v11 = vsub.f32 1.5, %v1915_v29 }
0x151d   :  { %v1917_v30 = vmul.f32 %v2316_v27, %v1916_v11 }
0x151f   :  { %v1921_v14 = vsel %vm1920_vm7, %v2316_v27, %v1917_v30 }
0x1520   :  { %v1922_v31 = vperm.slane %v1921_v14, 0 }
0x1522   :  { %1924 = vrot.lane.b32.xlu2 %v1922_v31, %s2361_s3 }
0x157c   :  { %v1925_v41 = vpop.permute.xlu2 %1924 }
0x157d   :  { %v1927_v42 = vmul.f32 %v1925_v41, %v1907_v32  ;;  %v1928_v43 = vmul.f32 %v1925_v41, %v1908_v33  ;;  %v1929_v44 = vmul.f32 %v1925_v41, %v1909_v34  ;;  %v1930_v38 = vmul.f32 %v1925_v41, %v1910_v35 }
0x157f   :  { %v1932_v46 = vmul.f32 %v2294_v40, %v1927_v42  ;;  %v1933_v36 = vmul.f32 %v2294_v40, %v1928_v43  ;;  %v1934_v47 = vmul.f32 %v2294_v40, %v1929_v44  ;;  %v1935_v39 = vmul.f32 %v2294_v40, %v1930_v38 }
0x1581   :  { %v1940_v48 = vadd.f32 %v2295_v45, %v1935_v39  ;;  %v1939_v49 = vadd.f32 %v2295_v45, %v1934_v47  ;;  %v1938_v50 = vadd.f32 %v2295_v45, %v1933_v36  ;;  %v1937_v51 = vadd.f32 %v2295_v45, %v1932_v46 }
0x1583   :  { %v1944_v52 = vmax.f32 %v1940_v48, 0.0  ;;  %v1943_v53 = vmax.f32 %v1939_v49, 0.0  ;;  %v1942_v54 = vmax.f32 %v1938_v50, 0.0  ;;  %v1941_v55 = vmax.f32 %v1937_v51, 0.0 }
0x1585   :  { %1963 = vrot.lane.b32.xlu1 %v1944_v52, %s2356_s16  ;;  %1952 = vst.msk [vmem:[#allocation2 + $0x31] sm:$0xff] %vm218_vm9, %v1944_v52  ;;  %1977 = vrot.lane.b32.xlu2 %v1943_v53, %s2362_s8 }
0x1586   :  { %1951 = vst.msk [vmem:[#allocation2 + $0x29] sm:$0xff] %vm218_vm9, %v1943_v53  ;;  %1961 = vrot.lane.b32.xlu0 %v1943_v53, %s2356_s16 }
0x1587   :  { %1950 = vst.msk [vmem:[#allocation2 + $0x11] sm:$0xff] %vm218_vm9, %v1942_v54 }
0x1588   :  { %1949 = vst.msk [vmem:[#allocation2 + $0x9] sm:$0xff] %vm218_vm9, %v1941_v55 }
0x158d   :  { %1959 = vrot.lane.b32.xlu2 %v1942_v54, %s2356_s16  ;;  %1957 = vrot.lane.b32.xlu1 %v1941_v55, %s2356_s16 }
0x158e   :  { %1979 = vrot.lane.b32.xlu0 %v1944_v52, %s2362_s8 }
0x1595   :  { %1656 = vrot.lane.b32.xlu2 %v1648_v56, %s2356_s16  ;;  %1975 = vrot.lane.b32.xlu1 %v1942_v54, %s2362_s8 }
0x1596   :  { %1973 = vrot.lane.b32.xlu0 %v1941_v55, %s2362_s8 }
0x159e   :  { %1658 = vrot.lane.b32.xlu0 %v1649_v12, %s2356_s16 }
0x15a6   :  { %1660 = vrot.lane.b32.xlu0 %v1650_v57, %s2356_s16 }
0x15df   :  { %v1978_v61 = vpop.permute.xlu2 %1977 }
0x15e7   :  { %v1960_v0 = vpop.permute.xlu2 %1959 }
0x15e8   :  { %1970 = vst.msk [vmem:[#allocation2 + $0x10] sm:$0xff] %vm989_vm1, %v1960_v0 }
0x15ef   :  { %v1657_v13 = vpop.permute.xlu2 %1656 }
0x15f0   :  { %v1668_v14 = vsel %vm218_vm9, %v2971_v22, %v1657_v13 }
0x15f1   :  { %v1672_v33 = vsel %vm156_vm8, %v1668_v14, 0.0 }
0x15f7   :  { %v1964_v1 = vpop.permute.xlu1 %1963 }
0x15f8   :  { %1972 = vst.msk [vmem:[#allocation2 + $0x30] sm:$0xff] %vm989_vm1, %v1964_v1  ;;  %v1962_v2 = vpop.permute.xlu0 %1961 }
0x15f9   :  { %1971 = vst.msk [vmem:[#allocation2 + $0x28] sm:$0xff] %vm989_vm1, %v1962_v2 }
0x15fa   :  { %1987 = vst.msk [vmem:[#allocation2 + $0x27] sm:$0xff] %vm1006_vm4, %v1978_v61 }
0x15ff   :  { %v1958_v3 = vpop.permute.xlu1 %1957 }
0x1600   :  { %v1980_v5 = vpop.permute.xlu0 %1979  ;;  %1969 = vst.msk [vmem:[#allocation2 + $0x8] sm:$0xff] %vm989_vm1, %v1958_v3 }
0x1601   :  { %1988 = vst.msk [vmem:[#allocation2 + $0x2f] sm:$0xff] %vm1006_vm4, %v1980_v5 }
0x1607   :  { %v1976_v7 = vpop.permute.xlu1 %1975 }
0x1608   :  { %v1974_v8 = vpop.permute.xlu0 %1973  ;;  %1986 = vst.msk [vmem:[#allocation2 + $0xf] sm:$0xff] %vm1006_vm4, %v1976_v7  ;;  %v1991_v9 = vld [vmem:[#allocation2 + $0x28] sm:$0xff]  ;;  %v1992_v10 = vld [vmem:[#allocation2 + $0x30] sm:$0xff] }
0x1609   :  { %1985 = vst.msk [vmem:[#allocation2 + $0x7] sm:$0xff] %vm1006_vm4, %v1974_v8  ;;  %2246 = vmatmul.msk.f32.vlgmr.msra.gmra.mxu2 %vm1240_vm13, %v1991_v9 }
0x160f   :  { %v1990_v6 = vld [vmem:[#allocation2 + $0x10] sm:$0xff] }
0x1610   :  { %v1989_v37 = vld [vmem:[#allocation2 + $0x8] sm:$0xff]  ;;  %2245 = vmatmul.msk.f32.vlgmr.msra.gmra.mxu1 %vm1240_vm13, %v1990_v6  ;;  %v1659_v28 = vpop.permute.xlu0 %1658 }
0x1611   :  { %2244 = vmatmul.msk.f32.vlgmr.msra.gmra.mxu0 %vm1240_vm13, %v1989_v37  ;;  %2247 = vmatmul.msk.f32.gmra.mxu2 %vm1240_vm13, %v1992_v10  ;;  %v1669_v30 = vsel %vm218_vm9, %v2973_v23, %v1659_v28 }
0x1612   :  { %v1673_v32 = vsel %vm156_vm8, %v1669_v30, 0.0 }
0x1613   :  { %v1674_v35 = vadd.f32 %v1673_v32, %v1672_v33 }
0x1618   :  { %v1661_v29 = vpop.permute.xlu0 %1660 }
0x1619   :  { %v1670_v31 = vsel %vm218_vm9, %v2975_v24, %v1661_v29 }
0x161a   :  { %v1675_v34 = vsel %vm156_vm8, %v1670_v31, 0.0 }
0x161b   :  { %v1676_v41 = vadd.f32 %v1675_v34, %v1674_v35 }
0x168c   :  { %v3284_v15 = vpop.f32.mrf.mxu2 }
0x168d   :  { %v3286_v16 = vpop.f32.mrf.mxu1  ;;  %v2042_v27 = vmul.f32 %v3284_v15, %v3284_v15 }
0x168e   :  { %v3288_v17 = vpop.f32.mrf.mxu0  ;;  %v2041_v18 = vmul.f32 %v3286_v16, %v3286_v16 }
0x168f   :  { %v2040_v19 = vmul.f32 %v3288_v17, %v3288_v17 }
0x1690   :  { %2050 = vrot.lane.b32.xlu2 %v2041_v18, %s2356_s16 }
0x1691   :  { %2048 = vrot.lane.b32.xlu1 %v2040_v19, %s2356_s16 }
0x1694   :  { %v3296_v20 = vpop.f32.mrf.mxu2 }
0x1695   :  { %v2043_v21 = vmul.f32 %v3296_v20, %v3296_v20 }
0x1697   :  { %2054 = vrot.lane.b32.xlu0 %v2043_v21, %s2356_s16 }
0x1698   :  { %1662 = vrot.lane.b32.xlu2 %v1651_v26, %s2356_s16 }
0x1699   :  { %2052 = vrot.lane.b32.xlu1 %v2042_v27, %s2356_s16 }
0x16ea   :  { %v2051_v11 = vpop.permute.xlu2 %2050 }
0x16eb   :  { %v2061_v52 = vsel %vm218_vm9, %v3286_v16, %v2051_v11 }
0x16ec   :  { %v2065_v55 = vsel %vm156_vm8, %v2061_v52, 0.0 }
0x16f2   :  { %v1663_v40 = vpop.permute.xlu2 %1662 }
0x16f3   :  { %v1671_v42 = vsel %vm218_vm9, %v2977_v25, %v1663_v40 }
0x16f4   :  { %v1677_v43 = vsel %vm156_vm8, %v1671_v42, 0.0 }
0x16f5   :  { %v1678_v44 = vadd.f32 %v1677_v43, %v1676_v41  ;;  %v2157_v43 = vld [vmem:[%s3394_s1 + $0x228] sm:$0xff] }
0x16f6   :  { %2180 = vmatpush.msrb.mxu0 %v2157_v43 }
0x16f7   :  { %v1679_v38 = vrot.slane %v1678_v44, 4 }
0x16f9   :  { %v1680_v45 = vadd.f32 %v1679_v38, %v1678_v44  ;;  %v2156_v44 = vld [vmem:[%s3394_s1 + $0x220] sm:$0xff] }
0x16fa   :  { %2181 = vmatpush.msrb.mxu0 %v2156_v44 }
0x16fb   :  { %v1681_v46 = vrot.slane %v1680_v45, 2 }
0x16fd   :  { %v1682_v36 = vadd.f32 %v1681_v46, %v1680_v45 }
0x16ff   :  { %v1683_v47 = vrot.slane %v1682_v36, 1 }
0x1701   :  { %v1684_v39 = vadd.f32 %v1683_v47, %v1682_v36  ;;  %v2296_v47 = vld [vmem:[%s3394_s1 + $0x242] ss:$0 sm:$0xff] }
0x1703   :  { %v3319_v48 = vmul.f32 0.03125, %v1684_v39  ;;  %v2049_v49 = vpop.permute.xlu1 %2048 }
0x1704   :  { %v2060_v51 = vsel %vm218_vm9, %v3288_v17, %v2049_v49  ;;  %v2370_v49 = vmov 16.0  }
0x1705   :  { %v1686_v50 = vmul.f32 %v3319_v48, %v3319_v48  ;;  %v2064_v53 = vsel %vm156_vm8, %v2060_v51, 0.0  ;;  %v1695_v38 = vsub.f32 %v2971_v22, %v3319_v48  ;;  %v1696_v45 = vsub.f32 %v2973_v23, %v3319_v48 }
0x1706   :  { %v2066_v12 = vadd.f32 %v2065_v55, %v2064_v53  ;;  %v1697_v46 = vsub.f32 %v2975_v24, %v3319_v48  ;;  %v1698_v36 = vsub.f32 %v2977_v25, %v3319_v48  ;;  %v2298_v53 = vld [vmem:[%s3394_s1 + $0x240] ss:$0 sm:$0xff] }
0x1707   :  { %1688 = vrot.lane.b32.xlu1 %v1686_v50, %s2356_s16 }
0x1709   :  { %v2055_v54 = vpop.permute.xlu0 %2054 }
0x170a   :  { %v2063_v57 = vsel %vm218_vm9, %v3296_v20, %v2055_v54  ;;  %v2297_v54 = vld [vmem:[%s3394_s1 + $0x243] ss:$0 sm:$0xff] }
0x170b   :  { %v2053_v56 = vpop.permute.xlu1 %2052  ;;  %v2069_v60 = vsel %vm156_vm8, %v2063_v57, 0.0 }
0x170c   :  { %v2062_v4 = vsel %vm218_vm9, %v3284_v15, %v2053_v56 }
0x170d   :  { %v2067_v58 = vsel %vm156_vm8, %v2062_v4, 0.0 }
0x170e   :  { %v2068_v59 = vadd.f32 %v2067_v58, %v2066_v12 }
0x1710   :  { %v2070_v61 = vadd.f32 %v2069_v60, %v2068_v59 }
0x1712   :  { %v2071_v62 = vrot.slane %v2070_v61, 4 }
0x1714   :  { %v2072_v63 = vadd.f32 %v2071_v62, %v2070_v61 }
0x1716   :  { %v2073_v0 = vrot.slane %v2072_v63, 2 }
0x1718   :  { %v2074_v1 = vadd.f32 %v2073_v0, %v2072_v63 }
0x171a   :  { %v2075_v2 = vrot.slane %v2074_v1, 1 }
0x171c   :  { %v2076_v3 = vadd.f32 %v2075_v2, %v2074_v1 }
0x171e   :  { %v3336_v5 = vmul.f32 0.03125, %v2076_v3 }
0x1720   :  { %v2078_v7 = vmul.f32 %v3336_v5, %v3336_v5  ;;  %v2087_v23 = vsub.f32 %v3288_v17, %v3336_v5  ;;  %v2088_v24 = vsub.f32 %v3286_v16, %v3336_v5  ;;  %v2089_v25 = vsub.f32 %v3284_v15, %v3336_v5  ;;  %v2299_v15 = vld [vmem:[%s3394_s1 + $0x241] ss:$0 sm:$0xff] }
0x1722   :  { %2080 = vrot.lane.b32.xlu2 %v2078_v7, %s2356_s16 }
0x1779   :  { %v1689_v8 = vpop.permute.xlu1 %1688 }
0x177a   :  { %v1691_v9 = vsub.f32 %v3319_v48, %v1689_v8  ;;  %v2090_v48 = vsub.f32 %v3296_v20, %v3336_v5 }
0x177c   :  { %v1692_v6 = vmax.f32 %v1691_v9, 0.0  ;;  %v2081_v37 = vpop.permute.xlu2 %2080 }
0x177d   :  { %v2083_v10 = vsub.f32 %v3336_v5, %v2081_v37 }
0x177e   :  { %v1699_v18 = vadd.f32 1e-05, %v1692_v6 }
0x177f   :  { %v2084_v19 = vmax.f32 %v2083_v10, 0.0 }
0x1780   :  { %2317 = vrsqrt.f32 %v1699_v18  ;;  %vm1706_vm1 = vweird.f32 %v1699_v18 }
0x1781   :  { %v2091_v21 = vadd.f32 1e-05, %v2084_v19 }
0x1783   :  { %2319 = vrsqrt.f32 %v2091_v21  ;;  %vm2098_vm3 = vweird.f32 %v2091_v21 }
0x1784   :  { %2321 = vrcp.f32 %v2370_v49 }
0x1786   :  { %v2318_v26 = vpop.eup %2317 }
0x1787   :  { %v1701_v27 = vmul.f32 %v2318_v26, %v1699_v18  ;;  %vm1707_vm8 = vweird.f32 %v2318_v26 }
0x1788   :  { %vm1708_vm4 = vmor %vm1706_vm1, %vm1707_vm8 }
0x1789   :  { %v2320_v28 = vpop.eup %2319  ;;  %v1702_v13 = vmul.f32 %v2318_v26, %v1701_v27 }
0x178a   :  { %v2093_v29 = vmul.f32 %v2320_v28, %v2091_v21  ;;  %vm2099_vm13 = vweird.f32 %v2320_v28  ;;  %v2322_v59 = vpop.eup %2321 }
0x178b   :  { %v1703_v11 = vmul.f32 0.5, %v1702_v13  ;;  %vm2100_vm14 = vmor %vm2098_vm3, %vm2099_vm13  ;;  %v2148_v6 = vmul.f32 16.0, %v2322_v59  ;;  %vm2152_vm15 = vweird.f32 %v2322_v59 }
0x178c   :  { %v2094_v30 = vmul.f32 %v2320_v28, %v2093_v29 }
0x178d   :  { %v1704_v14 = vsub.f32 1.5, %v1703_v11  ;;  %v2149_v13 = vsub.f32 1.0, %v2148_v6 }
0x178e   :  { %v2095_v31 = vmul.f32 0.5, %v2094_v30 }
0x178f   :  { %v1705_v32 = vmul.f32 %v2318_v26, %v1704_v14 }
0x1790   :  { %v2096_v33 = vsub.f32 1.5, %v2095_v31 }
0x1791   :  { %v1709_v34 = vsel %vm1708_vm4, %v2318_v26, %v1705_v32 }
0x1792   :  { %v2097_v35 = vmul.f32 %v2320_v28, %v2096_v33  ;;  %v1710_v40 = vperm.slane %v1709_v34, 0 }
0x1794   :  { %1712 = vrot.lane.b32.xlu0 %v1710_v40, %s2361_s3  ;;  %v2101_v41 = vsel %vm2100_vm14, %v2320_v28, %v2097_v35  ;;  %v2150_v35 = vmul.f32 %v2322_v59, %v2149_v13 }
0x1795   :  { %v2102_v42 = vperm.slane %v2101_v41, 0 }
0x1796   :  { %v2151_v44 = vadd.f32 %v2322_v59, %v2150_v35 }
0x1797   :  { %2104 = vrot.lane.b32.xlu1 %v2102_v42, %s2361_s3 }
0x1806   :  { %v1713_v39 = vpop.permute.xlu0 %1712 }
0x1807   :  { %v1715_v50 = vmul.f32 %v1713_v39, %v1695_v38  ;;  %v1716_v51 = vmul.f32 %v1713_v39, %v1696_v45  ;;  %v1717_v52 = vmul.f32 %v1713_v39, %v1697_v46  ;;  %v1718_v22 = vmul.f32 %v1713_v39, %v1698_v36 }
0x1809   :  { %v1720_v55 = vmul.f32 %v2296_v47, %v1715_v50  ;;  %v1721_v56 = vmul.f32 %v2296_v47, %v1716_v51  ;;  %v1722_v17 = vmul.f32 %v2296_v47, %v1717_v52  ;;  %v1723_v12 = vmul.f32 %v2296_v47, %v1718_v22  ;;  %v2105_v57 = vpop.permute.xlu1 %2104  ;;  %v2300_v22 = vld [vmem:[%s3394_s1 + $0x244] ss:$0 sm:$0xff] }
0x180a   :  { %v2107_v16 = vmul.f32 %v2105_v57, %v2087_v23  ;;  %v2108_v4 = vmul.f32 %v2105_v57, %v2088_v24  ;;  %v2109_v20 = vmul.f32 %v2105_v57, %v2089_v25  ;;  %v2110_v58 = vmul.f32 %v2105_v57, %v2090_v48 }
0x180b   :  { %v1725_v0 = vadd.f32 %v2297_v54, %v1720_v55  ;;  %v1726_v1 = vadd.f32 %v2297_v54, %v1721_v56  ;;  %v1727_v2 = vadd.f32 %v2297_v54, %v1722_v17  ;;  %v1728_v3 = vadd.f32 %v2297_v54, %v1723_v12 }
0x180c   :  { %v2112_v60 = vmul.f32 %v2298_v53, %v2107_v16  ;;  %v2113_v61 = vmul.f32 %v2298_v53, %v2108_v4  ;;  %v2114_v62 = vmul.f32 %v2298_v53, %v2109_v20  ;;  %v2115_v63 = vmul.f32 %v2298_v53, %v2110_v58 }
0x180d   :  { %v2153_v47 = vsel %vm2152_vm15, %v2322_v59, %v2151_v44 }
0x180e   :  { %v2117_v5 = vadd.f32 %v2299_v15, %v2112_v60  ;;  %v2118_v7 = vadd.f32 %v2299_v15, %v2113_v61  ;;  %v2119_v8 = vadd.f32 %v2299_v15, %v2114_v62  ;;  %v2120_v9 = vadd.f32 %v2299_v15, %v2115_v63 }
0x1810   :  { %v2121_v37 = vadd.f32 %v2117_v5, %v1725_v0  ;;  %v2122_v10 = vadd.f32 %v2118_v7, %v1726_v1  ;;  %v2123_v18 = vadd.f32 %v2119_v8, %v1727_v2  ;;  %v2124_v19 = vadd.f32 %v2120_v9, %v1728_v3 }
0x1812   :  { %v2125_v21 = vmax.f32 %v2121_v37, 0.0  ;;  %v2126_v26 = vmax.f32 %v2122_v10, 0.0  ;;  %v2127_v27 = vmax.f32 %v2123_v18, 0.0  ;;  %v2128_v28 = vmax.f32 %v2124_v19, 0.0 }
0x1814   :  { %v2129_v29 = vsel %vm218_vm9, %v2125_v21, 0.0  ;;  %v2130_v11 = vsel %vm218_vm9, %v2126_v26, 0.0  ;;  %v2138_v30 = vsel %vm218_vm9, %v2127_v27, 0.0  ;;  %v2139_v14 = vsel %vm218_vm9, %v2128_v28, 0.0 }
0x1815   :  { %v2131_v31 = vadd.f32 %v2130_v11, %v2129_v29  ;;  %v2140_v32 = vadd.f32 %v2139_v14, %v2138_v30 }
0x1817   :  { %v2132_v33 = vrot.slane %v2131_v31, 4  ;;  %v2141_v34 = vrot.slane %v2140_v32, 4 }
0x1819   :  { %v2133_v40 = vadd.f32 %v2132_v33, %v2131_v31  ;;  %v2142_v41 = vadd.f32 %v2141_v34, %v2140_v32 }
0x181b   :  { %v2134_v42 = vrot.slane %v2133_v40, 2  ;;  %v2143_v43 = vrot.slane %v2142_v41, 2 }
0x181d   :  { %v2135_v38 = vadd.f32 %v2134_v42, %v2133_v40  ;;  %v2144_v45 = vadd.f32 %v2143_v43, %v2142_v41 }
0x181f   :  { %v2136_v46 = vrot.slane %v2135_v38, 1  ;;  %v2145_v36 = vrot.slane %v2144_v45, 1 }
0x1821   :  { %v2137_v39 = vadd.f32 %v2136_v46, %v2135_v38  ;;  %v2146_v49 = vadd.f32 %v2145_v36, %v2144_v45 }
0x1823   :  { %v2154_v50 = vmul.f32 %v2153_v47, %v2137_v39  ;;  %v2155_v51 = vmul.f32 %v2153_v47, %v2146_v49 }
0x1825   :  { %v2163_v52 = vsel %vm2162_vm0, %v2155_v51, %v2154_v50 }
0x1826   :  { %2248 = vmatmul.msk.f32.vlgmr.msrb.gmra.mxu0 %vm218_vm9, %v2163_v52 }
0x18a3   :  { %v2183_v23 = vpop.f32.mrf.mxu0 }
0x18a4   :  { %v2184_v24 = vadd.f32 %v2300_v22, %v2183_v23 }
0x18a6   :  { %v2187_v25 = vsel %vm2186_vm10, %v2184_v24, -inf }
0x18a7   :  { %2188 = vmax.xlane.f32.xlu2 %v2187_v25 }
0x191a   :  { %v2189_v48 = vpop.xlane.xlu2 %2188 }
0x191b   :  { %v2190_v53 = vsub.f32 %v2184_v24, %v2189_v48 }
0x191d   :  { %v2191_v54 = vmul.f32 1.442695, %v2190_v53 }
0x191f   :  { %2323 = vpow2.f32 %v2191_v54 }
0x1925   :  { %v2324_v55 = vpop.eup %2323 }
0x1926   :  { %v2193_v56 = vsel %vm2186_vm10, %v2324_v55, 0.0 }
0x1927   :  { %2194 = vadd.xlane.f32.xlu0 %v2193_v56 }
0x199a   :  { %v2195_v17 = vpop.xlane.xlu0 %2194 }
0x199b   :  { %2325 = vlog2.f32 %v2195_v17 }
0x19a1   :  { %v2326_v12 = vpop.eup %2325 }
0x19a2   :  { %v2197_v57 = vmul.f32 0.6931472, %v2326_v12 }
0x19a4   :  { %v2198_v15 = vsub.f32 %v2190_v53, %v2197_v57 }
0x19a6   :  { %2199 = vst.msk [vmem:[#allocation3] sm:$0x3] %vm2186_vm10, %v2198_v15 }
0x19a7   :  { %2210 = dma.vmem_to_hbm [thread:$0]  %s2206_s13, 32, %s2208_s14, [#allocation4]  }
0x19a8   :  { %2351 = dma.done.wait [#allocation4], 32  }
0x19a9   :  { %2352 = vsyncadd [#allocation4], 4294967264 }
0x19aa   :  { %2215 = vsyncpa [#allocation4], 1 }

</bundles_post_ra>
